<compile_context>
chip_gen: v5e
topology: v5e:2x2
jax: 0.10.0
libtpu: 0.0.40
codegen_flags: <defaults>
</compile_context>

<pallas_src>
import jax
import jax.numpy as jnp
from jax.experimental import pallas as pl
from jax.experimental.pallas import tpu as pltpu


def _leaky_relu_01(x):
    return jnp.where(x >= 0, x, 0.1 * x)


def _resblock_kernel(x_ref, w1_ref, b1_ref, w2_ref, b2_ref, out_ref, pad_ref):
    # x_ref:   (1, H, W, C)   one batch element, NHWC
    # w*_ref:  (9*C, C)       im2col-packed weights: row = tap*C + c_in, f32
    # b*_ref:  (1, C)         f32
    # out_ref: (1, H, W, C)
    # pad_ref: (H+2, W+2, C)  f32 VMEM scratch: zero-padded plane, reused by
    #                         both convs (only the interior is rewritten).
    _, H, W, C = x_ref.shape
    HW = H * W

    # Zero only the 1-wide halo stripes (NOT the whole plane): the interior is
    # fully overwritten below, and the halo stays zero for conv2 as well.
    zrow = jnp.zeros((1, W + 2, C), jnp.float32)
    zcol = jnp.zeros((H, 1, C), jnp.float32)
    pad_ref[0:1, :, :] = zrow
    pad_ref[H + 1:H + 2, :, :] = zrow
    pad_ref[1:H + 1, 0:1, :] = zcol
    pad_ref[1:H + 1, W + 1:W + 2, :] = zcol

    def conv3x3(w_ref, b_ref):
        # im2col: gather the 9 shifted (H, W, C) windows, concatenate along the
        # channel axis -> (H*W, 9*C), then a single MXU matmul with K = 9*C.
        windows = [pad_ref[dy:dy + H, dx:dx + W, :]
                   for dy in range(3) for dx in range(3)]
        patches = jnp.concatenate(windows, axis=-1).reshape(HW, 9 * C)
        y = jnp.dot(patches, w_ref[...],
                    preferred_element_type=jnp.float32)          # (H*W, C)
        return _leaky_relu_01(y + b_ref[...])

    # --- conv1 + LeakyReLU(0.1) --------------------------------------------
    pad_ref[1:H + 1, 1:W + 1, :] = x_ref[0].astype(jnp.float32)
    y1 = conv3x3(w1_ref, b1_ref)                                  # (H*W, C)

    # --- conv2 + LeakyReLU(0.1)  (halo of pad_ref is still zero) ------------
    pad_ref[1:H + 1, 1:W + 1, :] = y1.reshape(H, W, C)
    y2 = conv3x3(w2_ref, b2_ref)                                  # (H*W, C)

    # --- residual add (re-read x from VMEM to bound liveness) ---------------
    out_ref[0] = (x_ref[0].astype(jnp.float32)
                  + y2.reshape(H, W, C)).astype(out_ref.dtype)


def resblock_leakyrelu_forward(x, w1, b1, w2, b2):
    """Forward of ResBlock_LeakyReLU_0_Point_1.

    x:        [N, C, H, W]   (NCHW, PyTorch layout)
    w1, w2:   [C, C, 3, 3]   (OIHW, PyTorch Conv2d.weight layout)
    b1, b2:   [C]
    returns:  [N, C, H, W]
    """
    N, C, H, W = x.shape
    dtype = x.dtype

    # Layout plumbing (wrapper side): channels onto the lane dimension.
    x_nhwc = jnp.transpose(x, (0, 2, 3, 1))                     # (N, H, W, C)

    # OIHW -> (kh, kw, C_in, C_out) -> (9*C_in, C_out): im2col-packed weights,
    # row index = (kh*3 + kw)*C + c_in, matching the in-kernel patch layout.
    w1_p = jnp.transpose(w1, (2, 3, 1, 0)).reshape(9 * C, C).astype(jnp.float32)
    w2_p = jnp.transpose(w2, (2, 3, 1, 0)).reshape(9 * C, C).astype(jnp.float32)
    b1_r = b1.reshape(1, C).astype(jnp.float32)
    b2_r = b2.reshape(1, C).astype(jnp.float32)

    flops = 2 * 2 * 9 * N * H * W * C * C   # two convs, 2 flops per MAC
    bytes_accessed = (2 * x.size * x.dtype.itemsize
                      + 4 * (w1_p.size + w2_p.size + b1_r.size + b2_r.size))

    out_nhwc = pl.pallas_call(
        _resblock_kernel,
        out_shape=jax.ShapeDtypeStruct((N, H, W, C), dtype),
        grid_spec=pltpu.PrefetchScalarGridSpec(
            num_scalar_prefetch=0,
            grid=(N,),
            in_specs=[
                pl.BlockSpec((1, H, W, C), lambda n: (n, 0, 0, 0)),
                pl.BlockSpec((9 * C, C), lambda n: (0, 0)),
                pl.BlockSpec((1, C), lambda n: (0, 0)),
                pl.BlockSpec((9 * C, C), lambda n: (0, 0)),
                pl.BlockSpec((1, C), lambda n: (0, 0)),
            ],
            out_specs=pl.BlockSpec((1, H, W, C), lambda n: (n, 0, 0, 0)),
            scratch_shapes=[pltpu.VMEM((H + 2, W + 2, C), jnp.float32)],
        ),
        compiler_params=pltpu.CompilerParams(
            dimension_semantics=("parallel",),
            vmem_limit_bytes=64 * 1024 * 1024,
        ),
        cost_estimate=pl.CostEstimate(
            flops=flops, transcendentals=0, bytes_accessed=bytes_accessed),
    )(x_nhwc, w1_p, b1_r, w2_p, b2_r)

    return jnp.transpose(out_nhwc, (0, 3, 1, 2))


if __name__ == "__main__":
    key = jax.random.PRNGKey(0)
    k1, k2, k3, k4, k5 = jax.random.split(key, 5)

    N, C, H, W = 2, 4, 16, 16
    x = jax.random.normal(k1, (N, C, H, W), dtype=jnp.float32)
    w1 = jax.random.normal(k2, (C, C, 3, 3), dtype=jnp.float32) * 0.2
    b1 = jax.random.normal(k3, (C,), dtype=jnp.float32) * 0.1
    w2 = jax.random.normal(k4, (C, C, 3, 3), dtype=jnp.float32) * 0.2
    b2 = jax.random.normal(k5, (C,), dtype=jnp.float32) * 0.1

    out = resblock_leakyrelu_forward(x, w1, b1, w2, b2)
    out = jax.block_until_ready(out)

    # Pure-JAX reference: Conv2d(3x3, s=1, p=1) + LeakyReLU(0.1), twice, + residual.
    def ref_forward(x, w1, b1, w2, b2):
        dn = ("NCHW", "OIHW", "NCHW")
        y = jax.lax.conv_general_dilated(x, w1, (1, 1), ((1, 1), (1, 1)),
                                         dimension_numbers=dn)
        y = y + b1[None, :, None, None]
        y = jnp.where(y >= 0, y, 0.1 * y)
        y = jax.lax.conv_general_dilated(y, w2, (1, 1), ((1, 1), (1, 1)),
                                         dimension_numbers=dn)
        y = y + b2[None, :, None, None]
        y = jnp.where(y >= 0, y, 0.1 * y)
        return x + y

    ref = ref_forward(x, w1, b1, w2, b2)

    assert out.shape == x.shape and out.dtype == x.dtype
    max_err = float(jnp.max(jnp.abs(out - ref)))
    assert bool(jnp.allclose(out, ref, atol=1e-3, rtol=1e-3)), max_err

    print("KERNEL_OK")
</pallas_src>

<mosaic_0001>
module attributes {stable_mosaic.version = 11 : i64} {
  func.func @_resblock_kernel(%arg0: i32, %arg1: memref<1x16x16x4xf32, #tpu.memory_space<vmem>>, %arg2: memref<36x4xf32, #tpu.memory_space<vmem>>, %arg3: memref<1x4xf32, #tpu.memory_space<vmem>>, %arg4: memref<36x4xf32, #tpu.memory_space<vmem>>, %arg5: memref<1x4xf32, #tpu.memory_space<vmem>>, %arg6: memref<1x16x16x4xf32, #tpu.memory_space<vmem>>, %arg7: memref<18x18x4xf32, #tpu.memory_space<vmem>>) attributes {dimension_semantics = [#tpu.dimension_semantics<parallel>], iteration_bounds = array<i64: 2>, scalar_prefetch = 0 : i64, scratch_operands = 1 : i64, tpu.core_type = #tpu.core_type<tc>, window_params = [{transform_indices = @transform_0, window_bounds = array<i64: 1, 16, 16, 4>}, {pipeline_mode = #tpu.pipeline_mode<synchronous>, transform_indices = @transform_1, window_bounds = array<i64: 36, 4>}, {pipeline_mode = #tpu.pipeline_mode<synchronous>, transform_indices = @transform_2, window_bounds = array<i64: 1, 4>}, {pipeline_mode = #tpu.pipeline_mode<synchronous>, transform_indices = @transform_3, window_bounds = array<i64: 36, 4>}, {pipeline_mode = #tpu.pipeline_mode<synchronous>, transform_indices = @transform_4, window_bounds = array<i64: 1, 4>}, {transform_indices = @transform_5, window_bounds = array<i64: 1, 16, 16, 4>}]} {
    %cst = arith.constant 0.000000e+00 : f32
    %0 = vector.broadcast %cst : f32 to vector<1x18x4xf32>
    %cst_0 = arith.constant 0.000000e+00 : f32
    %1 = vector.broadcast %cst_0 : f32 to vector<16x1x4xf32>
    %c0 = arith.constant 0 : index
    %c0_1 = arith.constant 0 : index
    %c0_2 = arith.constant 0 : index
    %2 = vector.load %arg7[%c0, %c0_1, %c0_2] : memref<18x18x4xf32, #tpu.memory_space<vmem>>, vector<1x18x4xf32>
    tpu.vector_store %arg7[%c0, %c0_1, %c0_2], %0 {strides = array<i32>} : memref<18x18x4xf32, #tpu.memory_space<vmem>>, vector<1x18x4xf32>,
    %c17 = arith.constant 17 : index
    %c0_3 = arith.constant 0 : index
    %c0_4 = arith.constant 0 : index
    %3 = vector.load %arg7[%c17, %c0_3, %c0_4] : memref<18x18x4xf32, #tpu.memory_space<vmem>>, vector<1x18x4xf32>
    tpu.vector_store %arg7[%c17, %c0_3, %c0_4], %0 {strides = array<i32>} : memref<18x18x4xf32, #tpu.memory_space<vmem>>, vector<1x18x4xf32>,
    %c1 = arith.constant 1 : index
    %c0_5 = arith.constant 0 : index
    %c0_6 = arith.constant 0 : index
    %4 = vector.load %arg7[%c1, %c0_5, %c0_6] : memref<18x18x4xf32, #tpu.memory_space<vmem>>, vector<16x1x4xf32>
    tpu.vector_store %arg7[%c1, %c0_5, %c0_6], %1 {strides = array<i32>} : memref<18x18x4xf32, #tpu.memory_space<vmem>>, vector<16x1x4xf32>,
    %c1_7 = arith.constant 1 : index
    %c17_8 = arith.constant 17 : index
    %c0_9 = arith.constant 0 : index
    %5 = vector.load %arg7[%c1_7, %c17_8, %c0_9] : memref<18x18x4xf32, #tpu.memory_space<vmem>>, vector<16x1x4xf32>
    tpu.vector_store %arg7[%c1_7, %c17_8, %c0_9], %1 {strides = array<i32>} : memref<18x18x4xf32, #tpu.memory_space<vmem>>, vector<16x1x4xf32>,
    %c0_10 = arith.constant 0 : index
    %c0_11 = arith.constant 0 : index
    %c0_12 = arith.constant 0 : index
    %c0_13 = arith.constant 0 : index
    %6 = vector.load %arg1[%c0_10, %c0_11, %c0_12, %c0_13] : memref<1x16x16x4xf32, #tpu.memory_space<vmem>>, vector<1x16x16x4xf32>
    %7 = vector.shape_cast %6 : vector<1x16x16x4xf32> to vector<16x16x4xf32>
    %c1_14 = arith.constant 1 : index
    %c1_15 = arith.constant 1 : index
    %c0_16 = arith.constant 0 : index
    %8 = vector.load %arg7[%c1_14, %c1_15, %c0_16] : memref<18x18x4xf32, #tpu.memory_space<vmem>>, vector<16x16x4xf32>
    tpu.vector_store %arg7[%c1_14, %c1_15, %c0_16], %7 {strides = array<i32>} : memref<18x18x4xf32, #tpu.memory_space<vmem>>, vector<16x16x4xf32>,
    %c0_17 = arith.constant 0 : index
    %c0_18 = arith.constant 0 : index
    %c0_19 = arith.constant 0 : index
    %9 = vector.load %arg7[%c0_17, %c0_18, %c0_19] : memref<18x18x4xf32, #tpu.memory_space<vmem>>, vector<16x16x4xf32>
    %c0_20 = arith.constant 0 : index
    %c1_21 = arith.constant 1 : index
    %c0_22 = arith.constant 0 : index
    %10 = vector.load %arg7[%c0_20, %c1_21, %c0_22] : memref<18x18x4xf32, #tpu.memory_space<vmem>>, vector<16x16x4xf32>
    %c0_23 = arith.constant 0 : index
    %c2 = arith.constant 2 : index
    %c0_24 = arith.constant 0 : index
    %11 = vector.load %arg7[%c0_23, %c2, %c0_24] : memref<18x18x4xf32, #tpu.memory_space<vmem>>, vector<16x16x4xf32>
    %c1_25 = arith.constant 1 : index
    %c0_26 = arith.constant 0 : index
    %c0_27 = arith.constant 0 : index
    %12 = vector.load %arg7[%c1_25, %c0_26, %c0_27] : memref<18x18x4xf32, #tpu.memory_space<vmem>>, vector<16x16x4xf32>
    %c1_28 = arith.constant 1 : index
    %c1_29 = arith.constant 1 : index
    %c0_30 = arith.constant 0 : index
    %13 = vector.load %arg7[%c1_28, %c1_29, %c0_30] : memref<18x18x4xf32, #tpu.memory_space<vmem>>, vector<16x16x4xf32>
    %c1_31 = arith.constant 1 : index
    %c2_32 = arith.constant 2 : index
    %c0_33 = arith.constant 0 : index
    %14 = vector.load %arg7[%c1_31, %c2_32, %c0_33] : memref<18x18x4xf32, #tpu.memory_space<vmem>>, vector<16x16x4xf32>
    %c2_34 = arith.constant 2 : index
    %c0_35 = arith.constant 0 : index
    %c0_36 = arith.constant 0 : index
    %15 = vector.load %arg7[%c2_34, %c0_35, %c0_36] : memref<18x18x4xf32, #tpu.memory_space<vmem>>, vector<16x16x4xf32>
    %c2_37 = arith.constant 2 : index
    %c1_38 = arith.constant 1 : index
    %c0_39 = arith.constant 0 : index
    %16 = vector.load %arg7[%c2_37, %c1_38, %c0_39] : memref<18x18x4xf32, #tpu.memory_space<vmem>>, vector<16x16x4xf32>
    %c2_40 = arith.constant 2 : index
    %c2_41 = arith.constant 2 : index
    %c0_42 = arith.constant 0 : index
    %17 = vector.load %arg7[%c2_40, %c2_41, %c0_42] : memref<18x18x4xf32, #tpu.memory_space<vmem>>, vector<16x16x4xf32>
    %18 = tpu.concatenate %9, %10, %11, %12, %13, %14, %15, %16, %17 in 2 : vector<16x16x4xf32>, vector<16x16x4xf32>, vector<16x16x4xf32>, vector<16x16x4xf32>, vector<16x16x4xf32>, vector<16x16x4xf32>, vector<16x16x4xf32>, vector<16x16x4xf32>, vector<16x16x4xf32> -> vector<16x16x36xf32>
    %19 = vector.shape_cast %18 : vector<16x16x36xf32> to vector<256x36xf32>
    %c0_43 = arith.constant 0 : index
    %c0_44 = arith.constant 0 : index
    %20 = vector.load %arg2[%c0_43, %c0_44] : memref<36x4xf32, #tpu.memory_space<vmem>>, vector<36x4xf32>
    %cst_45 = arith.constant dense<0.000000e+00> : vector<256x4xf32>
    %21 = tpu.matmul %19, %20, %cst_45 {dimension_numbers = #tpu.dot_dimension_numbers<[1], [0], [0], [1], [0, 0, 1, 1], [], []>} : vector<256x36xf32>, vector<36x4xf32>, vector<256x4xf32> -> vector<256x4xf32>
    %c0_46 = arith.constant 0 : index
    %c0_47 = arith.constant 0 : index
    %22 = vector.load %arg3[%c0_46, %c0_47] : memref<1x4xf32, #tpu.memory_space<vmem>>, vector<1x4xf32>
    %23 = vector.broadcast %22 : vector<1x4xf32> to vector<256x4xf32>
    %24 = arith.addf %21, %23 : vector<256x4xf32>
    %cst_48 = arith.constant 0.000000e+00 : f32
    %25 = vector.broadcast %cst_48 : f32 to vector<256x4xf32>
    %26 = arith.cmpf oge, %24, %25 : vector<256x4xf32>
    %cst_49 = arith.constant 1.000000e-01 : f32
    %27 = vector.broadcast %cst_49 : f32 to vector<256x4xf32>
    %28 = arith.mulf %27, %24 : vector<256x4xf32>
    %29 = arith.select %26, %24, %28 : vector<256x4xi1>, vector<256x4xf32>
    %30 = vector.shape_cast %29 : vector<256x4xf32> to vector<16x16x4xf32>
    %c1_50 = arith.constant 1 : index
    %c1_51 = arith.constant 1 : index
    %c0_52 = arith.constant 0 : index
    %31 = vector.load %arg7[%c1_50, %c1_51, %c0_52] : memref<18x18x4xf32, #tpu.memory_space<vmem>>, vector<16x16x4xf32>
    tpu.vector_store %arg7[%c1_50, %c1_51, %c0_52], %30 {strides = array<i32>} : memref<18x18x4xf32, #tpu.memory_space<vmem>>, vector<16x16x4xf32>,
    %c0_53 = arith.constant 0 : index
    %c0_54 = arith.constant 0 : index
    %c0_55 = arith.constant 0 : index
    %32 = vector.load %arg7[%c0_53, %c0_54, %c0_55] : memref<18x18x4xf32, #tpu.memory_space<vmem>>, vector<16x16x4xf32>
    %c0_56 = arith.constant 0 : index
    %c1_57 = arith.constant 1 : index
    %c0_58 = arith.constant 0 : index
    %33 = vector.load %arg7[%c0_56, %c1_57, %c0_58] : memref<18x18x4xf32, #tpu.memory_space<vmem>>, vector<16x16x4xf32>
    %c0_59 = arith.constant 0 : index
    %c2_60 = arith.constant 2 : index
    %c0_61 = arith.constant 0 : index
    %34 = vector.load %arg7[%c0_59, %c2_60, %c0_61] : memref<18x18x4xf32, #tpu.memory_space<vmem>>, vector<16x16x4xf32>
    %c1_62 = arith.constant 1 : index
    %c0_63 = arith.constant 0 : index
    %c0_64 = arith.constant 0 : index
    %35 = vector.load %arg7[%c1_62, %c0_63, %c0_64] : memref<18x18x4xf32, #tpu.memory_space<vmem>>, vector<16x16x4xf32>
    %c1_65 = arith.constant 1 : index
    %c1_66 = arith.constant 1 : index
    %c0_67 = arith.constant 0 : index
    %36 = vector.load %arg7[%c1_65, %c1_66, %c0_67] : memref<18x18x4xf32, #tpu.memory_space<vmem>>, vector<16x16x4xf32>
    %c1_68 = arith.constant 1 : index
    %c2_69 = arith.constant 2 : index
    %c0_70 = arith.constant 0 : index
    %37 = vector.load %arg7[%c1_68, %c2_69, %c0_70] : memref<18x18x4xf32, #tpu.memory_space<vmem>>, vector<16x16x4xf32>
    %c2_71 = arith.constant 2 : index
    %c0_72 = arith.constant 0 : index
    %c0_73 = arith.constant 0 : index
    %38 = vector.load %arg7[%c2_71, %c0_72, %c0_73] : memref<18x18x4xf32, #tpu.memory_space<vmem>>, vector<16x16x4xf32>
    %c2_74 = arith.constant 2 : index
    %c1_75 = arith.constant 1 : index
    %c0_76 = arith.constant 0 : index
    %39 = vector.load %arg7[%c2_74, %c1_75, %c0_76] : memref<18x18x4xf32, #tpu.memory_space<vmem>>, vector<16x16x4xf32>
    %c2_77 = arith.constant 2 : index
    %c2_78 = arith.constant 2 : index
    %c0_79 = arith.constant 0 : index
    %40 = vector.load %arg7[%c2_77, %c2_78, %c0_79] : memref<18x18x4xf32, #tpu.memory_space<vmem>>, vector<16x16x4xf32>
    %41 = tpu.concatenate %32, %33, %34, %35, %36, %37, %38, %39, %40 in 2 : vector<16x16x4xf32>, vector<16x16x4xf32>, vector<16x16x4xf32>, vector<16x16x4xf32>, vector<16x16x4xf32>, vector<16x16x4xf32>, vector<16x16x4xf32>, vector<16x16x4xf32>, vector<16x16x4xf32> -> vector<16x16x36xf32>
    %42 = vector.shape_cast %41 : vector<16x16x36xf32> to vector<256x36xf32>
    %c0_80 = arith.constant 0 : index
    %c0_81 = arith.constant 0 : index
    %43 = vector.load %arg4[%c0_80, %c0_81] : memref<36x4xf32, #tpu.memory_space<vmem>>, vector<36x4xf32>
    %cst_82 = arith.constant dense<0.000000e+00> : vector<256x4xf32>
    %44 = tpu.matmul %42, %43, %cst_82 {dimension_numbers = #tpu.dot_dimension_numbers<[1], [0], [0], [1], [0, 0, 1, 1], [], []>} : vector<256x36xf32>, vector<36x4xf32>, vector<256x4xf32> -> vector<256x4xf32>
    %c0_83 = arith.constant 0 : index
    %c0_84 = arith.constant 0 : index
    %45 = vector.load %arg5[%c0_83, %c0_84] : memref<1x4xf32, #tpu.memory_space<vmem>>, vector<1x4xf32>
    %46 = vector.broadcast %45 : vector<1x4xf32> to vector<256x4xf32>
    %47 = arith.addf %44, %46 : vector<256x4xf32>
    %cst_85 = arith.constant 0.000000e+00 : f32
    %48 = vector.broadcast %cst_85 : f32 to vector<256x4xf32>
    %49 = arith.cmpf oge, %47, %48 : vector<256x4xf32>
    %cst_86 = arith.constant 1.000000e-01 : f32
    %50 = vector.broadcast %cst_86 : f32 to vector<256x4xf32>
    %51 = arith.mulf %50, %47 : vector<256x4xf32>
    %52 = arith.select %49, %47, %51 : vector<256x4xi1>, vector<256x4xf32>
    %c0_87 = arith.constant 0 : index
    %c0_88 = arith.constant 0 : index
    %c0_89 = arith.constant 0 : index
    %c0_90 = arith.constant 0 : index
    %53 = vector.load %arg1[%c0_87, %c0_88, %c0_89, %c0_90] : memref<1x16x16x4xf32, #tpu.memory_space<vmem>>, vector<1x16x16x4xf32>
    %54 = vector.shape_cast %53 : vector<1x16x16x4xf32> to vector<16x16x4xf32>
    %55 = vector.shape_cast %52 : vector<256x4xf32> to vector<16x16x4xf32>
    %56 = arith.addf %54, %55 : vector<16x16x4xf32>
    %c0_91 = arith.constant 0 : index
    %c0_92 = arith.constant 0 : index
    %c0_93 = arith.constant 0 : index
    %c0_94 = arith.constant 0 : index
    %57 = vector.load %arg6[%c0_91, %c0_92, %c0_93, %c0_94] : memref<1x16x16x4xf32, #tpu.memory_space<vmem>>, vector<1x16x16x4xf32>
    %58 = vector.shape_cast %57 : vector<1x16x16x4xf32> to vector<16x16x4xf32>
    %59 = vector.shape_cast %56 : vector<16x16x4xf32> to vector<1x16x16x4xf32>
    tpu.vector_store %arg6[%c0_91, %c0_92, %c0_93, %c0_94], %59 {strides = array<i32>} : memref<1x16x16x4xf32, #tpu.memory_space<vmem>>, vector<1x16x16x4xf32>,
    return
  }
  func.func @transform_0(%arg0: i32) -> (i32, i32, i32, i32) {
    %c0_i32 = arith.constant 0 : i32
    %c0_i32_0 = arith.constant 0 : i32
    %c0_i32_1 = arith.constant 0 : i32
    %c0_i32_2 = arith.constant 0 : i32
    return %arg0, %c0_i32, %c0_i32_0, %c0_i32_1 : i32, i32, i32, i32
  }
  func.func @transform_1(%arg0: i32) -> (i32, i32) {
    %c0_i32 = arith.constant 0 : i32
    %c0_i32_0 = arith.constant 0 : i32
    %c0_i32_1 = arith.constant 0 : i32
    return %c0_i32, %c0_i32_0 : i32, i32
  }
  func.func @transform_2(%arg0: i32) -> (i32, i32) {
    %c0_i32 = arith.constant 0 : i32
    %c0_i32_0 = arith.constant 0 : i32
    %c0_i32_1 = arith.constant 0 : i32
    return %c0_i32, %c0_i32_0 : i32, i32
  }
  func.func @transform_3(%arg0: i32) -> (i32, i32) {
    %c0_i32 = arith.constant 0 : i32
    %c0_i32_0 = arith.constant 0 : i32
    %c0_i32_1 = arith.constant 0 : i32
    return %c0_i32, %c0_i32_0 : i32, i32
  }
  func.func @transform_4(%arg0: i32) -> (i32, i32) {
    %c0_i32 = arith.constant 0 : i32
    %c0_i32_0 = arith.constant 0 : i32
    %c0_i32_1 = arith.constant 0 : i32
    return %c0_i32, %c0_i32_0 : i32, i32
  }
  func.func @transform_5(%arg0: i32) -> (i32, i32, i32, i32) {
    %c0_i32 = arith.constant 0 : i32
    %c0_i32_0 = arith.constant 0 : i32
    %c0_i32_1 = arith.constant 0 : i32
    %c0_i32_2 = arith.constant 0 : i32
    return %arg0, %c0_i32, %c0_i32_0, %c0_i32_1 : i32, i32, i32, i32
  }
}

</mosaic_0001>

<bundles_post_ra>
// kernel: tpu_custom_call.1
= control target key start
LH: loop header
LB: loop body
LE: loop exit
PB: predicated region body
PF: predicated region fallthrough
CT: control target
= control target key end

     0   :  { %s4492_s18 = smov 0   ;;  %s7825_s0 = inlined_call_operand.vmem [shape: f32[2,16,16,4], index: 0, kind: input, shape index: {}]   ;;  %s7826_s1 = inlined_call_operand.vmem [shape: f32[36,4], index: 1, kind: input, shape index: {}]   ;;  %s7827_s2 = inlined_call_operand.vmem [shape: f32[1,4], index: 2, kind: input, shape index: {}]   ;;  %s7828_s3 = inlined_call_operand.vmem [shape: f32[36,4], index: 3, kind: input, shape index: {}]   ;;  %s7829_s4 = inlined_call_operand.vmem [shape: f32[1,4], index: 4, kind: input, shape index: {}]   ;;  %s7830_s5 = inlined_call_operand.vmem [shape: f32[2,16,16,4], index: 5, kind: output, shape index: {}]  }
   0x1 LB: > { %s4295_s19 = sadd.s32 4294967295, %s4451_s18   ;;  %p4299_p0 = scmp.ge.s32.totalorder %s4451_s18, 1  ;;  %s4451_s18 = sphi %s4492_s18, %s15_s18  }
   0x2   : > { %p187_p1 = scmp.lt.s32.totalorder %s4451_s18, 3 }
   0x4   : > { %p188_p2 = pnand %p4299_p0, %p187_p1 }
   0x6   : > { %191 = sbr.rel (%p188_p2) target bundleno = 1871 (0x74f), region = 40 }
   0xb   : > { %vm225_vm0 = vcmask 31744   ;;  %p215_p3 = scmp.lt.s32.totalorder %s4295_s19, 1  ;;  %v4453_v0 = vmov 0.0   ;;  %vm228_vm1 = vcmask 25600   ;;  %s4454_s24 = smov 4   ;;  %vm235_vm2 = vcmask 24576  }
   0xc   : > { %226 = vst.msk [vmem:[#allocation2] sm:$0xff] %vm225_vm0, %v4453_v0  ;;  %s4455_s25 = smov 8   ;;  %s4456_s26 = smov 12   ;;  %vm2014_vm3 = vcmask 1043456   ;;  %vm1677_vm4 = vcmask 64512   ;;  %vm1710_vm5 = vcmask 97280  }
   0xd   : > { %227 = vst.msk [vmem:[#allocation2 + $0x8] sm:$0xff] %vm225_vm0, %v4453_v0  ;;  %s8468_s19 = smov (!%p215_p3, %s4295_s19), 1  ;;  %s4457_s27 = smov 16   ;;  %vm1776_vm6 = vcmask 162816   ;;  %vm1743_vm7 = vcmask 130048   ;;  %vm1809_vm8 = vcmask 195584  }
   0xe   : > { %231 = vst.msk [vmem:[#allocation2 + $0x198] sm:$0xff] %vm225_vm0, %v4453_v0  ;;  %s4372_s20 = sshll.u32 %s8468_s19, 8  ;;  %s4458_s28 = smov 20   ;;  %vm1875_vm9 = vcmask 261120   ;;  %vm1842_vm10 = vcmask 228352   ;;  %vm1917_vm11 = vcmask 293888  }
   0xf   : > { %232 = vst.msk [vmem:[#allocation2 + $0x1a0] sm:$0xff] %vm225_vm0, %v4453_v0  ;;  %s4516_s23 = scalar_lea.vmem %s7825_s0, %s4372_s20  ;;  %s4459_s29 = smov 24  }
  0x10   : > { %229 = vst.msk [vmem:[#allocation2 + $0x10] sm:$0x3] %vm228_vm1, %v4453_v0  ;;  %v270_v1 = vld [vmem:[%s4516_s23 + $0x10] sm:$0xff]  ;;  %v268_v2 = vld [vmem:[%s4516_s23] sm:$0xff]  ;;  %v271_v3 = vld [vmem:[%s4516_s23 + $0x18] sm:$0xff]  ;;  %s4460_s30 = smov 28   ;;  %s7560_s15 = scalar_lea.vmem %s7830_s5, %s4372_s20 }
  0x11   : > { %233 = vst.msk [vmem:[#allocation2 + $0x1a8] sm:$0x3] %vm228_vm1, %v4453_v0  ;;  %v269_v4 = vld [vmem:[%s4516_s23 + $0x8] sm:$0xff]  ;;  %v272_v5 = vld [vmem:[%s4516_s23 + $0x20] sm:$0xff]  ;;  %v274_v7 = vld [vmem:[%s4516_s23 + $0x30] sm:$0xff]  ;;  %s4461_s6 = smov 32  }
  0x12   : > { %302 = vst.msk [vmem:[#allocation2 + $0x31] sm:$0xff] %vm225_vm0, %v270_v1  ;;  %v273_v8 = vld [vmem:[%s4516_s23 + $0x28] sm:$0xff]  ;;  %v275_v9 = vld [vmem:[%s4516_s23 + $0x38] sm:$0xff]  ;;  %v276_v11 = vld [vmem:[%s4516_s23 + $0x40] sm:$0xff] }
  0x13   : > { %300 = vst.msk [vmem:[#allocation2 + $0x19] sm:$0xff] %vm225_vm0, %v268_v2  ;;  %v277_v10 = vld [vmem:[%s4516_s23 + $0x48] sm:$0xff]  ;;  %v278_v13 = vld [vmem:[%s4516_s23 + $0x50] sm:$0xff]  ;;  %v280_v16 = vld [vmem:[%s4516_s23 + $0x60] sm:$0xff] }
  0x14   : > { %v364_v6 = vld [vmem:[#allocation2 + $0x1] sm:$0xff]  ;;  %303 = vst.msk [vmem:[#allocation2 + $0x39] sm:$0xff] %vm225_vm0, %v271_v3  ;;  %v279_v17 = vld [vmem:[%s4516_s23 + $0x58] sm:$0xff]  ;;  %v282_v20 = vld [vmem:[%s4516_s23 + $0x70] sm:$0xff] }
  0x15   : > { %653 = vrot.lane.b32.xlu0 %v364_v6, %s4454_s24  ;;  %301 = vst.msk [vmem:[#allocation2 + $0x21] sm:$0xff] %vm225_vm0, %v269_v4  ;;  %v281_v18 = vld [vmem:[%s4516_s23 + $0x68] sm:$0xff]  ;;  %v283_v19 = vld [vmem:[%s4516_s23 + $0x78] sm:$0xff]  ;;  %v284_v22 = vld [vmem:[%s4516_s23 + $0x80] sm:$0xff] }
  0x16   : > { %304 = vst.msk [vmem:[#allocation2 + $0x49] sm:$0xff] %vm225_vm0, %v272_v5  ;;  %v286_v25 = vld [vmem:[%s4516_s23 + $0x90] sm:$0xff]  ;;  %v285_v26 = vld [vmem:[%s4516_s23 + $0x88] sm:$0xff]  ;;  %v287_v27 = vld [vmem:[%s4516_s23 + $0x98] sm:$0xff] }
  0x17   : > { %306 = vst.msk [vmem:[#allocation2 + $0x61] sm:$0xff] %vm225_vm0, %v274_v7  ;;  %v365_v15 = vld [vmem:[#allocation2 + $0x9] sm:$0xff]  ;;  %v288_v32 = vld [vmem:[%s4516_s23 + $0xa0] sm:$0xff]  ;;  %v291_v38 = vld [vmem:[%s4516_s23 + $0xb8] sm:$0xff] }
  0x18   : > { %305 = vst.msk [vmem:[#allocation2 + $0x51] sm:$0xff] %vm225_vm0, %v273_v8  ;;  %v289_v31 = vld [vmem:[%s4516_s23 + $0xa8] sm:$0xff]  ;;  %v290_v33 = vld [vmem:[%s4516_s23 + $0xb0] sm:$0xff]  ;;  %v292_v37 = vld [vmem:[%s4516_s23 + $0xc0] sm:$0xff] }
  0x19   : > { %v4538_v12 = vld [vmem:[#allocation2 + $0x31] sm:$0xff]  ;;  %307 = vst.msk [vmem:[#allocation2 + $0x69] sm:$0xff] %vm225_vm0, %v275_v9  ;;  %v293_v39 = vld [vmem:[%s4516_s23 + $0xc8] sm:$0xff]  ;;  %v296_v45 = vld [vmem:[%s4516_s23 + $0xe0] sm:$0xff] }
  0x1a   : > { %661 = vrot.lane.b32.xlu2 %v4538_v12, %s4454_s24  ;;  %v4544_v14 = vld [vmem:[#allocation2 + $0x19] sm:$0xff]  ;;  %309 = vst.msk [vmem:[#allocation2 + $0x81] sm:$0xff] %vm225_vm0, %v277_v10  ;;  %v294_v44 = vld [vmem:[%s4516_s23 + $0xd0] sm:$0xff]  ;;  %v297_v49 = vld [vmem:[%s4516_s23 + $0xe8] sm:$0xff] }
  0x1b   : > { %657 = vrot.lane.b32.xlu1 %v4544_v14, %s4454_s24  ;;  %308 = vst.msk [vmem:[#allocation2 + $0x79] sm:$0xff] %vm225_vm0, %v276_v11  ;;  %v4559_v21 = vld [vmem:[#allocation2 + $0x39] sm:$0xff]  ;;  %v396_v62 = vld [vmem:[#allocation2 + $0x2] sm:$0xff]  ;;  %v397_v1 = vld [vmem:[#allocation2 + $0xa] sm:$0xff] }
  0x1c   : > { %310 = vst.msk [vmem:[#allocation2 + $0x91] sm:$0xff] %vm225_vm0, %v278_v13  ;;  %v4563_v23 = vld [vmem:[#allocation2 + $0x21] sm:$0xff]  ;;  %v295_v43 = vld [vmem:[%s4516_s23 + $0xd8] sm:$0xff] }
  0x1d   : > { %655 = vrot.lane.b32.xlu0 %v365_v15, %s4454_s24  ;;  %312 = vst.msk [vmem:[#allocation2 + $0xa9] sm:$0xff] %vm225_vm0, %v280_v16  ;;  %v4569_v24 = vld [vmem:[#allocation2 + $0x49] sm:$0xff]  ;;  %v4770_v3 = vld [vmem:[#allocation2 + $0x1a] sm:$0xff]  ;;  %v4774_v4 = vld [vmem:[#allocation2 + $0x32] sm:$0xff] }
  0x1e   : > { %311 = vst.msk [vmem:[#allocation2 + $0x99] sm:$0xff] %vm225_vm0, %v279_v17  ;;  %v4582_v28 = vld [vmem:[#allocation2 + $0x61] sm:$0xff] }
  0x1f   : > { %313 = vst.msk [vmem:[#allocation2 + $0xb1] sm:$0xff] %vm225_vm0, %v281_v18  ;;  %v4584_v29 = vld [vmem:[#allocation2 + $0x51] sm:$0xff] }
  0x20   : > { %315 = vst.msk [vmem:[#allocation2 + $0xc9] sm:$0xff] %vm225_vm0, %v283_v19  ;;  %v4588_v30 = vld [vmem:[#allocation2 + $0x69] sm:$0xff] }
  0x21   : > { %314 = vst.msk [vmem:[#allocation2 + $0xc1] sm:$0xff] %vm225_vm0, %v282_v20  ;;  %v4600_v34 = vld [vmem:[#allocation2 + $0x81] sm:$0xff] }
  0x22   : > { %663 = vrot.lane.b32.xlu2 %v4559_v21, %s4454_s24  ;;  %316 = vst.msk [vmem:[#allocation2 + $0xd9] sm:$0xff] %vm225_vm0, %v284_v22  ;;  %v4602_v35 = vld [vmem:[#allocation2 + $0x79] sm:$0xff]  ;;  %v4798_v10 = vld [vmem:[#allocation2 + $0x62] sm:$0xff] }
  0x23   : > { %659 = vrot.lane.b32.xlu1 %v4563_v23, %s4454_s24  ;;  %318 = vst.msk [vmem:[#allocation2 + $0xf1] sm:$0xff] %vm225_vm0, %v286_v25  ;;  %v4606_v36 = vld [vmem:[#allocation2 + $0x91] sm:$0xff]  ;;  %v4802_v11 = vld [vmem:[#allocation2 + $0x7a] sm:$0xff] }
  0x24   : > { %317 = vst.msk [vmem:[#allocation2 + $0xe1] sm:$0xff] %vm225_vm0, %v285_v26  ;;  %v4618_v40 = vld [vmem:[#allocation2 + $0xa9] sm:$0xff] }
  0x25   : > { %665 = vrot.lane.b32.xlu0 %v4569_v24, %s4454_s24  ;;  %319 = vst.msk [vmem:[#allocation2 + $0xf9] sm:$0xff] %vm225_vm0, %v287_v27  ;;  %v4620_v41 = vld [vmem:[#allocation2 + $0x99] sm:$0xff] }
  0x26   : > { %321 = vst.msk [vmem:[#allocation2 + $0x111] sm:$0xff] %vm225_vm0, %v289_v31  ;;  %v4624_v42 = vld [vmem:[#allocation2 + $0xb1] sm:$0xff] }
  0x27   : > { %320 = vst.msk [vmem:[#allocation2 + $0x109] sm:$0xff] %vm225_vm0, %v288_v32  ;;  %v4636_v46 = vld [vmem:[#allocation2 + $0xc9] sm:$0xff]  ;;  %v4812_v16 = vld [vmem:[#allocation2 + $0x92] sm:$0xff] }
  0x28   : > { %322 = vst.msk [vmem:[#allocation2 + $0x121] sm:$0xff] %vm225_vm0, %v290_v33  ;;  %v4638_v47 = vld [vmem:[#allocation2 + $0xc1] sm:$0xff]  ;;  %v4832_v26 = vld [vmem:[#allocation2 + $0xaa] sm:$0xff] }
  0x29   : > { %324 = vst.msk [vmem:[#allocation2 + $0x139] sm:$0xff] %vm225_vm0, %v292_v37  ;;  %v4642_v48 = vld [vmem:[#allocation2 + $0xd9] sm:$0xff]  ;;  %v4836_v27 = vld [vmem:[#allocation2 + $0xc2] sm:$0xff] }
  0x2a   : > { %669 = vrot.lane.b32.xlu2 %v4582_v28, %s4454_s24  ;;  %323 = vst.msk [vmem:[#allocation2 + $0x129] sm:$0xff] %vm225_vm0, %v291_v38  ;;  %v4650_v50 = vld [vmem:[#allocation2 + $0xf1] sm:$0xff] }
  0x2b   : > { %667 = vrot.lane.b32.xlu1 %v4584_v29, %s4454_s24  ;;  %325 = vst.msk [vmem:[#allocation2 + $0x141] sm:$0xff] %vm225_vm0, %v293_v39  ;;  %v4652_v51 = vld [vmem:[#allocation2 + $0xe1] sm:$0xff] }
  0x2c   : > { %327 = vst.msk [vmem:[#allocation2 + $0x159] sm:$0xff] %vm225_vm0, %v295_v43  ;;  %v4656_v52 = vld [vmem:[#allocation2 + $0xf9] sm:$0xff] }
  0x2d   : > { %671 = vrot.lane.b32.xlu0 %v4588_v30, %s4454_s24  ;;  %326 = vst.msk [vmem:[#allocation2 + $0x151] sm:$0xff] %vm225_vm0, %v294_v44  ;;  %v4670_v53 = vld [vmem:[#allocation2 + $0x111] sm:$0xff]  ;;  %v4848_v37 = vld [vmem:[#allocation2 + $0xda] sm:$0xff] }
  0x2e   : > { %328 = vst.msk [vmem:[#allocation2 + $0x169] sm:$0xff] %vm225_vm0, %v296_v45  ;;  %v4674_v54 = vld [vmem:[#allocation2 + $0x109] sm:$0xff] }
  0x2f   : > { %329 = vst.msk [vmem:[#allocation2 + $0x171] sm:$0xff] %vm225_vm0, %v297_v49  ;;  %v4682_v55 = vld [vmem:[#allocation2 + $0x121] sm:$0xff] }
  0x30   : > { %252 = vst.msk [vmem:[#allocation2 + $0x29] sm:$0x1] %vm235_vm2, %v4453_v0  ;;  %v4698_v56 = vld [vmem:[#allocation2 + $0x139] sm:$0xff] }
  0x31   : > { %236 = vst.msk [vmem:[#allocation2 + $0x18] sm:$0x1] %vm235_vm2, %v4453_v0  ;;  %v4702_v57 = vld [vmem:[#allocation2 + $0x129] sm:$0xff] }
  0x32   : > { %675 = vrot.lane.b32.xlu2 %v4600_v34, %s4454_s24  ;;  %237 = vst.msk [vmem:[#allocation2 + $0x30] sm:$0x1] %vm235_vm2, %v4453_v0  ;;  %v4710_v58 = vld [vmem:[#allocation2 + $0x141] sm:$0xff] }
  0x33   : > { %673 = vrot.lane.b32.xlu1 %v4602_v35, %s4454_s24  ;;  %238 = vst.msk [vmem:[#allocation2 + $0x48] sm:$0x1] %vm235_vm2, %v4453_v0  ;;  %v4726_v59 = vld [vmem:[#allocation2 + $0x159] sm:$0xff] }
  0x34   : > { %239 = vst.msk [vmem:[#allocation2 + $0x60] sm:$0x1] %vm235_vm2, %v4453_v0  ;;  %v4730_v60 = vld [vmem:[#allocation2 + $0x151] sm:$0xff] }
  0x35   : > { %677 = vrot.lane.b32.xlu0 %v4606_v36, %s4454_s24  ;;  %240 = vst.msk [vmem:[#allocation2 + $0x78] sm:$0x1] %vm235_vm2, %v4453_v0  ;;  %v4738_v61 = vld [vmem:[#allocation2 + $0x169] sm:$0xff] }
  0x36   : > { %241 = vst.msk [vmem:[#allocation2 + $0x90] sm:$0x1] %vm235_vm2, %v4453_v0  ;;  %v4756_v63 = vld [vmem:[#allocation2 + $0x171] sm:$0xff] }
  0x37   : > { %242 = vst.msk [vmem:[#allocation2 + $0xa8] sm:$0x1] %vm235_vm2, %v4453_v0  ;;  %v4768_v2 = vld [vmem:[#allocation2 + $0x22] sm:$0xff] }
  0x38   : > { %243 = vst.msk [vmem:[#allocation2 + $0xc0] sm:$0x1] %vm235_vm2, %v4453_v0 }
  0x39   : > { %244 = vst.msk [vmem:[#allocation2 + $0xd8] sm:$0x1] %vm235_vm2, %v4453_v0 }
  0x3a   : > { %681 = vrot.lane.b32.xlu2 %v4618_v40, %s4454_s24  ;;  %245 = vst.msk [vmem:[#allocation2 + $0xf0] sm:$0x1] %vm235_vm2, %v4453_v0 }
  0x3b   : > { %679 = vrot.lane.b32.xlu1 %v4620_v41, %s4454_s24  ;;  %246 = vst.msk [vmem:[#allocation2 + $0x108] sm:$0x1] %vm235_vm2, %v4453_v0 }
  0x3c   : > { %247 = vst.msk [vmem:[#allocation2 + $0x120] sm:$0x1] %vm235_vm2, %v4453_v0 }
  0x3d   : > { %683 = vrot.lane.b32.xlu0 %v4624_v42, %s4454_s24  ;;  %248 = vst.msk [vmem:[#allocation2 + $0x138] sm:$0x1] %vm235_vm2, %v4453_v0 }
  0x3e   : > { %249 = vst.msk [vmem:[#allocation2 + $0x150] sm:$0x1] %vm235_vm2, %v4453_v0 }
  0x3f   : > { %250 = vst.msk [vmem:[#allocation2 + $0x168] sm:$0x1] %vm235_vm2, %v4453_v0 }
  0x40   : > { %251 = vst.msk [vmem:[#allocation2 + $0x180] sm:$0x1] %vm235_vm2, %v4453_v0 }
  0x41   : > { %253 = vst.msk [vmem:[#allocation2 + $0x41] sm:$0x1] %vm235_vm2, %v4453_v0 }
  0x42   : > { %687 = vrot.lane.b32.xlu2 %v4636_v46, %s4454_s24  ;;  %254 = vst.msk [vmem:[#allocation2 + $0x59] sm:$0x1] %vm235_vm2, %v4453_v0 }
  0x43   : > { %685 = vrot.lane.b32.xlu1 %v4638_v47, %s4454_s24  ;;  %255 = vst.msk [vmem:[#allocation2 + $0x71] sm:$0x1] %vm235_vm2, %v4453_v0 }
  0x44   : > { %256 = vst.msk [vmem:[#allocation2 + $0x89] sm:$0x1] %vm235_vm2, %v4453_v0 }
  0x45   : > { %689 = vrot.lane.b32.xlu0 %v4642_v48, %s4454_s24  ;;  %257 = vst.msk [vmem:[#allocation2 + $0xa1] sm:$0x1] %vm235_vm2, %v4453_v0 }
  0x46   : > { %258 = vst.msk [vmem:[#allocation2 + $0xb9] sm:$0x1] %vm235_vm2, %v4453_v0 }
  0x47   : > { %259 = vst.msk [vmem:[#allocation2 + $0xd1] sm:$0x1] %vm235_vm2, %v4453_v0 }
  0x48   : > { %260 = vst.msk [vmem:[#allocation2 + $0xe9] sm:$0x1] %vm235_vm2, %v4453_v0  ;;  %v4784_v6 = vld [vmem:[#allocation2 + $0x3a] sm:$0xff] }
  0x49   : > { %261 = vst.msk [vmem:[#allocation2 + $0x101] sm:$0x1] %vm235_vm2, %v4453_v0  ;;  %v4788_v7 = vld [vmem:[#allocation2 + $0x52] sm:$0xff] }
  0x4a   : > { %693 = vrot.lane.b32.xlu2 %v4650_v50, %s4454_s24  ;;  %262 = vst.msk [vmem:[#allocation2 + $0x119] sm:$0x1] %vm235_vm2, %v4453_v0  ;;  %v4796_v9 = vld [vmem:[#allocation2 + $0x6a] sm:$0xff] }
  0x4b   : > { %691 = vrot.lane.b32.xlu1 %v4652_v51, %s4454_s24  ;;  %263 = vst.msk [vmem:[#allocation2 + $0x131] sm:$0x1] %vm235_vm2, %v4453_v0  ;;  %v4814_v17 = vld [vmem:[#allocation2 + $0x82] sm:$0xff] }
  0x4c   : > { %264 = vst.msk [vmem:[#allocation2 + $0x149] sm:$0x1] %vm235_vm2, %v4453_v0  ;;  %v4818_v18 = vld [vmem:[#allocation2 + $0x9a] sm:$0xff] }
  0x4d   : > { %695 = vrot.lane.b32.xlu0 %v4656_v52, %s4454_s24  ;;  %265 = vst.msk [vmem:[#allocation2 + $0x161] sm:$0x1] %vm235_vm2, %v4453_v0  ;;  %v4830_v25 = vld [vmem:[#allocation2 + $0xb2] sm:$0xff] }
  0x4e   : > { %266 = vst.msk [vmem:[#allocation2 + $0x179] sm:$0x1] %vm235_vm2, %v4453_v0  ;;  %v4850_v38 = vld [vmem:[#allocation2 + $0xca] sm:$0xff] }
  0x4f   : > { %267 = vst.msk [vmem:[#allocation2 + $0x191] sm:$0x1] %vm235_vm2, %v4453_v0  ;;  %v4782_v0 = vld [vmem:[#allocation2 + $0x4a] sm:$0xff]  ;;  %v4854_v39 = vld [vmem:[#allocation2 + $0xe2] sm:$0xff] }
  0x50   : > { %v4866_v49 = vld [vmem:[#allocation2 + $0xfa] sm:$0xff] }
  0x52   : > { %699 = vrot.lane.b32.xlu2 %v4670_v53, %s4454_s24 }
  0x53   : > { %697 = vrot.lane.b32.xlu1 %v4674_v54, %s4454_s24 }
  0x55   : > { %701 = vrot.lane.b32.xlu0 %v4682_v55, %s4454_s24 }
  0x5a   : > { %705 = vrot.lane.b32.xlu2 %v4698_v56, %s4454_s24 }
  0x5b   : > { %703 = vrot.lane.b32.xlu1 %v4702_v57, %s4454_s24 }
  0x5d   : > { %707 = vrot.lane.b32.xlu0 %v4710_v58, %s4454_s24 }
  0x62   : > { %711 = vrot.lane.b32.xlu2 %v4726_v59, %s4454_s24 }
  0x63   : > { %709 = vrot.lane.b32.xlu1 %v4730_v60, %s4454_s24 }
  0x65   : > { %713 = vrot.lane.b32.xlu0 %v4738_v61, %s4454_s24 }
  0x6a   : > { %781 = vrot.lane.b32.xlu2 %v396_v62, %s4455_s25  ;;  %v4868_v62 = vld [vmem:[#allocation2 + $0xf2] sm:$0xff] }
  0x6b   : > { %715 = vrot.lane.b32.xlu1 %v4756_v63, %s4454_s24 }
  0x6d   : > { %783 = vrot.lane.b32.xlu0 %v397_v1, %s4455_s25  ;;  %v4872_v1 = vld [vmem:[#allocation2 + $0x10a] sm:$0xff] }
  0x72   : > { %787 = vrot.lane.b32.xlu2 %v4768_v2, %s4455_s25 }
  0x73   : > { %785 = vrot.lane.b32.xlu1 %v4770_v3, %s4455_s25 }
  0x74   : > { %v4778_v5 = vpop.permute.xlu2 %661 }
  0x75   : > { %7881 = vst [vmem:[#allocation3_spill] sm:$0xff] %v4778_v5  ;;  %789 = vrot.lane.b32.xlu0 %v4774_v4, %s4455_s25  ;;  %v4908_v5 = vld [vmem:[#allocation2 + $0x152] sm:$0xff] }
  0x76   : > { %7901 = vst [vmem:[#allocation23_spill] sm:$0xff] %v4908_v5 }
  0x7a   : > { %793 = vrot.lane.b32.xlu2 %v4782_v0, %s4455_s25 }
  0x7b   : > { %791 = vrot.lane.b32.xlu1 %v4784_v6, %s4455_s25 }
  0x7c   : > { %v4792_v8 = vpop.permute.xlu2 %663 }
  0x7d   : > { %7882 = vst [vmem:[#allocation4_spill] sm:$0xff] %v4792_v8  ;;  %795 = vrot.lane.b32.xlu0 %v4788_v7, %s4455_s25  ;;  %v4904_v8 = vld [vmem:[#allocation2 + $0x13a] sm:$0xff] }
  0x82   : > { %799 = vrot.lane.b32.xlu2 %v4796_v9, %s4455_s25 }
  0x83   : > { %797 = vrot.lane.b32.xlu1 %v4798_v10, %s4455_s25 }
  0x84   : > { %v4806_v13 = vpop.permute.xlu2 %669 }
  0x85   : > { %7883 = vst [vmem:[#allocation5_spill] sm:$0xff] %v4806_v13  ;;  %801 = vrot.lane.b32.xlu0 %v4802_v11, %s4455_s25  ;;  %v4884_v13 = vld [vmem:[#allocation2 + $0x122] sm:$0xff] }
  0x87   : > { %v4810_v15 = vpop.permute.xlu0 %653 }
  0x88   : > { %7884 = vst [vmem:[#allocation6_spill] sm:$0xff] %v4810_v15  ;;  %v335_v15 = vld [vmem:[#allocation2 + $0x20] sm:$0xff] }
  0x8a   : > { %805 = vrot.lane.b32.xlu2 %v4812_v16, %s4455_s25 }
  0x8b   : > { %803 = vrot.lane.b32.xlu1 %v4814_v17, %s4455_s25 }
  0x8c   : > { %v4822_v19 = vpop.permute.xlu2 %675 }
  0x8d   : > { %7885 = vst [vmem:[#allocation7_spill] sm:$0xff] %v4822_v19  ;;  %807 = vrot.lane.b32.xlu0 %v4818_v18, %s4455_s25  ;;  %v4826_v20 = vpop.permute.xlu1 %657 }
  0x8e   : > { %7886 = vst [vmem:[#allocation8_spill] sm:$0xff] %v4826_v20  ;;  %v4922_v20 = vld [vmem:[#allocation2 + $0x15a] sm:$0xff] }
  0x8f   : > { %v4828_v22 = vpop.permute.xlu0 %655  ;;  %7906 = vst [vmem:[#allocation28_spill] sm:$0xff] %v4922_v20 }
  0x90   : > { %7887 = vst [vmem:[#allocation9_spill] sm:$0xff] %v4828_v22  ;;  %v4926_v22 = vld [vmem:[#allocation2 + $0x172] sm:$0xff] }
  0x91   : > { %7907 = vst [vmem:[#allocation29_spill] sm:$0xff] %v4926_v22 }
  0x92   : > { %811 = vrot.lane.b32.xlu2 %v4830_v25, %s4455_s25 }
  0x93   : > { %809 = vrot.lane.b32.xlu1 %v4832_v26, %s4455_s25 }
  0x94   : > { %v4840_v31 = vpop.permute.xlu2 %681 }
  0x95   : > { %7888 = vst [vmem:[#allocation10_spill] sm:$0xff] %v4840_v31  ;;  %813 = vrot.lane.b32.xlu0 %v4836_v27, %s4455_s25  ;;  %v4844_v32 = vpop.permute.xlu1 %659 }
  0x96   : > { %7889 = vst [vmem:[#allocation11_spill] sm:$0xff] %v4844_v32  ;;  %v4920_v32 = vld [vmem:[#allocation2 + $0x16a] sm:$0xff] }
  0x97   : > { %v4846_v33 = vpop.permute.xlu0 %665  ;;  %7905 = vst [vmem:[#allocation27_spill] sm:$0xff] %v4920_v32 }
  0x98   : > { %7890 = vst [vmem:[#allocation12_spill] sm:$0xff] %v4846_v33  ;;  %v4902_v33 = vld [vmem:[#allocation2 + $0x142] sm:$0xff] }
  0x99   : > { %7900 = vst [vmem:[#allocation22_spill] sm:$0xff] %v4902_v33 }
  0x9a   : > { %817 = vrot.lane.b32.xlu2 %v4848_v37, %s4455_s25 }
  0x9b   : > { %815 = vrot.lane.b32.xlu1 %v4850_v38, %s4455_s25 }
  0x9c   : > { %v4858_v43 = vpop.permute.xlu2 %687 }
  0x9d   : > { %7891 = vst [vmem:[#allocation13_spill] sm:$0xff] %v4858_v43  ;;  %819 = vrot.lane.b32.xlu0 %v4854_v39, %s4455_s25  ;;  %v4862_v44 = vpop.permute.xlu1 %667  ;;  %v4890_v43 = vld [vmem:[#allocation2 + $0x12a] sm:$0xff] }
  0x9e   : > { %7892 = vst [vmem:[#allocation14_spill] sm:$0xff] %v4862_v44  ;;  %v4886_v44 = vld [vmem:[#allocation2 + $0x112] sm:$0xff] }
  0x9f   : > { %v4864_v45 = vpop.permute.xlu0 %671 }
  0xa0   : > { %7893 = vst [vmem:[#allocation15_spill] sm:$0xff] %v4864_v45 }
  0xa2   : > { %823 = vrot.lane.b32.xlu2 %v4866_v49, %s4455_s25 }
  0xa3   : > { %821 = vrot.lane.b32.xlu1 %v4868_v62, %s4455_s25 }
  0xa4   : > { %v4876_v31 = vpop.permute.xlu2 %693 }
  0xa5   : > { %7894 = vst [vmem:[#allocation16_spill] sm:$0xff] %v4876_v31  ;;  %825 = vrot.lane.b32.xlu0 %v4872_v1, %s4455_s25  ;;  %v4880_v19 = vpop.permute.xlu1 %673 }
  0xa6   : > { %7895 = vst [vmem:[#allocation17_spill] sm:$0xff] %v4880_v19 }
  0xa7   : > { %v4882_v45 = vpop.permute.xlu0 %677 }
  0xa8   : > { %7896 = vst [vmem:[#allocation18_spill] sm:$0xff] %v4882_v45 }
  0xaa   : > { %829 = vrot.lane.b32.xlu2 %v4884_v13, %s4455_s25 }
  0xab   : > { %827 = vrot.lane.b32.xlu1 %v4886_v44, %s4455_s25 }
  0xac   : > { %v4894_v31 = vpop.permute.xlu2 %699 }
  0xad   : > { %7897 = vst [vmem:[#allocation19_spill] sm:$0xff] %v4894_v31  ;;  %831 = vrot.lane.b32.xlu0 %v4890_v43, %s4455_s25  ;;  %v4898_v19 = vpop.permute.xlu1 %679 }
  0xae   : > { %7898 = vst [vmem:[#allocation20_spill] sm:$0xff] %v4898_v19 }
  0xaf   : > { %v4900_v45 = vpop.permute.xlu0 %683 }
  0xb0   : > { %7899 = vst [vmem:[#allocation21_spill] sm:$0xff] %v4900_v45 }
  0xb2   : > { %835 = vrot.lane.b32.xlu2 %v4902_v33, %s4455_s25 }
  0xb3   : > { %833 = vrot.lane.b32.xlu1 %v4904_v8, %s4455_s25 }
  0xb4   : > { %v4912_v31 = vpop.permute.xlu2 %705 }
  0xb5   : > { %7902 = vst [vmem:[#allocation24_spill] sm:$0xff] %v4912_v31  ;;  %837 = vrot.lane.b32.xlu0 %v4908_v5, %s4455_s25  ;;  %v4916_v19 = vpop.permute.xlu1 %685  ;;  %v334_v5 = vld [vmem:[#allocation2 + $0x18] sm:$0xff] }
  0xb6   : > { %7903 = vst [vmem:[#allocation25_spill] sm:$0xff] %v4916_v19 }
  0xb7   : > { %v4918_v45 = vpop.permute.xlu0 %689 }
  0xb8   : > { %7904 = vst [vmem:[#allocation26_spill] sm:$0xff] %v4918_v45 }
  0xba   : > { %841 = vrot.lane.b32.xlu2 %v4920_v32, %s4455_s25  ;;  %v336_v32 = vld [vmem:[#allocation2 + $0x30] sm:$0xff] }
  0xbb   : > { %839 = vrot.lane.b32.xlu1 %v4922_v20, %s4455_s25 }
  0xbc   : > { %v4930_v31 = vpop.permute.xlu2 %711 }
  0xbd   : > { %7908 = vst [vmem:[#allocation30_spill] sm:$0xff] %v4930_v31  ;;  %843 = vrot.lane.b32.xlu0 %v4926_v22, %s4455_s25  ;;  %v4934_v19 = vpop.permute.xlu1 %691  ;;  %v4947_v22 = vld [vmem:[#allocation2 + $0x48] sm:$0xff] }
  0xbe   : > { %7909 = vst [vmem:[#allocation31_spill] sm:$0xff] %v4934_v19  ;;  %v337_v19 = vld [vmem:[#allocation2 + $0x38] sm:$0xff] }
  0xbf   : > { %v4936_v45 = vpop.permute.xlu0 %695  ;;  %7914 = vst [vmem:[#allocation36_spill] sm:$0xff] %v4947_v22 }
  0xc0   : > { %7910 = vst [vmem:[#allocation32_spill] sm:$0xff] %v4936_v45  ;;  %v340_v45 = vld [vmem:[#allocation2 + $0x60] sm:$0xff] }
  0xc2   : > { %911 = vrot.lane.b32.xlu2 %v335_v15, %s4456_s26  ;;  %v4952_v15 = vld [vmem:[#allocation2 + $0x50] sm:$0xff] }
  0xc3   : > { %909 = vrot.lane.b32.xlu1 %v334_v5, %s4456_s26  ;;  %7915 = vst [vmem:[#allocation37_spill] sm:$0xff] %v4952_v15 }
  0xc4   : > { %v4940_v33 = vpop.permute.xlu2 %781 }
  0xc5   : > { %7911 = vst [vmem:[#allocation33_spill] sm:$0xff] %v4940_v33  ;;  %913 = vrot.lane.b32.xlu0 %v336_v32, %s4456_s26  ;;  %v4943_v31 = vpop.permute.xlu1 %697 }
  0xc6   : > { %7912 = vst [vmem:[#allocation34_spill] sm:$0xff] %v4943_v31 }
  0xc7   : > { %v4945_v20 = vpop.permute.xlu0 %701 }
  0xc8   : > { %7913 = vst [vmem:[#allocation35_spill] sm:$0xff] %v4945_v20  ;;  %v4962_v20 = vld [vmem:[#allocation2 + $0x68] sm:$0xff] }
  0xc9   : > { %7919 = vst [vmem:[#allocation41_spill] sm:$0xff] %v4962_v20 }
  0xca   : > { %917 = vrot.lane.b32.xlu2 %v4947_v22, %s4456_s26  ;;  %v299_v22 = vld [vmem:[%s4516_s23 + $0xf8] sm:$0xff] }
  0xcb   : > { %915 = vrot.lane.b32.xlu1 %v337_v19, %s4456_s26  ;;  %v4967_v19 = vld [vmem:[#allocation2 + $0x78] sm:$0xff]  ;;  %331 = vst.msk [vmem:[#allocation2 + $0x189] sm:$0xff] %vm225_vm0, %v299_v22 }
  0xcc   : > { %v4954_v5 = vpop.permute.xlu2 %787  ;;  %7920 = vst [vmem:[#allocation42_spill] sm:$0xff] %v4967_v19 }
  0xcd   : > { %7916 = vst [vmem:[#allocation38_spill] sm:$0xff] %v4954_v5  ;;  %919 = vrot.lane.b32.xlu0 %v4952_v15, %s4456_s26  ;;  %v4958_v32 = vpop.permute.xlu1 %703  ;;  %v343_v15 = vld [vmem:[#allocation2 + $0x80] sm:$0xff] }
  0xce   : > { %7917 = vst [vmem:[#allocation39_spill] sm:$0xff] %v4958_v32 }
  0xcf   : > { %v4960_v31 = vpop.permute.xlu0 %707 }
  0xd0   : > { %7918 = vst [vmem:[#allocation40_spill] sm:$0xff] %v4960_v31  ;;  %v4977_v31 = vld [vmem:[#allocation2 + $0x90] sm:$0xff] }
  0xd1   : > { %7924 = vst [vmem:[#allocation46_spill] sm:$0xff] %v4977_v31 }
  0xd2   : > { %923 = vrot.lane.b32.xlu2 %v4962_v20, %s4456_s26 }
  0xd3   : > { %921 = vrot.lane.b32.xlu1 %v340_v45, %s4456_s26  ;;  %v4982_v45 = vld [vmem:[#allocation2 + $0x98] sm:$0xff] }
  0xd4   : > { %v4969_v33 = vpop.permute.xlu2 %793  ;;  %7925 = vst [vmem:[#allocation47_spill] sm:$0xff] %v4982_v45 }
  0xd5   : > { %7921 = vst [vmem:[#allocation43_spill] sm:$0xff] %v4969_v33  ;;  %925 = vrot.lane.b32.xlu0 %v4967_v19, %s4456_s26  ;;  %v4973_v5 = vpop.permute.xlu1 %709  ;;  %v4992_v33 = vld [vmem:[#allocation2 + $0xb0] sm:$0xff]  ;;  %v346_v19 = vld [vmem:[#allocation2 + $0xa8] sm:$0xff] }
  0xd6   : > { %7922 = vst [vmem:[#allocation44_spill] sm:$0xff] %v4973_v5 }
  0xd7   : > { %v4975_v32 = vpop.permute.xlu0 %713  ;;  %7929 = vst [vmem:[#allocation51_spill] sm:$0xff] %v4992_v33 }
  0xd8   : > { %7923 = vst [vmem:[#allocation45_spill] sm:$0xff] %v4975_v32 }
  0xda   : > { %929 = vrot.lane.b32.xlu2 %v4977_v31, %s4456_s26  ;;  %v349_v31 = vld [vmem:[#allocation2 + $0xc8] sm:$0xff] }
  0xdb   : > { %927 = vrot.lane.b32.xlu1 %v343_v15, %s4456_s26  ;;  %v4997_v15 = vld [vmem:[#allocation2 + $0xc0] sm:$0xff] }
  0xdc   : > { %v4984_v20 = vpop.permute.xlu2 %799  ;;  %7930 = vst [vmem:[#allocation52_spill] sm:$0xff] %v4997_v15 }
  0xdd   : > { %7926 = vst [vmem:[#allocation48_spill] sm:$0xff] %v4984_v20  ;;  %931 = vrot.lane.b32.xlu0 %v4982_v45, %s4456_s26  ;;  %v4988_v5 = vpop.permute.xlu1 %715 }
  0xde   : > { %7927 = vst [vmem:[#allocation49_spill] sm:$0xff] %v4988_v5 }
  0xdf   : > { %v4990_v32 = vpop.permute.xlu0 %783 }
  0xe0   : > { %7928 = vst [vmem:[#allocation50_spill] sm:$0xff] %v4990_v32  ;;  %v5007_v32 = vld [vmem:[#allocation2 + $0xd8] sm:$0xff] }
  0xe1   : > { %7934 = vst [vmem:[#allocation56_spill] sm:$0xff] %v5007_v32 }
  0xe2   : > { %935 = vrot.lane.b32.xlu2 %v4992_v33, %s4456_s26  ;;  %v298_v33 = vld [vmem:[%s4516_s23 + $0xf0] sm:$0xff] }
  0xe3   : > { %933 = vrot.lane.b32.xlu1 %v346_v19, %s4456_s26  ;;  %330 = vst.msk [vmem:[#allocation2 + $0x181] sm:$0xff] %vm225_vm0, %v298_v33  ;;  %v5015_v19 = vld [vmem:[#allocation2 + $0xe0] sm:$0xff] }
  0xe4   : > { %v4999_v20 = vpop.permute.xlu2 %805 }
  0xe5   : > { %7931 = vst [vmem:[#allocation53_spill] sm:$0xff] %v4999_v20  ;;  %937 = vrot.lane.b32.xlu0 %v4997_v15, %s4456_s26  ;;  %v5003_v45 = vpop.permute.xlu1 %785  ;;  %v352_v15 = vld [vmem:[#allocation2 + $0xf0] sm:$0xff] }
  0xe6   : > { %7932 = vst [vmem:[#allocation54_spill] sm:$0xff] %v5003_v45 }
  0xe7   : > { %v5005_v5 = vpop.permute.xlu0 %789 }
  0xe8   : > { %7933 = vst [vmem:[#allocation55_spill] sm:$0xff] %v5005_v5 }
  0xea   : > { %941 = vrot.lane.b32.xlu2 %v5007_v32, %s4456_s26  ;;  %v5026_v32 = vld [vmem:[#allocation2 + $0xf8] sm:$0xff] }
  0xeb   : > { %939 = vrot.lane.b32.xlu1 %v349_v31, %s4456_s26  ;;  %7938 = vst [vmem:[#allocation60_spill] sm:$0xff] %v5026_v32  ;;  %v5031_v31 = vld [vmem:[#allocation2 + $0x108] sm:$0xff] }
  0xec   : > { %v5017_v20 = vpop.permute.xlu2 %811  ;;  %7939 = vst [vmem:[#allocation61_spill] sm:$0xff] %v5031_v31 }
  0xed   : > { %7935 = vst [vmem:[#allocation57_spill] sm:$0xff] %v5017_v20  ;;  %943 = vrot.lane.b32.xlu0 %v5015_v19, %s4456_s26  ;;  %v5022_v5 = vpop.permute.xlu1 %791 }
  0xee   : > { %7936 = vst [vmem:[#allocation58_spill] sm:$0xff] %v5022_v5  ;;  %v355_v5 = vld [vmem:[#allocation2 + $0x110] sm:$0xff] }
  0xef   : > { %v5024_v45 = vpop.permute.xlu0 %795 }
  0xf0   : > { %7937 = vst [vmem:[#allocation59_spill] sm:$0xff] %v5024_v45  ;;  %v5041_v45 = vld [vmem:[#allocation2 + $0x120] sm:$0xff] }
  0xf1   : > { %7943 = vst [vmem:[#allocation65_spill] sm:$0xff] %v5041_v45 }
  0xf2   : > { %947 = vrot.lane.b32.xlu2 %v5026_v32, %s4456_s26 }
  0xf3   : > { %945 = vrot.lane.b32.xlu1 %v352_v15, %s4456_s26  ;;  %v5046_v15 = vld [vmem:[#allocation2 + $0x128] sm:$0xff] }
  0xf4   : > { %v5033_v33 = vpop.permute.xlu2 %817  ;;  %7944 = vst [vmem:[#allocation66_spill] sm:$0xff] %v5046_v15 }
  0xf5   : > { %7940 = vst [vmem:[#allocation62_spill] sm:$0xff] %v5033_v33  ;;  %949 = vrot.lane.b32.xlu0 %v5031_v31, %s4456_s26  ;;  %v5037_v22 = vpop.permute.xlu1 %797  ;;  %v5058_v31 = vld [vmem:[#allocation2 + $0x138] sm:$0xff] }
  0xf6   : > { %7941 = vst [vmem:[#allocation63_spill] sm:$0xff] %v5037_v22 }
  0xf7   : > { %v5039_v20 = vpop.permute.xlu0 %801  ;;  %7949 = vst [vmem:[#allocation71_spill] sm:$0xff] %v5058_v31 }
  0xf8   : > { %7942 = vst [vmem:[#allocation64_spill] sm:$0xff] %v5039_v20  ;;  %v5056_v20 = vld [vmem:[#allocation2 + $0x140] sm:$0xff] }
  0xf9   : > { %7948 = vst [vmem:[#allocation70_spill] sm:$0xff] %v5056_v20 }
  0xfa   : > { %953 = vrot.lane.b32.xlu2 %v5041_v45, %s4456_s26  ;;  %v5076_v45 = vld [vmem:[#allocation2 + $0x158] sm:$0xff] }
  0xfb   : > { %951 = vrot.lane.b32.xlu1 %v355_v5, %s4456_s26  ;;  %v5064_v5 = vld [vmem:[#allocation2 + $0x150] sm:$0xff] }
  0xfc   : > { %v5048_v32 = vpop.permute.xlu2 %823  ;;  %7950 = vst [vmem:[#allocation72_spill] sm:$0xff] %v5064_v5 }
  0xfd   : > { %7945 = vst [vmem:[#allocation67_spill] sm:$0xff] %v5048_v32  ;;  %955 = vrot.lane.b32.xlu0 %v5046_v15, %s4456_s26  ;;  %v5052_v33 = vpop.permute.xlu1 %803  ;;  %v5074_v15 = vld [vmem:[#allocation2 + $0x168] sm:$0xff] }
  0xfe   : > { %7946 = vst [vmem:[#allocation68_spill] sm:$0xff] %v5052_v33 }
  0xff   : > { %v5054_v22 = vpop.permute.xlu0 %807  ;;  %7954 = vst [vmem:[#allocation76_spill] sm:$0xff] %v5074_v15 }
 0x100   : > { %7947 = vst [vmem:[#allocation69_spill] sm:$0xff] %v5054_v22 }
 0x102   : > { %959 = vrot.lane.b32.xlu2 %v5056_v20, %s4456_s26  ;;  %v5082_v20 = vld [vmem:[#allocation2 + $0x170] sm:$0xff] }
 0x103   : > { %957 = vrot.lane.b32.xlu1 %v5058_v31, %s4456_s26  ;;  %v5094_v31 = vld [vmem:[#allocation2 + $0x180] sm:$0xff] }
 0x104   : > { %v5066_v32 = vpop.permute.xlu2 %829 }
 0x105   : > { %7951 = vst [vmem:[#allocation73_spill] sm:$0xff] %v5066_v32  ;;  %961 = vrot.lane.b32.xlu0 %v5064_v5, %s4456_s26  ;;  %v5070_v33 = vpop.permute.xlu1 %809  ;;  %v5092_v5 = vld [vmem:[#allocation2 + $0x188] sm:$0xff] }
 0x106   : > { %7952 = vst [vmem:[#allocation74_spill] sm:$0xff] %v5070_v33 }
 0x107   : > { %v5072_v22 = vpop.permute.xlu0 %813  ;;  %7958 = vst [vmem:[#allocation80_spill] sm:$0xff] %v5092_v5 }
 0x108   : > { %7953 = vst [vmem:[#allocation75_spill] sm:$0xff] %v5072_v22 }
 0x10a   : > { %965 = vrot.lane.b32.xlu2 %v5074_v15, %s4456_s26 }
 0x10b   : > { %963 = vrot.lane.b32.xlu1 %v5076_v45, %s4456_s26 }
 0x10c   : > { %v5084_v32 = vpop.permute.xlu2 %835 }
 0x10d   : > { %7955 = vst [vmem:[#allocation77_spill] sm:$0xff] %v5084_v32  ;;  %967 = vrot.lane.b32.xlu0 %v5082_v20, %s4456_s26  ;;  %v5088_v33 = vpop.permute.xlu1 %815 }
 0x10e   : > { %7956 = vst [vmem:[#allocation78_spill] sm:$0xff] %v5088_v33 }
 0x10f   : > { %v5090_v22 = vpop.permute.xlu0 %819 }
 0x110   : > { %7957 = vst [vmem:[#allocation79_spill] sm:$0xff] %v5090_v22 }
 0x112   : > { %971 = vrot.lane.b32.xlu2 %v5092_v5, %s4456_s26 }
 0x113   : > { %969 = vrot.lane.b32.xlu1 %v5094_v31, %s4456_s26 }
 0x114   : > { %v5100_v15 = vpop.permute.xlu2 %841 }
 0x115   : > { %7959 = vst [vmem:[#allocation81_spill] sm:$0xff] %v5100_v15  ;;  %1037 = vrot.lane.b32.xlu0 %v4544_v14, %s4457_s27  ;;  %v5104_v32 = vpop.permute.xlu1 %821 }
 0x116   : > { %7960 = vst [vmem:[#allocation82_spill] sm:$0xff] %v5104_v32  ;;  %v579_v32 = vld [vmem:[#allocation2 + $0x139] sm:$0xff] }
 0x117   : > { %v5106_v33 = vpop.permute.xlu0 %825 }
 0x118   : > { %7961 = vst [vmem:[#allocation83_spill] sm:$0xff] %v5106_v33 }
 0x11a   : > { %1041 = vrot.lane.b32.xlu2 %v4538_v12, %s4457_s27 }
 0x11b   : > { %1039 = vrot.lane.b32.xlu1 %v4563_v23, %s4457_s27 }
 0x11c   : > { %v5112_v22 = vpop.permute.xlu2 %911 }
 0x11d   : > { %1043 = vrot.lane.b32.xlu0 %v4559_v21, %s4457_s27  ;;  %v5116_v15 = vpop.permute.xlu1 %827 }
 0x11e   : > { %7962 = vst [vmem:[#allocation84_spill] sm:$0xff] %v5116_v15 }
 0x11f   : > { %v5118_v5 = vpop.permute.xlu0 %831 }
 0x120   : > { %7963 = vst [vmem:[#allocation85_spill] sm:$0xff] %v5118_v5  ;;  %v529_v5 = vld [vmem:[#allocation2 + $0x60] sm:$0xff] }
 0x122   : > { %1047 = vrot.lane.b32.xlu2 %v4584_v29, %s4457_s27 }
 0x123   : > { %1045 = vrot.lane.b32.xlu1 %v4569_v24, %s4457_s27 }
 0x124   : > { %v5124_v14 = vpop.permute.xlu2 %917 }
 0x125   : > { %1049 = vrot.lane.b32.xlu0 %v4582_v28, %s4457_s27  ;;  %v5128_v12 = vpop.permute.xlu1 %833 }
 0x126   : > { %7964 = vst [vmem:[#allocation86_spill] sm:$0xff] %v5128_v12  ;;  %v526_v12 = vld [vmem:[#allocation2 + $0x38] sm:$0xff] }
 0x127   : > { %v5130_v23 = vpop.permute.xlu0 %837 }
 0x128   : > { %7965 = vst [vmem:[#allocation87_spill] sm:$0xff] %v5130_v23 }
 0x12a   : > { %1053 = vrot.lane.b32.xlu2 %v4602_v35, %s4457_s27 }
 0x12b   : > { %1051 = vrot.lane.b32.xlu1 %v4588_v30, %s4457_s27 }
 0x12c   : > { %v5136_v21 = vpop.permute.xlu2 %923 }
 0x12d   : > { %1055 = vrot.lane.b32.xlu0 %v4600_v34, %s4457_s27  ;;  %v5140_v24 = vpop.permute.xlu1 %839 }
 0x12e   : > { %7966 = vst [vmem:[#allocation88_spill] sm:$0xff] %v5140_v24 }
 0x12f   : > { %v5142_v29 = vpop.permute.xlu0 %843 }
 0x130   : > { %7967 = vst [vmem:[#allocation89_spill] sm:$0xff] %v5142_v29  ;;  %v5230_v29 = vld [vmem:[#allocation2 + $0x189] sm:$0xff] }
 0x132   : > { %1059 = vrot.lane.b32.xlu2 %v4620_v41, %s4457_s27 }
 0x133   : > { %1057 = vrot.lane.b32.xlu1 %v4606_v36, %s4457_s27 }
 0x134   : > { %v5148_v28 = vpop.permute.xlu2 %929 }
 0x135   : > { %7968 = vst [vmem:[#allocation90_spill] sm:$0xff] %v5148_v28  ;;  %1061 = vrot.lane.b32.xlu0 %v4618_v40, %s4457_s27  ;;  %v5152_v30 = vpop.permute.xlu1 %909 }
 0x137   : > { %v5154_v35 = vpop.permute.xlu0 %913 }
 0x13a   : > { %1065 = vrot.lane.b32.xlu2 %v4638_v47, %s4457_s27 }
 0x13b   : > { %1063 = vrot.lane.b32.xlu1 %v4624_v42, %s4457_s27 }
 0x13c   : > { %v5160_v34 = vpop.permute.xlu2 %935 }
 0x13d   : > { %7969 = vst [vmem:[#allocation91_spill] sm:$0xff] %v5160_v34  ;;  %1067 = vrot.lane.b32.xlu0 %v4636_v46, %s4457_s27  ;;  %v5164_v36 = vpop.permute.xlu1 %915 }
 0x13f   : > { %v5166_v41 = vpop.permute.xlu0 %919 }
 0x142   : > { %1071 = vrot.lane.b32.xlu2 %v4652_v51, %s4457_s27 }
 0x143   : > { %1069 = vrot.lane.b32.xlu1 %v4642_v48, %s4457_s27 }
 0x144   : > { %v5172_v40 = vpop.permute.xlu2 %941 }
 0x145   : > { %1073 = vrot.lane.b32.xlu0 %v4650_v50, %s4457_s27  ;;  %v5176_v42 = vpop.permute.xlu1 %921 }
 0x147   : > { %v5178_v47 = vpop.permute.xlu0 %925 }
 0x14a   : > { %1077 = vrot.lane.b32.xlu2 %v4674_v54, %s4457_s27 }
 0x14b   : > { %1075 = vrot.lane.b32.xlu1 %v4656_v52, %s4457_s27 }
 0x14c   : > { %v5184_v46 = vpop.permute.xlu2 %947 }
 0x14d   : > { %7970 = vst [vmem:[#allocation92_spill] sm:$0xff] %v5184_v46  ;;  %1079 = vrot.lane.b32.xlu0 %v4670_v53, %s4457_s27  ;;  %v5188_v48 = vpop.permute.xlu1 %927 }
 0x14e   : > { %7971 = vst [vmem:[#allocation93_spill] sm:$0xff] %v5188_v48  ;;  %v603_v48 = vld [vmem:[#allocation2 + $0xda] sm:$0xff] }
 0x14f   : > { %v5190_v51 = vpop.permute.xlu0 %931 }
 0x150   : > { %7972 = vst [vmem:[#allocation94_spill] sm:$0xff] %v5190_v51  ;;  %v564_v51 = vld [vmem:[#allocation2 + $0x81] sm:$0xff] }
 0x152   : > { %1083 = vrot.lane.b32.xlu2 %v4702_v57, %s4457_s27 }
 0x153   : > { %1081 = vrot.lane.b32.xlu1 %v4682_v55, %s4457_s27 }
 0x154   : > { %v5196_v50 = vpop.permute.xlu2 %953 }
 0x155   : > { %7973 = vst [vmem:[#allocation95_spill] sm:$0xff] %v5196_v50  ;;  %1085 = vrot.lane.b32.xlu0 %v4698_v56, %s4457_s27  ;;  %v5200_v52 = vpop.permute.xlu1 %933  ;;  %v5218_v56 = vld [vmem:[#allocation2 + $0x181] sm:$0xff] }
 0x156   : > { %7974 = vst [vmem:[#allocation96_spill] sm:$0xff] %v5200_v52 }
 0x157   : > { %v5202_v54 = vpop.permute.xlu0 %937 }
 0x158   : > { %7975 = vst [vmem:[#allocation97_spill] sm:$0xff] %v5202_v54 }
 0x15a   : > { %1089 = vrot.lane.b32.xlu2 %v4730_v60, %s4457_s27 }
 0x15b   : > { %1087 = vrot.lane.b32.xlu1 %v4710_v58, %s4457_s27 }
 0x15c   : > { %v5208_v53 = vpop.permute.xlu2 %959 }
 0x15d   : > { %7976 = vst [vmem:[#allocation98_spill] sm:$0xff] %v5208_v53  ;;  %1091 = vrot.lane.b32.xlu0 %v4726_v59, %s4457_s27  ;;  %v5212_v55 = vpop.permute.xlu1 %939 }
 0x15e   : > { %7977 = vst [vmem:[#allocation99_spill] sm:$0xff] %v5212_v55 }
 0x15f   : > { %v5214_v57 = vpop.permute.xlu0 %943 }
 0x162   : > { %1095 = vrot.lane.b32.xlu2 %v4756_v63, %s4457_s27 }
 0x163   : > { %1093 = vrot.lane.b32.xlu1 %v4738_v61, %s4457_s27 }
 0x164   : > { %v5222_v60 = vpop.permute.xlu2 %965 }
 0x165   : > { %7978 = vst [vmem:[#allocation100_spill] sm:$0xff] %v5222_v60  ;;  %1097 = vrot.lane.b32.xlu0 %v5218_v56, %s4457_s27  ;;  %v5226_v58 = vpop.permute.xlu1 %945 }
 0x167   : > { %v5228_v59 = vpop.permute.xlu0 %949 }
 0x168   : > { %7979 = vst [vmem:[#allocation101_spill] sm:$0xff] %v5228_v59  ;;  %v578_v59 = vld [vmem:[#allocation2 + $0x129] sm:$0xff] }
 0x16a   : > { %1165 = vrot.lane.b32.xlu2 %v4770_v3, %s4458_s28 }
 0x16b   : > { %1099 = vrot.lane.b32.xlu1 %v5230_v29, %s4457_s27 }
 0x16c   : > { %v5236_v63 = vpop.permute.xlu2 %971 }
 0x16d   : > { %7980 = vst [vmem:[#allocation102_spill] sm:$0xff] %v5236_v63  ;;  %1167 = vrot.lane.b32.xlu0 %v4768_v2, %s4458_s28  ;;  %v5240_v61 = vpop.permute.xlu1 %951 }
 0x16e   : > { %7981 = vst [vmem:[#allocation103_spill] sm:$0xff] %v5240_v61 }
 0x16f   : > { %v5242_v24 = vpop.permute.xlu0 %955 }
 0x170   : > { %7982 = vst [vmem:[#allocation104_spill] sm:$0xff] %v5242_v24 }
 0x172   : > { %1171 = vrot.lane.b32.xlu2 %v4784_v6, %s4458_s28 }
 0x173   : > { %1169 = vrot.lane.b32.xlu1 %v4774_v4, %s4458_s28 }
 0x174   : > { %v5248_v60 = vpop.permute.xlu2 %1041 }
 0x175   : > { %1173 = vrot.lane.b32.xlu0 %v4782_v0, %s4458_s28  ;;  %v5252_v3 = vpop.permute.xlu1 %957 }
 0x176   : > { %7983 = vst [vmem:[#allocation105_spill] sm:$0xff] %v5252_v3 }
 0x177   : > { %v5254_v63 = vpop.permute.xlu0 %961 }
 0x178   : > { %7984 = vst [vmem:[#allocation106_spill] sm:$0xff] %v5254_v63  ;;  %v5356_v63 = vld [vmem:[#allocation2 + $0x18a] sm:$0xff] }
 0x17a   : > { %1177 = vrot.lane.b32.xlu2 %v4798_v10, %s4458_s28 }
 0x17b   : > { %1175 = vrot.lane.b32.xlu1 %v4788_v7, %s4458_s28 }
 0x17c   : > { %v5260_v2 = vpop.permute.xlu2 %1047 }
 0x17d   : > { %1179 = vrot.lane.b32.xlu0 %v4796_v9, %s4458_s28  ;;  %v5264_v4 = vpop.permute.xlu1 %963 }
 0x17e   : > { %7985 = vst [vmem:[#allocation107_spill] sm:$0xff] %v5264_v4 }
 0x17f   : > { %v5266_v6 = vpop.permute.xlu0 %967 }
 0x180   : > { %7986 = vst [vmem:[#allocation108_spill] sm:$0xff] %v5266_v6  ;;  %v7999_v6 = vld [vmem:[#allocation23_spill] sm:$0xff] }
 0x182   : > { %1183 = vrot.lane.b32.xlu2 %v4814_v17, %s4458_s28 }
 0x183   : > { %1181 = vrot.lane.b32.xlu1 %v4802_v11, %s4458_s28 }
 0x184   : > { %v5272_v0 = vpop.permute.xlu2 %1053 }
 0x185   : > { %1185 = vrot.lane.b32.xlu0 %v4812_v16, %s4458_s28  ;;  %v5276_v7 = vpop.permute.xlu1 %969 }
 0x186   : > { %7987 = vst [vmem:[#allocation109_spill] sm:$0xff] %v5276_v7 }
 0x187   : > { %v5278_v10 = vpop.permute.xlu0 %1037 }
 0x18a   : > { %1189 = vrot.lane.b32.xlu2 %v4832_v26, %s4458_s28 }
 0x18b   : > { %1187 = vrot.lane.b32.xlu1 %v4818_v18, %s4458_s28 }
 0x18c   : > { %v5284_v9 = vpop.permute.xlu2 %1059 }
 0x18d   : > { %7988 = vst [vmem:[#allocation110_spill] sm:$0xff] %v5284_v9  ;;  %1191 = vrot.lane.b32.xlu0 %v4830_v25, %s4458_s28  ;;  %v5288_v11 = vpop.permute.xlu1 %1039  ;;  %v561_v9 = vld [vmem:[#allocation2 + $0x61] sm:$0xff] }
 0x18f   : > { %v5290_v17 = vpop.permute.xlu0 %1043 }
 0x192   : > { %1195 = vrot.lane.b32.xlu2 %v4850_v38, %s4458_s28 }
 0x193   : > { %1193 = vrot.lane.b32.xlu1 %v4836_v27, %s4458_s28 }
 0x194   : > { %v5296_v16 = vpop.permute.xlu2 %1065 }
 0x195   : > { %7989 = vst [vmem:[#allocation111_spill] sm:$0xff] %v5296_v16  ;;  %1197 = vrot.lane.b32.xlu0 %v4848_v37, %s4458_s28  ;;  %v5300_v18 = vpop.permute.xlu1 %1045  ;;  %v8010_v16 = vld [vmem:[#allocation37_spill] sm:$0xff] }
 0x197   : > { %v5302_v26 = vpop.permute.xlu0 %1049 }
 0x19a   : > { %1201 = vrot.lane.b32.xlu2 %v4868_v62, %s4458_s28 }
 0x19b   : > { %1199 = vrot.lane.b32.xlu1 %v4854_v39, %s4458_s28 }
 0x19c   : > { %v5308_v25 = vpop.permute.xlu2 %1071 }
 0x19d   : > { %1203 = vrot.lane.b32.xlu0 %v4866_v49, %s4458_s28  ;;  %v5312_v27 = vpop.permute.xlu1 %1051 }
 0x19f   : > { %v5314_v38 = vpop.permute.xlu0 %1055 }
 0x1a0   : > { %7990 = vst [vmem:[#allocation112_spill] sm:$0xff] %v5314_v38  ;;  %v600_v38 = vld [vmem:[#allocation2 + $0xb2] sm:$0xff] }
 0x1a2   : > { %1207 = vrot.lane.b32.xlu2 %v4886_v44, %s4458_s28  ;;  %v7995_v44 = vld [vmem:[#allocation22_spill] sm:$0xff] }
 0x1a3   : > { %1205 = vrot.lane.b32.xlu1 %v4872_v1, %s4458_s28 }
 0x1a4   : > { %v5320_v37 = vpop.permute.xlu2 %1077 }
 0x1a5   : > { %7991 = vst [vmem:[#allocation113_spill] sm:$0xff] %v5320_v37  ;;  %1209 = vrot.lane.b32.xlu0 %v4884_v13, %s4458_s28  ;;  %v5324_v39 = vpop.permute.xlu1 %1057  ;;  %v7998_v13 = vld [vmem:[#allocation28_spill] sm:$0xff] }
 0x1a6   : > { %7992 = vst [vmem:[#allocation114_spill] sm:$0xff] %v5324_v39  ;;  %v575_v39 = vld [vmem:[#allocation2 + $0x109] sm:$0xff] }
 0x1a7   : > { %v5326_v62 = vpop.permute.xlu0 %1061 }
 0x1a8   : > { %7993 = vst [vmem:[#allocation115_spill] sm:$0xff] %v5326_v62  ;;  %v8033_v62 = vld [vmem:[#allocation66_spill] sm:$0xff] }
 0x1aa   : > { %1213 = vrot.lane.b32.xlu2 %v4904_v8, %s4458_s28  ;;  %v8001_v8 = vld [vmem:[#allocation27_spill] sm:$0xff] }
 0x1ab   : > { %1211 = vrot.lane.b32.xlu1 %v4890_v43, %s4458_s28 }
 0x1ac   : > { %v5332_v49 = vpop.permute.xlu2 %1083 }
 0x1ad   : > { %7994 = vst [vmem:[#allocation116_spill] sm:$0xff] %v5332_v49  ;;  %1215 = vrot.lane.b32.xlu0 %v7995_v44, %s4458_s28  ;;  %v5336_v1 = vpop.permute.xlu1 %1063  ;;  %v5352_v44 = vld [vmem:[#allocation2 + $0x182] sm:$0xff] }
 0x1ae   : > { %7996 = vst [vmem:[#allocation22_spill] sm:$0xff] %v5336_v1 }
 0x1af   : > { %v5338_v7 = vpop.permute.xlu0 %1067 }
 0x1b0   : > { %7997 = vst [vmem:[#allocation117_spill] sm:$0xff] %v5338_v7  ;;  %v525_v7 = vld [vmem:[#allocation2 + $0x30] sm:$0xff] }
 0x1b2   : > { %1219 = vrot.lane.b32.xlu2 %v7998_v13, %s4458_s28  ;;  %v8003_v13 = vld [vmem:[#allocation29_spill] sm:$0xff] }
 0x1b3   : > { %1217 = vrot.lane.b32.xlu1 %v7999_v6, %s4458_s28 }
 0x1b4   : > { %v5344_v23 = vpop.permute.xlu2 %1089 }
 0x1b5   : > { %8000 = vst [vmem:[#allocation28_spill] sm:$0xff] %v5344_v23  ;;  %1221 = vrot.lane.b32.xlu0 %v8001_v8, %s4458_s28  ;;  %v5348_v43 = vpop.permute.xlu1 %1069 }
 0x1b7   : > { %v5350_v4 = vpop.permute.xlu0 %1073 }
 0x1b8   : > { %8002 = vst [vmem:[#allocation23_spill] sm:$0xff] %v5350_v4  ;;  %v612_v4 = vld [vmem:[#allocation2 + $0x142] sm:$0xff] }
 0x1ba   : > { %1225 = vrot.lane.b32.xlu2 %v5352_v44, %s4458_s28 }
 0x1bb   : > { %1223 = vrot.lane.b32.xlu1 %v8003_v13, %s4458_s28  ;;  %v8007_v13 = vld [vmem:[#allocation36_spill] sm:$0xff] }
 0x1bc   : > { %v5360_v6 = vpop.permute.xlu2 %1095 }
 0x1bd   : > { %8004 = vst [vmem:[#allocation27_spill] sm:$0xff] %v5360_v6  ;;  %1227 = vrot.lane.b32.xlu0 %v5356_v63, %s4458_s28  ;;  %v5364_v8 = vpop.permute.xlu1 %1075 }
 0x1be   : > { %8005 = vst [vmem:[#allocation29_spill] sm:$0xff] %v5364_v8  ;;  %v597_v8 = vld [vmem:[#allocation2 + $0x92] sm:$0xff] }
 0x1bf   : > { %v5366_v23 = vpop.permute.xlu0 %1079 }
 0x1c0   : > { %8006 = vst [vmem:[#allocation118_spill] sm:$0xff] %v5366_v23  ;;  %v560_v23 = vld [vmem:[#allocation2 + $0x51] sm:$0xff] }
 0x1c2   : > { %1295 = vrot.lane.b32.xlu2 %v526_v12, %s4459_s29  ;;  %v8011_v12 = vld [vmem:[#allocation41_spill] sm:$0xff] }
 0x1c3   : > { %1293 = vrot.lane.b32.xlu1 %v525_v7, %s4459_s29 }
 0x1c4   : > { %v5370_v55 = vpop.permute.xlu2 %1165 }
 0x1c5   : > { %1297 = vrot.lane.b32.xlu0 %v8007_v13, %s4459_s29  ;;  %v5374_v6 = vpop.permute.xlu1 %1081  ;;  %v532_v13 = vld [vmem:[#allocation2 + $0x80] sm:$0xff] }
 0x1c6   : > { %8008 = vst [vmem:[#allocation36_spill] sm:$0xff] %v5374_v6 }
 0x1c7   : > { %v5376_v53 = vpop.permute.xlu0 %1085 }
 0x1c8   : > { %8009 = vst [vmem:[#allocation119_spill] sm:$0xff] %v5376_v53  ;;  %v8014_v53 = vld [vmem:[#allocation42_spill] sm:$0xff] }
 0x1ca   : > { %1301 = vrot.lane.b32.xlu2 %v529_v5, %s4459_s29  ;;  %v8015_v5 = vld [vmem:[#allocation46_spill] sm:$0xff] }
 0x1cb   : > { %1299 = vrot.lane.b32.xlu1 %v8010_v16, %s4459_s29 }
 0x1cc   : > { %v5381_v3 = vpop.permute.xlu2 %1171 }
 0x1cd   : > { %1303 = vrot.lane.b32.xlu0 %v8011_v12, %s4459_s29  ;;  %v5385_v7 = vpop.permute.xlu1 %1087  ;;  %v535_v12 = vld [vmem:[#allocation2 + $0xa8] sm:$0xff] }
 0x1ce   : > { %8012 = vst [vmem:[#allocation37_spill] sm:$0xff] %v5385_v7 }
 0x1cf   : > { %v5387_v54 = vpop.permute.xlu0 %1091 }
 0x1d0   : > { %8013 = vst [vmem:[#allocation41_spill] sm:$0xff] %v5387_v54  ;;  %v8018_v54 = vld [vmem:[#allocation47_spill] sm:$0xff] }
 0x1d2   : > { %1307 = vrot.lane.b32.xlu2 %v532_v13, %s4459_s29  ;;  %v8020_v13 = vld [vmem:[#allocation51_spill] sm:$0xff] }
 0x1d3   : > { %1305 = vrot.lane.b32.xlu1 %v8014_v53, %s4459_s29 }
 0x1d4   : > { %v5392_v1 = vpop.permute.xlu2 %1177 }
 0x1d5   : > { %1309 = vrot.lane.b32.xlu0 %v8015_v5, %s4459_s29  ;;  %v5396_v16 = vpop.permute.xlu1 %1093  ;;  %v538_v5 = vld [vmem:[#allocation2 + $0xc8] sm:$0xff] }
 0x1d6   : > { %8016 = vst [vmem:[#allocation42_spill] sm:$0xff] %v5396_v16 }
 0x1d7   : > { %v5398_v49 = vpop.permute.xlu0 %1097 }
 0x1d8   : > { %8017 = vst [vmem:[#allocation46_spill] sm:$0xff] %v5398_v49  ;;  %v8022_v49 = vld [vmem:[#allocation52_spill] sm:$0xff] }
 0x1da   : > { %1313 = vrot.lane.b32.xlu2 %v535_v12, %s4459_s29  ;;  %v8024_v12 = vld [vmem:[#allocation56_spill] sm:$0xff] }
 0x1db   : > { %1311 = vrot.lane.b32.xlu1 %v8018_v54, %s4459_s29 }
 0x1dc   : > { %v5403_v7 = vpop.permute.xlu2 %1183 }
 0x1dd   : > { %8019 = vst [vmem:[#allocation47_spill] sm:$0xff] %v5403_v7  ;;  %1315 = vrot.lane.b32.xlu0 %v8020_v13, %s4459_s29  ;;  %v5407_v53 = vpop.permute.xlu1 %1099  ;;  %v541_v13 = vld [vmem:[#allocation2 + $0xf0] sm:$0xff] }
 0x1de   : > { %8021 = vst [vmem:[#allocation51_spill] sm:$0xff] %v5407_v53 }
 0x1df   : > { %v5409_v24 = vpop.permute.xlu0 %1167 }
 0x1e2   : > { %1319 = vrot.lane.b32.xlu2 %v538_v5, %s4459_s29  ;;  %v8026_v5 = vld [vmem:[#allocation60_spill] sm:$0xff] }
 0x1e3   : > { %1317 = vrot.lane.b32.xlu1 %v8022_v49, %s4459_s29 }
 0x1e4   : > { %v5414_v16 = vpop.permute.xlu2 %1189 }
 0x1e5   : > { %8023 = vst [vmem:[#allocation52_spill] sm:$0xff] %v5414_v16  ;;  %1321 = vrot.lane.b32.xlu0 %v8024_v12, %s4459_s29  ;;  %v5418_v54 = vpop.permute.xlu1 %1169  ;;  %v544_v12 = vld [vmem:[#allocation2 + $0x110] sm:$0xff]  ;;  %v8027_v16 = vld [vmem:[#allocation61_spill] sm:$0xff] }
 0x1e7   : > { %v5420_v34 = vpop.permute.xlu0 %1173 }
 0x1ea   : > { %1325 = vrot.lane.b32.xlu2 %v541_v13, %s4459_s29  ;;  %v8029_v13 = vld [vmem:[#allocation65_spill] sm:$0xff] }
 0x1eb   : > { %1323 = vrot.lane.b32.xlu1 %v5015_v19, %s4459_s29 }
 0x1ec   : > { %v5425_v53 = vpop.permute.xlu2 %1195 }
 0x1ed   : > { %8025 = vst [vmem:[#allocation56_spill] sm:$0xff] %v5425_v53  ;;  %1327 = vrot.lane.b32.xlu0 %v8026_v5, %s4459_s29  ;;  %v5429_v49 = vpop.permute.xlu1 %1175  ;;  %v8032_v5 = vld [vmem:[#allocation71_spill] sm:$0xff] }
 0x1ef   : > { %v5431_v15 = vpop.permute.xlu0 %1179 }
 0x1f2   : > { %1331 = vrot.lane.b32.xlu2 %v544_v12, %s4459_s29  ;;  %v8035_v12 = vld [vmem:[#allocation70_spill] sm:$0xff] }
 0x1f3   : > { %1329 = vrot.lane.b32.xlu1 %v8027_v16, %s4459_s29 }
 0x1f4   : > { %v5436_v6 = vpop.permute.xlu2 %1201 }
 0x1f5   : > { %8028 = vst [vmem:[#allocation60_spill] sm:$0xff] %v5436_v6  ;;  %1333 = vrot.lane.b32.xlu0 %v8029_v13, %s4459_s29  ;;  %v5440_v19 = vpop.permute.xlu1 %1181  ;;  %v8038_v13 = vld [vmem:[#allocation72_spill] sm:$0xff] }
 0x1f6   : > { %8030 = vst [vmem:[#allocation61_spill] sm:$0xff] %v5440_v19 }
 0x1f7   : > { %v5442_v53 = vpop.permute.xlu0 %1185 }
 0x1f8   : > { %8031 = vst [vmem:[#allocation65_spill] sm:$0xff] %v5442_v53  ;;  %v570_v53 = vld [vmem:[#allocation2 + $0xc9] sm:$0xff] }
 0x1fa   : > { %1337 = vrot.lane.b32.xlu2 %v8032_v5, %s4459_s29  ;;  %v8040_v5 = vld [vmem:[#allocation76_spill] sm:$0xff] }
 0x1fb   : > { %1335 = vrot.lane.b32.xlu1 %v8033_v62, %s4459_s29 }
 0x1fc   : > { %v5448_v52 = vpop.permute.xlu2 %1207 }
 0x1fd   : > { %8034 = vst [vmem:[#allocation71_spill] sm:$0xff] %v5448_v52  ;;  %1339 = vrot.lane.b32.xlu0 %v8035_v12, %s4459_s29  ;;  %v5452_v16 = vpop.permute.xlu1 %1187 }
 0x1fe   : > { %8036 = vst [vmem:[#allocation66_spill] sm:$0xff] %v5452_v16  ;;  %v558_v16 = vld [vmem:[#allocation2 + $0x39] sm:$0xff] }
 0x1ff   : > { %v5454_v50 = vpop.permute.xlu0 %1191 }
 0x200   : > { %8037 = vst [vmem:[#allocation70_spill] sm:$0xff] %v5454_v50  ;;  %v555_v50 = vld [vmem:[#allocation2 + $0x198] sm:$0xff] }
 0x202   : > { %1343 = vrot.lane.b32.xlu2 %v5076_v45, %s4459_s29  ;;  %v8043_v45 = vld [vmem:[#allocation80_spill] sm:$0xff] }
 0x203   : > { %1341 = vrot.lane.b32.xlu1 %v8038_v13, %s4459_s29 }
 0x204   : > { %v5460_v33 = vpop.permute.xlu2 %1213 }
 0x205   : > { %8039 = vst [vmem:[#allocation72_spill] sm:$0xff] %v5460_v33  ;;  %1345 = vrot.lane.b32.xlu0 %v8040_v5, %s4459_s29  ;;  %v5464_v62 = vpop.permute.xlu1 %1193  ;;  %v556_v5 = vld [vmem:[#allocation2 + $0x1a0] sm:$0xff] }
 0x206   : > { %8041 = vst [vmem:[#allocation76_spill] sm:$0xff] %v5464_v62  ;;  %v557_v62 = vld [vmem:[#allocation2 + $0x31] sm:$0xff] }
 0x207   : > { %v5466_v52 = vpop.permute.xlu0 %1197 }
 0x20a   : > { %1349 = vrot.lane.b32.xlu2 %v5094_v31, %s4459_s29 }
 0x20b   : > { %1347 = vrot.lane.b32.xlu1 %v5082_v20, %s4459_s29 }
 0x20c   : > { %v5472_v12 = vpop.permute.xlu2 %1219 }
 0x20d   : > { %8042 = vst [vmem:[#allocation120_spill] sm:$0xff] %v5472_v12  ;;  %1351 = vrot.lane.b32.xlu0 %v8043_v45, %s4459_s29  ;;  %v5476_v13 = vpop.permute.xlu1 %1199  ;;  %v559_v45 = vld [vmem:[#allocation2 + $0x49] sm:$0xff] }
 0x20f   : > { %v5478_v33 = vpop.permute.xlu0 %1203 }
 0x210   : > { %8044 = vst [vmem:[#allocation80_spill] sm:$0xff] %v5478_v33  ;;  %v581_v33 = vld [vmem:[#allocation2 + $0x151] sm:$0xff] }
 0x212   : > { %1355 = vrot.lane.b32.xlu2 %v556_v5, %s4459_s29 }
 0x213   : > { %1353 = vrot.lane.b32.xlu1 %v555_v50, %s4459_s29 }
 0x214   : > { %v5482_v31 = vpop.permute.xlu2 %1225 }
 0x215   : > { %8045 = vst [vmem:[#allocation121_spill] sm:$0xff] %v5482_v31  ;;  %1421 = vrot.lane.b32.xlu0 %v557_v62, %s4460_s30  ;;  %v5485_v20 = vpop.permute.xlu1 %1205  ;;  %v562_v62 = vld [vmem:[#allocation2 + $0x69] sm:$0xff] }
 0x216   : > { %8046 = vst [vmem:[#allocation122_spill] sm:$0xff] %v5485_v20  ;;  %v567_v20 = vld [vmem:[#allocation2 + $0xa9] sm:$0xff] }
 0x217   : > { %v5487_v12 = vpop.permute.xlu0 %1209 }
 0x218   : > { %8047 = vst [vmem:[#allocation123_spill] sm:$0xff] %v5487_v12  ;;  %v563_v12 = vld [vmem:[#allocation2 + $0x79] sm:$0xff] }
 0x21a   : > { %1425 = vrot.lane.b32.xlu2 %v559_v45, %s4460_s30 }
 0x21b   : > { %1423 = vrot.lane.b32.xlu1 %v558_v16, %s4460_s30 }
 0x21c   : > { %v5491_v5 = vpop.permute.xlu2 %1295 }
 0x21d   : > { %1427 = vrot.lane.b32.xlu0 %v560_v23, %s4460_s30  ;;  %v5494_v50 = vpop.permute.xlu1 %1211  ;;  %v565_v23 = vld [vmem:[#allocation2 + $0x91] sm:$0xff] }
 0x21e   : > { %8048 = vst [vmem:[#allocation124_spill] sm:$0xff] %v5494_v50 }
 0x21f   : > { %v5496_v31 = vpop.permute.xlu0 %1215 }
 0x220   : > { %8049 = vst [vmem:[#allocation125_spill] sm:$0xff] %v5496_v31  ;;  %v566_v31 = vld [vmem:[#allocation2 + $0x99] sm:$0xff] }
 0x222   : > { %1431 = vrot.lane.b32.xlu2 %v562_v62, %s4460_s30 }
 0x223   : > { %1429 = vrot.lane.b32.xlu1 %v561_v9, %s4460_s30 }
 0x224   : > { %v5500_v61 = vpop.permute.xlu2 %1301 }
 0x225   : > { %1433 = vrot.lane.b32.xlu0 %v563_v12, %s4460_s30  ;;  %v5503_v16 = vpop.permute.xlu1 %1217  ;;  %v568_v12 = vld [vmem:[#allocation2 + $0xb1] sm:$0xff] }
 0x226   : > { %8050 = vst [vmem:[#allocation126_spill] sm:$0xff] %v5503_v16 }
 0x227   : > { %v5505_v45 = vpop.permute.xlu0 %1221 }
 0x228   : > { %8051 = vst [vmem:[#allocation127_spill] sm:$0xff] %v5505_v45  ;;  %v569_v45 = vld [vmem:[#allocation2 + $0xc1] sm:$0xff] }
 0x22a   : > { %1437 = vrot.lane.b32.xlu2 %v565_v23, %s4460_s30 }
 0x22b   : > { %1435 = vrot.lane.b32.xlu1 %v564_v51, %s4460_s30 }
 0x22c   : > { %v5509_v50 = vpop.permute.xlu2 %1307 }
 0x22d   : > { %1439 = vrot.lane.b32.xlu0 %v566_v31, %s4460_s30  ;;  %v5512_v9 = vpop.permute.xlu1 %1223  ;;  %v571_v31 = vld [vmem:[#allocation2 + $0xd9] sm:$0xff] }
 0x22e   : > { %8052 = vst [vmem:[#allocation128_spill] sm:$0xff] %v5512_v9 }
 0x22f   : > { %v5514_v62 = vpop.permute.xlu0 %1227 }
 0x230   : > { %8053 = vst [vmem:[#allocation129_spill] sm:$0xff] %v5514_v62  ;;  %v572_v62 = vld [vmem:[#allocation2 + $0xe1] sm:$0xff] }
 0x232   : > { %1443 = vrot.lane.b32.xlu2 %v568_v12, %s4460_s30 }
 0x233   : > { %1441 = vrot.lane.b32.xlu1 %v567_v20, %s4460_s30 }
 0x234   : > { %v5518_v16 = vpop.permute.xlu2 %1313 }
 0x235   : > { %8054 = vst [vmem:[#allocation130_spill] sm:$0xff] %v5518_v16  ;;  %1445 = vrot.lane.b32.xlu0 %v569_v45, %s4460_s30  ;;  %v5521_v51 = vpop.permute.xlu1 %1293  ;;  %v574_v45 = vld [vmem:[#allocation2 + $0xf9] sm:$0xff]  ;;  %v573_v16 = vld [vmem:[#allocation2 + $0xf1] sm:$0xff] }
 0x237   : > { %v5523_v23 = vpop.permute.xlu0 %1297 }
 0x23a   : > { %1449 = vrot.lane.b32.xlu2 %v571_v31, %s4460_s30 }
 0x23b   : > { %1447 = vrot.lane.b32.xlu1 %v570_v53, %s4460_s30 }
 0x23c   : > { %v5527_v9 = vpop.permute.xlu2 %1319 }
 0x23d   : > { %8055 = vst [vmem:[#allocation131_spill] sm:$0xff] %v5527_v9  ;;  %1451 = vrot.lane.b32.xlu0 %v572_v62, %s4460_s30  ;;  %v5530_v20 = vpop.permute.xlu1 %1299  ;;  %v577_v62 = vld [vmem:[#allocation2 + $0x121] sm:$0xff]  ;;  %v576_v9 = vld [vmem:[#allocation2 + $0x111] sm:$0xff] }
 0x23f   : > { %v5532_v12 = vpop.permute.xlu0 %1303 }
 0x242   : > { %1455 = vrot.lane.b32.xlu2 %v574_v45, %s4460_s30 }
 0x243   : > { %1453 = vrot.lane.b32.xlu1 %v573_v16, %s4460_s30 }
 0x244   : > { %v5536_v37 = vpop.permute.xlu2 %1325 }
 0x245   : > { %1457 = vrot.lane.b32.xlu0 %v575_v39, %s4460_s30  ;;  %v5539_v53 = vpop.permute.xlu1 %1305  ;;  %v580_v39 = vld [vmem:[#allocation2 + $0x141] sm:$0xff] }
 0x247   : > { %v5541_v31 = vpop.permute.xlu0 %1309 }
 0x248   : > { %8056 = vst [vmem:[#allocation132_spill] sm:$0xff] %v5541_v31  ;;  %v1909_v31 = vld [vmem:[%s7826_s1 + $0x8] sm:$0xff] }
 0x24a   : > { %1461 = vrot.lane.b32.xlu2 %v577_v62, %s4460_s30 }
 0x24b   : > { %1459 = vrot.lane.b32.xlu1 %v576_v9, %s4460_s30 }
 0x24c   : > { %v5545_v28 = vpop.permute.xlu2 %1331 }
 0x24d   : > { %8057 = vst [vmem:[#allocation133_spill] sm:$0xff] %v5545_v28  ;;  %1463 = vrot.lane.b32.xlu0 %v578_v59, %s4460_s30  ;;  %v5548_v16 = vpop.permute.xlu1 %1311  ;;  %v583_v59 = vld [vmem:[#allocation2 + $0x169] sm:$0xff]  ;;  %v582_v28 = vld [vmem:[#allocation2 + $0x159] sm:$0xff] }
 0x24e   : > { %8058 = vst [vmem:[#allocation134_spill] sm:$0xff] %v5548_v16 }
 0x24f   : > { %v5550_v45 = vpop.permute.xlu0 %1315 }
 0x250   : > { %8059 = vst [vmem:[#allocation135_spill] sm:$0xff] %v5550_v45  ;;  %v584_v45 = vld [vmem:[#allocation2 + $0x171] sm:$0xff] }
 0x252   : > { %1467 = vrot.lane.b32.xlu2 %v580_v39, %s4460_s30 }
 0x253   : > { %1465 = vrot.lane.b32.xlu1 %v579_v32, %s4460_s30 }
 0x254   : > { %v5554_v7 = vpop.permute.xlu2 %1337 }
 0x255   : > { %8060 = vst [vmem:[#allocation136_spill] sm:$0xff] %v5554_v7  ;;  %1469 = vrot.lane.b32.xlu0 %v581_v33, %s4460_s30  ;;  %v5557_v9 = vpop.permute.xlu1 %1317  ;;  %v587_v33 = vld [vmem:[#allocation2 + $0x199] sm:$0xff]  ;;  %v593_v7 = vld [vmem:[#allocation2 + $0x62] sm:$0xff] }
 0x256   : > { %8061 = vst [vmem:[#allocation137_spill] sm:$0xff] %v5557_v9  ;;  %v591_v9 = vld [vmem:[#allocation2 + $0x4a] sm:$0xff] }
 0x257   : > { %v5559_v62 = vpop.permute.xlu0 %1321 }
 0x258   : > { %8062 = vst [vmem:[#allocation138_spill] sm:$0xff] %v5559_v62 }
 0x25a   : > { %1473 = vrot.lane.b32.xlu2 %v583_v59, %s4460_s30 }
 0x25b   : > { %1471 = vrot.lane.b32.xlu1 %v582_v28, %s4460_s30 }
 0x25c   : > { %v5563_v16 = vpop.permute.xlu2 %1343 }
 0x25d   : > { %8063 = vst [vmem:[#allocation139_spill] sm:$0xff] %v5563_v16  ;;  %1475 = vrot.lane.b32.xlu0 %v584_v45, %s4460_s30  ;;  %v5566_v32 = vpop.permute.xlu1 %1323  ;;  %v589_v45 = vld [vmem:[#allocation2 + $0x32] sm:$0xff]  ;;  %v588_v16 = vld [vmem:[#allocation2 + $0x1a1] sm:$0xff] }
 0x25e   : > { %8064 = vst [vmem:[#allocation140_spill] sm:$0xff] %v5566_v32  ;;  %v590_v32 = vld [vmem:[#allocation2 + $0x3a] sm:$0xff] }
 0x25f   : > { %v5568_v39 = vpop.permute.xlu0 %1327 }
 0x262   : > { %1479 = vrot.lane.b32.xlu2 %v5230_v29, %s4460_s30 }
 0x263   : > { %1477 = vrot.lane.b32.xlu1 %v5218_v56, %s4460_s30 }
 0x264   : > { %v5574_v62 = vpop.permute.xlu2 %1349 }
 0x265   : > { %8065 = vst [vmem:[#allocation141_spill] sm:$0xff] %v5574_v62  ;;  %1481 = vrot.lane.b32.xlu0 %v587_v33, %s4460_s30  ;;  %v5577_v28 = vpop.permute.xlu1 %1329  ;;  %v592_v33 = vld [vmem:[#allocation2 + $0x52] sm:$0xff] }
 0x266   : > { %8066 = vst [vmem:[#allocation142_spill] sm:$0xff] %v5577_v28 }
 0x267   : > { %v5579_v59 = vpop.permute.xlu0 %1333 }
 0x268   : > { %8067 = vst [vmem:[#allocation143_spill] sm:$0xff] %v5579_v59 }
 0x26a   : > { %1549 = vrot.lane.b32.xlu2 %v589_v45, %s4461_s6 }
 0x26b   : > { %1483 = vrot.lane.b32.xlu1 %v588_v16, %s4460_s30 }
 0x26c   : > { %v5583_v29 = vpop.permute.xlu2 %1355 }
 0x26d   : > { %8068 = vst [vmem:[#allocation144_spill] sm:$0xff] %v5583_v29  ;;  %1551 = vrot.lane.b32.xlu0 %v590_v32, %s4461_s6  ;;  %v5586_v56 = vpop.permute.xlu1 %1335  ;;  %v595_v32 = vld [vmem:[#allocation2 + $0x7a] sm:$0xff]  ;;  %v594_v29 = vld [vmem:[#allocation2 + $0x6a] sm:$0xff] }
 0x26e   : > { %8069 = vst [vmem:[#allocation145_spill] sm:$0xff] %v5586_v56 }
 0x26f   : > { %v5588_v62 = vpop.permute.xlu0 %1339 }
 0x270   : > { %8070 = vst [vmem:[#allocation146_spill] sm:$0xff] %v5588_v62  ;;  %v596_v62 = vld [vmem:[#allocation2 + $0x82] sm:$0xff] }
 0x272   : > { %1555 = vrot.lane.b32.xlu2 %v592_v33, %s4461_s6 }
 0x273   : > { %1553 = vrot.lane.b32.xlu1 %v591_v9, %s4461_s6 }
 0x274   : > { %v5592_v59 = vpop.permute.xlu2 %1425 }
 0x275   : > { %1557 = vrot.lane.b32.xlu0 %v593_v7, %s4461_s6  ;;  %v5595_v16 = vpop.permute.xlu1 %1341  ;;  %v598_v7 = vld [vmem:[#allocation2 + $0x9a] sm:$0xff] }
 0x276   : > { %8071 = vst [vmem:[#allocation147_spill] sm:$0xff] %v5595_v16 }
 0x277   : > { %v5597_v45 = vpop.permute.xlu0 %1345 }
 0x278   : > { %8072 = vst [vmem:[#allocation148_spill] sm:$0xff] %v5597_v45  ;;  %v599_v45 = vld [vmem:[#allocation2 + $0xaa] sm:$0xff] }
 0x27a   : > { %1561 = vrot.lane.b32.xlu2 %v595_v32, %s4461_s6 }
 0x27b   : > { %1559 = vrot.lane.b32.xlu1 %v594_v29, %s4461_s6 }
 0x27c   : > { %v5601_v56 = vpop.permute.xlu2 %1431 }
 0x27d   : > { %1563 = vrot.lane.b32.xlu0 %v596_v62, %s4461_s6  ;;  %v5604_v9 = vpop.permute.xlu1 %1347  ;;  %v601_v62 = vld [vmem:[#allocation2 + $0xc2] sm:$0xff] }
 0x27e   : > { %8073 = vst [vmem:[#allocation149_spill] sm:$0xff] %v5604_v9 }
 0x27f   : > { %v5606_v33 = vpop.permute.xlu0 %1351 }
 0x280   : > { %8074 = vst [vmem:[#allocation150_spill] sm:$0xff] %v5606_v33  ;;  %v602_v33 = vld [vmem:[#allocation2 + $0xca] sm:$0xff] }
 0x282   : > { %1567 = vrot.lane.b32.xlu2 %v598_v7, %s4461_s6 }
 0x283   : > { %1565 = vrot.lane.b32.xlu1 %v597_v8, %s4461_s6 }
 0x284   : > { %v5610_v16 = vpop.permute.xlu2 %1437 }
 0x285   : > { %8075 = vst [vmem:[#allocation151_spill] sm:$0xff] %v5610_v16  ;;  %1569 = vrot.lane.b32.xlu0 %v599_v45, %s4461_s6  ;;  %v5613_v29 = vpop.permute.xlu1 %1353  ;;  %v604_v45 = vld [vmem:[#allocation2 + $0xe2] sm:$0xff]  ;;  %v608_v16 = vld [vmem:[#allocation2 + $0x112] sm:$0xff] }
 0x286   : > { %8076 = vst [vmem:[#allocation152_spill] sm:$0xff] %v5613_v29  ;;  %v605_v29 = vld [vmem:[#allocation2 + $0xf2] sm:$0xff] }
 0x287   : > { %v5615_v32 = vpop.permute.xlu0 %1421 }
 0x28a   : > { %1573 = vrot.lane.b32.xlu2 %v601_v62, %s4461_s6 }
 0x28b   : > { %1571 = vrot.lane.b32.xlu1 %v600_v38, %s4461_s6 }
 0x28c   : > { %v5619_v9 = vpop.permute.xlu2 %1443 }
 0x28d   : > { %8077 = vst [vmem:[#allocation153_spill] sm:$0xff] %v5619_v9  ;;  %1575 = vrot.lane.b32.xlu0 %v602_v33, %s4461_s6  ;;  %v5622_v8 = vpop.permute.xlu1 %1423  ;;  %v607_v33 = vld [vmem:[#allocation2 + $0x10a] sm:$0xff]  ;;  %v606_v9 = vld [vmem:[#allocation2 + $0xfa] sm:$0xff] }
 0x28f   : > { %v5624_v7 = vpop.permute.xlu0 %1427 }
 0x292   : > { %1579 = vrot.lane.b32.xlu2 %v604_v45, %s4461_s6 }
 0x293   : > { %1577 = vrot.lane.b32.xlu1 %v603_v48, %s4461_s6 }
 0x294   : > { %v5628_v46 = vpop.permute.xlu2 %1449 }
 0x295   : > { %8078 = vst [vmem:[#allocation154_spill] sm:$0xff] %v5628_v46  ;;  %1581 = vrot.lane.b32.xlu0 %v605_v29, %s4461_s6  ;;  %v5631_v38 = vpop.permute.xlu1 %1429  ;;  %v1912_v29 = vld [vmem:[%s7826_s1 + $0x20] sm:$0xf] }
 0x296   : > { %4304 = vmatpush.msk.msra.mxu0 %vm2014_vm3, %v1912_v29  ;;  %4374 = vmatpush.msk.msra.mxu2 %vm2014_vm3, %v1912_v29  ;;  %v609_v46 = vld [vmem:[#allocation2 + $0x122] sm:$0xff]  ;;  %v611_v29 = vld [vmem:[#allocation2 + $0x13a] sm:$0xff] }
 0x297   : > { %v5633_v62 = vpop.permute.xlu0 %1433 }
 0x29a   : > { %1585 = vrot.lane.b32.xlu2 %v607_v33, %s4461_s6  ;;  %v610_v33 = vld [vmem:[#allocation2 + $0x12a] sm:$0xff] }
 0x29b   : > { %1583 = vrot.lane.b32.xlu1 %v606_v9, %s4461_s6  ;;  %v1911_v9 = vld [vmem:[%s7826_s1 + $0x18] sm:$0xff] }
 0x29c   : > { %v5637_v28 = vpop.permute.xlu2 %1455  ;;  %2030 = vmatpush.msra.mxu0 %v1911_v9  ;;  %4375 = vmatpush.msra.mxu2 %v1911_v9  ;;  %v1908_v9 = vld [vmem:[%s7826_s1] sm:$0xff] }
 0x29d   : > { %1587 = vrot.lane.b32.xlu0 %v608_v16, %s4461_s6  ;;  %v5640_v48 = vpop.permute.xlu1 %1435  ;;  %v1910_v16 = vld [vmem:[%s7826_s1 + $0x10] sm:$0xff] }
 0x29e   : > { %2031 = vmatpush.msra.mxu0 %v1910_v16  ;;  %4376 = vmatpush.msra.mxu2 %v1910_v16 }
 0x29f   : > { %v5647_v45 = vpop.permute.xlu0 %1439 }
 0x2a0   : > { %8079 = vst [vmem:[#allocation155_spill] sm:$0xff] %v5647_v45  ;;  %2032 = vmatpush.msra.mxu0 %v1909_v31  ;;  %4377 = vmatpush.msra.mxu2 %v1909_v31  ;;  %v616_v31 = vld [vmem:[#allocation2 + $0x172] sm:$0xff] }
 0x2a2   : > { %1591 = vrot.lane.b32.xlu2 %v610_v33, %s4461_s6  ;;  %2033 = vmatpush.msra.mxu0 %v1908_v9  ;;  %v613_v33 = vld [vmem:[#allocation2 + $0x152] sm:$0xff] }
 0x2a3   : > { %1589 = vrot.lane.b32.xlu1 %v609_v46, %s4461_s6  ;;  %4378 = vmatpush.msra.mxu2 %v1908_v9  ;;  %v614_v46 = vld [vmem:[#allocation2 + $0x15a] sm:$0xff] }
 0x2a4   : > { %v5660_v45 = vpop.permute.xlu2 %1461 }
 0x2a5   : > { %8080 = vst [vmem:[#allocation156_spill] sm:$0xff] %v5660_v45  ;;  %1593 = vrot.lane.b32.xlu0 %v611_v29, %s4461_s6  ;;  %v5663_v19 = vpop.permute.xlu1 %1441  ;;  %v615_v45 = vld [vmem:[#allocation2 + $0x16a] sm:$0xff] }
 0x2a6   : > { %8081 = vst [vmem:[#allocation157_spill] sm:$0xff] %v5663_v19 }
 0x2a7   : > { %v5668_v6 = vpop.permute.xlu0 %1445 }
 0x2a8   : > { %8082 = vst [vmem:[#allocation158_spill] sm:$0xff] %v5668_v6 }
 0x2aa   : > { %1597 = vrot.lane.b32.xlu2 %v613_v33, %s4461_s6 }
 0x2ab   : > { %1595 = vrot.lane.b32.xlu1 %v612_v4, %s4461_s6 }
 0x2ac   : > { %v5672_v16 = vpop.permute.xlu2 %1467 }
 0x2ad   : > { %8083 = vst [vmem:[#allocation159_spill] sm:$0xff] %v5672_v16  ;;  %1599 = vrot.lane.b32.xlu0 %v614_v46, %s4461_s6  ;;  %v5675_v29 = vpop.permute.xlu1 %1447  ;;  %v619_v46 = vld [vmem:[#allocation2 + $0x19a] sm:$0xff] }
 0x2ae   : > { %8084 = vst [vmem:[#allocation160_spill] sm:$0xff] %v5675_v29  ;;  %v620_v29 = vld [vmem:[#allocation2 + $0x1a2] sm:$0xff] }
 0x2af   : > { %v5677_v19 = vpop.permute.xlu0 %1451  ;;  %v8089_v16 = vld [vmem:[#allocation33_spill] sm:$0xff] }
 0x2b0   : > { %8085 = vst [vmem:[#allocation161_spill] sm:$0xff] %v5677_v19  ;;  %v332_v19 = vld [vmem:[#allocation2] sm:$0xff] }
 0x2b2   : > { %1603 = vrot.lane.b32.xlu2 %v616_v31, %s4461_s6 }
 0x2b3   : > { %1601 = vrot.lane.b32.xlu1 %v615_v45, %s4461_s6 }
 0x2b4   : > { %v5681_v9 = vpop.permute.xlu2 %1473 }
 0x2b5   : > { %8086 = vst [vmem:[#allocation162_spill] sm:$0xff] %v5681_v9  ;;  %1605 = vrot.lane.b32.xlu0 %v5352_v44, %s4461_s6  ;;  %v5685_v4 = vpop.permute.xlu1 %1453  ;;  %v8088_v44 = vld [vmem:[#allocation6_spill] sm:$0xff] }
 0x2b6   : > { %v1645_v9 = vsel %vm225_vm0, %v332_v19, %v8088_v44 }
 0x2b7   : > { %v5687_v33 = vpop.permute.xlu0 %1457  ;;  %v1678_v6 = vsel %vm1677_vm4, %v1645_v9, %v8089_v16 }
 0x2ba   : > { %1609 = vrot.lane.b32.xlu2 %v619_v46, %s4461_s6 }
 0x2bb   : > { %1607 = vrot.lane.b32.xlu1 %v5356_v63, %s4461_s6  ;;  %v1711_v63 = vsel %vm1710_vm5, %v1678_v6, %v5152_v30 }
 0x2bc   : > { %v5692_v31 = vpop.permute.xlu2 %1479 }
 0x2bd   : > { %8087 = vst [vmem:[#allocation163_spill] sm:$0xff] %v5692_v31  ;;  %1611 = vrot.lane.b32.xlu0 %v620_v29, %s4461_s6  ;;  %v5695_v45 = vpop.permute.xlu1 %1459  ;;  %v1744_v31 = vsel %vm1743_vm7, %v1711_v63, %v5278_v10 }
 0x2be   : > { %v1777_v29 = vsel %vm1776_vm6, %v1744_v31, %v5370_v55 }
 0x2bf   : > { %v5701_v46 = vpop.permute.xlu0 %1463  ;;  %v1810_v19 = vsel %vm1809_vm8, %v1777_v29, %v5521_v51  ;;  %v333_v51 = vld [vmem:[#allocation2 + $0x8] sm:$0xff]  ;;  %v8094_v29 = vld [vmem:[#allocation9_spill] sm:$0xff] }
 0x2c0   : > { %v1843_v16 = vsel %vm1842_vm10, %v1810_v19, %v5615_v32  ;;  %v1646_v32 = vsel %vm225_vm0, %v333_v51, %v8094_v29  ;;  %v8095_v19 = vld [vmem:[#allocation50_spill] sm:$0xff] }
 0x2c4   : > { %v1550_v9 = vpop.permute.xlu2 %1549 }
 0x2c5   : > { %v5713_v44 = vpop.permute.xlu1 %1465  ;;  %v1876_v30 = vsel %vm1875_vm9, %v1843_v16, %v1550_v9 }
 0x2c6   : > { %8090 = vst [vmem:[#allocation6_spill] sm:$0xff] %v5713_v44  ;;  %4305 = vmatmul.msk.f32.vlgmr.msra.gmra.mxu0 %vm1917_vm11, %v1876_v30  ;;  %v1679_v44 = vsel %vm1677_vm4, %v1646_v32, %v8095_v19  ;;  %v4403_v19 = vld [vmem:[#allocation2 + $0x18] sm:$0xff] }
 0x2c7   : > { %v5717_v10 = vpop.permute.xlu0 %1469  ;;  %v1712_v16 = vsel %vm1710_vm5, %v1679_v44, %v5112_v22 }
 0x2c8   : > { %v1745_v9 = vsel %vm1743_vm7, %v1712_v16, %v5288_v11  ;;  %v8097_v11 = vld [vmem:[#allocation54_spill] sm:$0xff] }
 0x2c9   : > { %v1778_v30 = vsel %vm1776_vm6, %v1745_v9, %v5409_v24 }
 0x2cc   : > { %v1556_v16 = vpop.permute.xlu2 %1555 }
 0x2cd   : > { %v5719_v55 = vpop.permute.xlu1 %1471 }
 0x2cf   : > { %v5721_v6 = vpop.permute.xlu0 %1475 }
 0x2d0   : > { %8091 = vst [vmem:[#allocation33_spill] sm:$0xff] %v5721_v6 }
 0x2d5   : > { %v5723_v31 = vpop.permute.xlu1 %1477 }
 0x2d6   : > { %8092 = vst [vmem:[#allocation164_spill] sm:$0xff] %v5723_v31  ;;  %v8096_v31 = vld [vmem:[#allocation8_spill] sm:$0xff] }
 0x2d7   : > { %v5725_v63 = vpop.permute.xlu0 %1481  ;;  %v1647_v22 = vsel %vm225_vm0, %v4403_v19, %v8096_v31 }
 0x2d8   : > { %8093 = vst [vmem:[#allocation165_spill] sm:$0xff] %v5725_v63  ;;  %v1811_v63 = vsel %vm1809_vm8, %v1778_v30, %v5491_v5  ;;  %v1680_v24 = vsel %vm1677_vm4, %v1647_v22, %v8097_v11  ;;  %v1562_v22 = vpop.permute.xlu2 %1561 }
 0x2d9   : > { %v1844_v51 = vsel %vm1842_vm10, %v1811_v63, %v5622_v8  ;;  %v1713_v44 = vsel %vm1710_vm5, %v1680_v24, %v5154_v35 }
 0x2da   : > { %v1746_v5 = vsel %vm1743_vm7, %v1713_v44, %v5248_v60  ;;  %v8099_v60 = vld [vmem:[#allocation38_spill] sm:$0xff] }
 0x2db   : > { %v1779_v8 = vsel %vm1776_vm6, %v1746_v5, %v5418_v54 }
 0x2dc   : > { %v1812_v9 = vsel %vm1809_vm8, %v1779_v8, %v5523_v23 }
 0x2dd   : > { %v5737_v6 = vpop.permute.xlu1 %1483  ;;  %v1845_v31 = vsel %vm1842_vm10, %v1812_v9, %v5592_v59 }
 0x2df   : > { %v1552_v29 = vpop.permute.xlu0 %1551 }
 0x2e0   : > { %v1877_v32 = vsel %vm1875_vm9, %v1844_v51, %v1552_v29  ;;  %v4404_v29 = vld [vmem:[#allocation2 + $0x20] sm:$0xff] }
 0x2e1   : > { %4306 = vmatmul.msk.f32.gmra.mxu0 %vm1917_vm11, %v1877_v32  ;;  %v8098_v32 = vld [vmem:[#allocation11_spill] sm:$0xff] }
 0x2e2   : > { %v1648_v35 = vsel %vm225_vm0, %v4404_v29, %v8098_v32  ;;  %v5795_v32 = vpop.permute.xlu2 %1567 }
 0x2e3   : > { %v1681_v19 = vsel %vm1677_vm4, %v1648_v35, %v8099_v60  ;;  %v4406_v60 = vld [vmem:[#allocation2 + $0x38] sm:$0xff] }
 0x2e4   : > { %v1714_v54 = vsel %vm1710_vm5, %v1681_v19, %v5164_v36  ;;  %v8100_v36 = vld [vmem:[#allocation3_spill] sm:$0xff]  ;;  %v8102_v19 = vld [vmem:[#allocation4_spill] sm:$0xff] }
 0x2e5   : > { %v1554_v63 = vpop.permute.xlu1 %1553  ;;  %v1747_v23 = vsel %vm1743_vm7, %v1714_v54, %v5290_v17  ;;  %v8101_v17 = vld [vmem:[#allocation55_spill] sm:$0xff] }
 0x2e6   : > { %v1878_v51 = vsel %vm1875_vm9, %v1845_v31, %v1554_v63  ;;  %v1780_v59 = vsel %vm1776_vm6, %v1747_v23, %v5381_v3  ;;  %v4405_v63 = vld [vmem:[#allocation2 + $0x30] sm:$0xff] }
 0x2e7   : > { %v1558_v30 = vpop.permute.xlu0 %1557  ;;  %v1813_v24 = vsel %vm1809_vm8, %v1780_v59, %v5530_v20  ;;  %v1649_v9 = vsel %vm225_vm0, %v4405_v63, %v8100_v36  ;;  %v4407_v63 = vld [vmem:[#allocation2 + $0x48] sm:$0xff] }
 0x2e8   : > { %v1846_v44 = vsel %vm1842_vm10, %v1813_v24, %v5624_v7  ;;  %v1682_v3 = vsel %vm1677_vm4, %v1649_v9, %v8101_v17  ;;  %v8105_v9 = vld [vmem:[#allocation25_spill] sm:$0xff] }
 0x2e9   : > { %4307 = vmatmul.msk.f32.gmra.mxu0 %vm1917_vm11, %v1878_v51  ;;  %v1879_v8 = vsel %vm1875_vm9, %v1846_v44, %v1556_v16  ;;  %v1715_v31 = vsel %vm1710_vm5, %v1682_v3, %v5124_v14 }
 0x2ea   : > { %v1748_v20 = vsel %vm1743_vm7, %v1715_v31, %v5300_v18  ;;  %v1650_v18 = vsel %vm225_vm0, %v4406_v60, %v8102_v19  ;;  %v5824_v17 = vpop.permute.xlu2 %1573 }
 0x2eb   : > { %v1781_v7 = vsel %vm1776_vm6, %v1748_v20, %v5420_v34  ;;  %v8103_v34 = vld [vmem:[#allocation58_spill] sm:$0xff] }
 0x2ec   : > { %v1814_v16 = vsel %vm1809_vm8, %v1781_v7, %v5500_v61  ;;  %v1683_v54 = vsel %vm1677_vm4, %v1650_v18, %v8103_v34  ;;  %v8108_v34 = vld [vmem:[#allocation13_spill] sm:$0xff] }
 0x2ed   : > { %v1560_v11 = vpop.permute.xlu1 %1559  ;;  %v1847_v29 = vsel %vm1842_vm10, %v1814_v16, %v5631_v38  ;;  %v1716_v61 = vsel %vm1710_vm5, %v1683_v54, %v5166_v41  ;;  %v8104_v41 = vld [vmem:[#allocation12_spill] sm:$0xff] }
 0x2ee   : > { %v1880_v14 = vsel %vm1875_vm9, %v1847_v29, %v1558_v30  ;;  %v1749_v38 = vsel %vm1743_vm7, %v1716_v61, %v5260_v2  ;;  %v1651_v36 = vsel %vm225_vm0, %v4407_v63, %v8104_v41  ;;  %v4408_v2 = vld [vmem:[#allocation2 + $0xc0] sm:$0xff]  ;;  %v4410_v61 = vld [vmem:[#allocation2 + $0x50] sm:$0xff] }
 0x2ef   : > { %v5775_v5 = vpop.permute.xlu0 %1563  ;;  %v1782_v23 = vsel %vm1776_vm6, %v1749_v38, %v5429_v49  ;;  %v1661_v49 = vsel %vm225_vm0, %v4408_v2, %v8105_v9 }
 0x2f0   : > { %v1815_v30 = vsel %vm1809_vm8, %v1782_v23, %v5532_v12  ;;  %v8106_v12 = vld [vmem:[#allocation43_spill] sm:$0xff] }
 0x2f1   : > { %4308 = vmatmul.msk.f32.gmra.mxu0 %vm1917_vm11, %v1879_v8  ;;  %v1848_v24 = vsel %vm1842_vm10, %v1815_v30, %v5601_v56  ;;  %v1684_v3 = vsel %vm1677_vm4, %v1651_v36, %v8106_v12  ;;  %v8107_v56 = vld [vmem:[#allocation75_spill] sm:$0xff] }
 0x2f2   : > { %v1881_v8 = vsel %vm1875_vm9, %v1848_v24, %v1560_v11  ;;  %v1694_v31 = vsel %vm1677_vm4, %v1661_v49, %v8107_v56  ;;  %v1717_v20 = vsel %vm1710_vm5, %v1684_v3, %v5176_v42  ;;  %v5869_v24 = vpop.permute.xlu2 %1579  ;;  %v4411_v49 = vld [vmem:[#allocation2 + $0x60] sm:$0xff]  ;;  %v4412_v3 = vld [vmem:[#allocation2 + $0xd8] sm:$0xff] }
 0x2f3   : > { %v1727_v11 = vsel %vm1710_vm5, %v1694_v31, %v5172_v40  ;;  %v1750_v7 = vsel %vm1743_vm7, %v1717_v20, %v5302_v26 }
 0x2f4   : > { %v1760_v16 = vsel %vm1743_vm7, %v1727_v11, %v5348_v43  ;;  %v1783_v29 = vsel %vm1776_vm6, %v1750_v7, %v5392_v1  ;;  %v8116_v7 = vld [vmem:[#allocation23_spill] sm:$0xff] }
 0x2f5   : > { %v5789_v51 = vpop.permute.xlu1 %1565  ;;  %v1816_v42 = vsel %vm1809_vm8, %v1783_v29, %v5539_v53  ;;  %v8110_v53 = vld [vmem:[#allocation59_spill] sm:$0xff]  ;;  %v8117_v29 = vld [vmem:[#allocation60_spill] sm:$0xff] }
 0x2f6   : > { %v1849_v26 = vsel %vm1842_vm10, %v1816_v42, %v5633_v62 }
 0x2f7   : > { %v5797_v35 = vpop.permute.xlu0 %1569  ;;  %v1882_v1 = vsel %vm1875_vm9, %v1849_v26, %v1562_v22 }
 0x2f9   : > { %4309 = vmatmul.msk.f32.gmra.mxu0 %vm1917_vm11, %v1880_v14  ;;  %v1793_v14 = vsel %vm1776_vm6, %v1760_v16, %v5466_v52  ;;  %v4409_v52 = vld [vmem:[#allocation2 + $0xc8] sm:$0xff] }
 0x2fa   : > { %v1826_v40 = vsel %vm1809_vm8, %v1793_v14, %v5536_v37  ;;  %v1662_v54 = vsel %vm225_vm0, %v4409_v52, %v8108_v34  ;;  %v8109_v37 = vld [vmem:[#allocation14_spill] sm:$0xff]  ;;  %v1586_v26 = vpop.permute.xlu2 %1585 }
 0x2fb   : > { %v1859_v43 = vsel %vm1842_vm10, %v1826_v40, %v5685_v4  ;;  %v1652_v38 = vsel %vm225_vm0, %v4410_v61, %v8109_v37  ;;  %v8111_v4 = vld [vmem:[#allocation78_spill] sm:$0xff]  ;;  %v8118_v40 = vld [vmem:[#allocation61_spill] sm:$0xff]  ;;  %v8122_v61 = vld [vmem:[#allocation15_spill] sm:$0xff] }
 0x2fc   : > { %v1685_v62 = vsel %vm1677_vm4, %v1652_v38, %v8110_v53  ;;  %v1695_v22 = vsel %vm1677_vm4, %v1662_v54, %v8111_v4  ;;  %v4413_v54 = vld [vmem:[#allocation2 + $0x68] sm:$0xff]  ;;  %v4414_v38 = vld [vmem:[#allocation2 + $0xe0] sm:$0xff]  ;;  %v8123_v53 = vld [vmem:[#allocation31_spill] sm:$0xff] }
 0x2fd   : > { %v5811_v59 = vpop.permute.xlu1 %1571  ;;  %v1718_v23 = vsel %vm1710_vm5, %v1685_v62, %v5136_v21  ;;  %v1728_v30 = vsel %vm1710_vm5, %v1695_v22, %v5214_v57  ;;  %v1654_v37 = vsel %vm225_vm0, %v4413_v54, %v8122_v61  ;;  %v1664_v62 = vsel %vm225_vm0, %v4414_v38, %v8123_v53  ;;  %v8124_v4 = vld [vmem:[#allocation48_spill] sm:$0xff]  ;;  %v8125_v22 = vld [vmem:[#allocation79_spill] sm:$0xff]  ;;  %v8145_v61 = vld [vmem:[#allocation130_spill] sm:$0xff] }
 0x2fe   : > { %v1751_v63 = vsel %vm1743_vm7, %v1718_v23, %v5312_v27  ;;  %v8126_v23 = vld [vmem:[#allocation92_spill] sm:$0xff]  ;;  %v8146_v38 = vld [vmem:[#allocation143_spill] sm:$0xff] }
 0x2ff   : > { %v5817_v44 = vpop.permute.xlu0 %1575  ;;  %v1784_v41 = vsel %vm1776_vm6, %v1751_v63, %v5431_v15 }
 0x300   : > { %v1817_v21 = vsel %vm1809_vm8, %v1784_v41, %v5509_v50  ;;  %v8113_v50 = vld [vmem:[#allocation26_spill] sm:$0xff]  ;;  %v8128_v41 = vld [vmem:[#allocation112_spill] sm:$0xff] }
 0x301   : > { %4310 = vmatmul.msk.f32.gmra.mxu0 %vm1917_vm11, %v1881_v8  ;;  %v1761_v8 = vsel %vm1743_vm7, %v1728_v30, %v5308_v25  ;;  %v1850_v25 = vsel %vm1842_vm10, %v1817_v21, %v5640_v48  ;;  %v1663_v56 = vsel %vm225_vm0, %v4412_v3, %v8113_v50  ;;  %v8115_v48 = vld [vmem:[#allocation63_spill] sm:$0xff] }
 0x302   : > { %v1794_v36 = vsel %vm1776_vm6, %v1761_v8, %v5476_v13  ;;  %v1883_v27 = vsel %vm1875_vm9, %v1850_v25, %v5775_v5  ;;  %v8112_v13 = vld [vmem:[#allocation5_spill] sm:$0xff]  ;;  %v8131_v25 = vld [vmem:[#allocation80_spill] sm:$0xff]  ;;  %v8134_v50 = vld [vmem:[#allocation155_spill] sm:$0xff] }
 0x303   : > { %v1827_v57 = vsel %vm1809_vm8, %v1794_v36, %v5568_v39  ;;  %v1653_v12 = vsel %vm225_vm0, %v4411_v49, %v8112_v13  ;;  %v8114_v39 = vld [vmem:[#allocation62_spill] sm:$0xff]  ;;  %v8127_v8 = vld [vmem:[#allocation93_spill] sm:$0xff] }
 0x304   : > { %v1860_v9 = vsel %vm1842_vm10, %v1827_v57, %v5637_v28  ;;  %v1696_v28 = vsel %vm1677_vm4, %v1663_v56, %v8114_v39  ;;  %v1686_v5 = vsel %vm1677_vm4, %v1653_v12, %v8115_v48  ;;  %v8130_v57 = vld [vmem:[#allocation47_spill] sm:$0xff]  ;;  %v8132_v49 = vld [vmem:[#allocation133_spill] sm:$0xff]  ;;  %v8133_v12 = vld [vmem:[#allocation134_spill] sm:$0xff] }
 0x305   : > { %v5843_v60 = vpop.permute.xlu1 %1577  ;;  %v1719_v31 = vsel %vm1710_vm5, %v1686_v5, %v5178_v47  ;;  %v1729_v11 = vsel %vm1710_vm5, %v1696_v28, %v5226_v58  ;;  %v8120_v47 = vld [vmem:[#allocation142_spill] sm:$0xff]  ;;  %v8121_v58 = vld [vmem:[#allocation151_spill] sm:$0xff] }
 0x306   : > { %v1752_v20 = vsel %vm1743_vm7, %v1719_v31, %v5272_v0  ;;  %v1762_v16 = vsel %vm1743_vm7, %v1729_v11, %v8116_v7  ;;  %v4415_v5 = vld [vmem:[#allocation2 + $0xf0] sm:$0xff]  ;;  %v8135_v31 = vld [vmem:[#allocation16_spill] sm:$0xff]  ;;  %v8136_v7 = vld [vmem:[#allocation17_spill] sm:$0xff] }
 0x307   : > { %v1582_v19 = vpop.permute.xlu0 %1581  ;;  %v1795_v14 = vsel %vm1776_vm6, %v1762_v16, %v8117_v29  ;;  %v1785_v42 = vsel %vm1776_vm6, %v1752_v20, %v8118_v40  ;;  %v1665_v11 = vsel %vm225_vm0, %v4415_v5, %v8135_v31  ;;  %v4416_v20 = vld [vmem:[#allocation2 + $0x78] sm:$0xff]  ;;  %v8139_v40 = vld [vmem:[#allocation90_spill] sm:$0xff]  ;;  %v1592_v5 = vpop.permute.xlu2 %1591  ;;  %v8159_v31 = vld [vmem:[#allocation135_spill] sm:$0xff] }
 0x308   : > { %v1892_v18 = vsel %vm1875_vm9, %v1859_v43, %v1582_v19  ;;  %v8119_v43 = vld [vmem:[#allocation132_spill] sm:$0xff]  ;;  %v1655_v16 = vsel %vm225_vm0, %v4416_v20, %v8136_v7  ;;  %v8160_v20 = vld [vmem:[#allocation145_spill] sm:$0xff] }
 0x309   : > { %4311 = vmatmul.msk.f32.gmra.mxu0 %vm1917_vm11, %v1882_v1  ;;  %4321 = vmatmul.msk.f32.vlgmr.msra.gmra.mxu2 %vm1917_vm11, %v1892_v18  ;;  %v1818_v19 = vsel %vm1809_vm8, %v1785_v42, %v8119_v43  ;;  %v1828_v1 = vsel %vm1809_vm8, %v1795_v14, %v8120_v47  ;;  %v8137_v29 = vld [vmem:[#allocation64_spill] sm:$0xff]  ;;  %v8138_v14 = vld [vmem:[#allocation82_spill] sm:$0xff] }
 0x30a   : > { %v1851_v18 = vsel %vm1842_vm10, %v1818_v19, %v8121_v58  ;;  %v1861_v0 = vsel %vm1842_vm10, %v1828_v1, %v5687_v33  ;;  %v1687_v33 = vsel %vm1677_vm4, %v1654_v37, %v8124_v4  ;;  %v8141_v19 = vld [vmem:[#allocation113_spill] sm:$0xff]  ;;  %v8142_v1 = vld [vmem:[#allocation114_spill] sm:$0xff] }
 0x30b   : > { %v1884_v52 = vsel %vm1875_vm9, %v1851_v18, %v5789_v51  ;;  %v1894_v34 = vsel %vm1875_vm9, %v1861_v0, %v1586_v26  ;;  %v1697_v51 = vsel %vm1677_vm4, %v1664_v62, %v8125_v22  ;;  %v1720_v63 = vsel %vm1710_vm5, %v1687_v33, %v8127_v8  ;;  %v8140_v26 = vld [vmem:[#allocation101_spill] sm:$0xff]  ;;  %v8147_v62 = vld [vmem:[#allocation156_spill] sm:$0xff]  ;;  %v8149_v8 = vld [vmem:[#allocation7_spill] sm:$0xff] }
 0x30c   : > { %v1730_v30 = vsel %vm1710_vm5, %v1697_v51, %v8126_v23  ;;  %v1753_v36 = vsel %vm1743_vm7, %v1720_v63, %v8128_v41  ;;  %v8143_v18 = vld [vmem:[#allocation65_spill] sm:$0xff]  ;;  %v4418_v41 = vld [vmem:[#allocation2 + $0xf8] sm:$0xff] }
 0x30d   : > { %v1584_v2 = vpop.permute.xlu1 %1583  ;;  %v8148_v33 = vld [vmem:[#allocation157_spill] sm:$0xff] }
 0x30e   : > { %v1893_v15 = vsel %vm1875_vm9, %v1860_v9, %v1584_v2  ;;  %v8129_v2 = vld [vmem:[#allocation29_spill] sm:$0xff]  ;;  %v1786_v9 = vsel %vm1776_vm6, %v1753_v36, %v8130_v57  ;;  %v8150_v36 = vld [vmem:[#allocation32_spill] sm:$0xff] }
 0x30f   : > { %v1763_v21 = vsel %vm1743_vm7, %v1730_v30, %v8129_v2  ;;  %v1819_v3 = vsel %vm1809_vm8, %v1786_v9, %v8133_v12  ;;  %v4417_v30 = vld [vmem:[#allocation2 + $0x80] sm:$0xff]  ;;  %v1666_v2 = vsel %vm225_vm0, %v4418_v41, %v8150_v36  ;;  %v8152_v9 = vld [vmem:[#allocation68_spill] sm:$0xff]  ;;  %v8175_v36 = vld [vmem:[#allocation6_spill] sm:$0xff] }
 0x310   : > { %v1852_v56 = vsel %vm1842_vm10, %v1819_v3, %v8134_v50  ;;  %v1656_v63 = vsel %vm225_vm0, %v4417_v30, %v8149_v8  ;;  %v8156_v3 = vld [vmem:[#allocation118_spill] sm:$0xff]  ;;  %v8173_v30 = vld [vmem:[#allocation137_spill] sm:$0xff] }
 0x311   : > { %4312 = vmatmul.msk.f32.gmra.mxu0 %vm1917_vm11, %v1883_v27  ;;  %4322 = vmatmul.msk.f32.gmra.mxu2 %vm1917_vm11, %v1893_v15  ;;  %v1796_v27 = vsel %vm1776_vm6, %v1763_v21, %v8131_v25  ;;  %v1588_v15 = vpop.permute.xlu0 %1587  ;;  %v1885_v28 = vsel %vm1875_vm9, %v1852_v56, %v5795_v32  ;;  %v1698_v32 = vsel %vm1677_vm4, %v1665_v11, %v8138_v14  ;;  %v8151_v21 = vld [vmem:[#allocation67_spill] sm:$0xff]  ;;  %v8153_v25 = vld [vmem:[#allocation94_spill] sm:$0xff] }
 0x312   : > { %v1829_v13 = vsel %vm1809_vm8, %v1796_v27, %v8132_v49  ;;  %v1731_v43 = vsel %vm1710_vm5, %v1698_v32, %v8140_v26  ;;  %v1699_v57 = vsel %vm1677_vm4, %v1666_v2, %v8151_v21  ;;  %v8157_v56 = vld [vmem:[#allocation71_spill] sm:$0xff] }
 0x313   : > { %v1862_v39 = vsel %vm1842_vm10, %v1829_v13, %v5695_v45  ;;  %v1688_v45 = vsel %vm1677_vm4, %v1655_v16, %v8137_v29  ;;  %v1764_v47 = vsel %vm1743_vm7, %v1731_v43, %v8141_v19  ;;  %v8155_v13 = vld [vmem:[#allocation110_spill] sm:$0xff]  ;;  %v8161_v16 = vld [vmem:[#allocation153_spill] sm:$0xff] }
 0x314   : > { %v1895_v48 = vsel %vm1875_vm9, %v1862_v39, %v1588_v15  ;;  %v1721_v42 = vsel %vm1710_vm5, %v1688_v45, %v8139_v40  ;;  %v8154_v15 = vld [vmem:[#allocation103_spill] sm:$0xff]  ;;  %v4420_v43 = vld [vmem:[#allocation2 + $0x108] sm:$0xff] }
 0x315   : > { %v1754_v58 = vsel %vm1743_vm7, %v1721_v42, %v8142_v1  ;;  %v1590_v54 = vpop.permute.xlu1 %1589  ;;  %v1732_v49 = vsel %vm1710_vm5, %v1699_v57, %v8154_v15  ;;  %v4419_v40 = vld [vmem:[#allocation2 + $0x90] sm:$0xff]  ;;  %v8162_v42 = vld [vmem:[#allocation18_spill] sm:$0xff]  ;;  %v8164_v1 = vld [vmem:[#allocation53_spill] sm:$0xff] }
 0x316   : > { %v1787_v0 = vsel %vm1776_vm6, %v1754_v58, %v8143_v18  ;;  %v1765_v50 = vsel %vm1743_vm7, %v1732_v49, %v8156_v3  ;;  %v1657_v26 = vsel %vm225_vm0, %v4419_v40, %v8162_v42  ;;  %v8163_v19 = vld [vmem:[#allocation34_spill] sm:$0xff]  ;;  %v8165_v58 = vld [vmem:[#allocation83_spill] sm:$0xff]  ;;  %v8177_v15 = vld [vmem:[#allocation20_spill] sm:$0xff] }
 0x317   : > { %v1820_v37 = vsel %vm1809_vm8, %v1787_v0, %v8145_v61  ;;  %v1798_v39 = vsel %vm1776_vm6, %v1765_v50, %v8157_v56  ;;  %v8166_v18 = vld [vmem:[#allocation95_spill] sm:$0xff]  ;;  %v8179_v3 = vld [vmem:[#allocation84_spill] sm:$0xff]  ;;  %v8187_v40 = vld [vmem:[#allocation146_spill] sm:$0xff] }
 0x318   : > { %v1853_v22 = vsel %vm1842_vm10, %v1820_v37, %v8148_v33  ;;  %v1831_v7 = vsel %vm1809_vm8, %v1798_v39, %v8160_v20  ;;  %v8169_v37 = vld [vmem:[#allocation36_spill] sm:$0xff]  ;;  %v8180_v50 = vld [vmem:[#allocation91_spill] sm:$0xff]  ;;  %v8184_v20 = vld [vmem:[#allocation70_spill] sm:$0xff] }
 0x319   : > { %4313 = vmatmul.msk.f32.gmra.mxu0 %vm1917_vm11, %v1884_v52  ;;  %4323 = vmatmul.msk.f32.gmra.mxu2 %vm1917_vm11, %v1894_v34  ;;  %v8144_v52 = vld [vmem:[#allocation122_spill] sm:$0xff]  ;;  %v1886_v51 = vsel %vm1875_vm9, %v1853_v22, %v5797_v35  ;;  %v1689_v35 = vsel %vm1677_vm4, %v1656_v63, %v8152_v9  ;;  %v1864_v45 = vsel %vm1842_vm10, %v1831_v7, %v5701_v46  ;;  %v1594_v22 = vpop.permute.xlu0 %1593  ;;  %v4421_v9 = vld [vmem:[#allocation2 + $0x110] sm:$0xff]  ;;  %v8181_v39 = vld [vmem:[#allocation104_spill] sm:$0xff] }
 0x31a   : > { %v1797_v34 = vsel %vm1776_vm6, %v1764_v47, %v8144_v52  ;;  %v1722_v27 = vsel %vm1710_vm5, %v1689_v35, %v8153_v25  ;;  %v1897_v32 = vsel %vm1875_vm9, %v1864_v45, %v1592_v5  ;;  %v1667_v47 = vsel %vm225_vm0, %v4420_v43, %v8163_v19  ;;  %v8167_v52 = vld [vmem:[#allocation96_spill] sm:$0xff]  ;;  %v8174_v63 = vld [vmem:[#allocation158_spill] sm:$0xff]  ;;  %v8176_v35 = vld [vmem:[#allocation19_spill] sm:$0xff] }
 0x31b   : > { %v1830_v53 = vsel %vm1809_vm8, %v1797_v34, %v8146_v38  ;;  %v1755_v12 = vsel %vm1743_vm7, %v1722_v27, %v8155_v13  ;;  %v1690_v46 = vsel %vm1677_vm4, %v1657_v26, %v8164_v1  ;;  %v1668_v25 = vsel %vm225_vm0, %v4421_v9, %v8176_v35  ;;  %v4422_v27 = vld [vmem:[#allocation2 + $0x98] sm:$0xff]  ;;  %v8178_v13 = vld [vmem:[#allocation69_spill] sm:$0xff]  ;;  %v8188_v26 = vld [vmem:[#allocation159_spill] sm:$0xff]  ;;  %v1598_v9 = vpop.permute.xlu2 %1597 }
 0x31c   : > { %v1863_v4 = vsel %vm1842_vm10, %v1830_v53, %v8147_v62  ;;  %v1723_v34 = vsel %vm1710_vm5, %v1690_v46, %v8167_v52  ;;  %v8170_v53 = vld [vmem:[#allocation52_spill] sm:$0xff]  ;;  %v1658_v49 = vsel %vm225_vm0, %v4422_v27, %v8177_v15  ;;  %v4424_v52 = vld [vmem:[#allocation2 + $0x120] sm:$0xff]  ;;  %v8200_v35 = vld [vmem:[#allocation138_spill] sm:$0xff] }
 0x31d   : > { %v1896_v23 = vsel %vm1875_vm9, %v1863_v4, %v1590_v54  ;;  %v8168_v54 = vld [vmem:[#allocation115_spill] sm:$0xff]  ;;  %v1596_v45 = vpop.permute.xlu1 %1595  ;;  %v8189_v19 = vld [vmem:[#allocation160_spill] sm:$0xff] }
 0x31e   : > { %v1756_v61 = vsel %vm1743_vm7, %v1723_v34, %v8168_v54  ;;  %v8171_v4 = vld [vmem:[#allocation123_spill] sm:$0xff] }
 0x31f   : > { %v1789_v62 = vsel %vm1776_vm6, %v1756_v61, %v8170_v53  ;;  %v8191_v34 = vld [vmem:[#allocation35_spill] sm:$0xff]  ;;  %v8194_v53 = vld [vmem:[#allocation97_spill] sm:$0xff] }
 0x320   : > { %v1822_v8 = vsel %vm1809_vm8, %v1789_v62, %v8173_v30  ;;  %v1669_v54 = vsel %vm225_vm0, %v4424_v52, %v8191_v34  ;;  %v8201_v27 = vld [vmem:[#allocation147_spill] sm:$0xff]  ;;  %v8214_v52 = vld [vmem:[#allocation140_spill] sm:$0xff] }
 0x321   : > { %4314 = vmatmul.msk.f32.gmra.mxu0 %vm1917_vm11, %v1885_v28  ;;  %4324 = vmatmul.msk.f32.gmra.mxu2 %vm1917_vm11, %v1895_v48  ;;  %v8158_v28 = vld [vmem:[#allocation66_spill] sm:$0xff]  ;;  %v1855_v41 = vsel %vm1842_vm10, %v1822_v8, %v8174_v63  ;;  %v8197_v8 = vld [vmem:[#allocation119_spill] sm:$0xff] }
 0x322   : > { %v1788_v48 = vsel %vm1776_vm6, %v1755_v12, %v8158_v28  ;;  %v1888_v21 = vsel %vm1875_vm9, %v1855_v41, %v5824_v17  ;;  %v1691_v12 = vsel %vm1677_vm4, %v1658_v49, %v8178_v13  ;;  %v1701_v17 = vsel %vm1677_vm4, %v1668_v25, %v8179_v3  ;;  %v8202_v13 = vld [vmem:[#allocation154_spill] sm:$0xff] }
 0x323   : > { %v1821_v11 = vsel %vm1809_vm8, %v1788_v48, %v8159_v31  ;;  %v1724_v56 = vsel %vm1710_vm5, %v1691_v12, %v8180_v50  ;;  %v1734_v28 = vsel %vm1710_vm5, %v1701_v17, %v8181_v39  ;;  %v8182_v48 = vld [vmem:[#allocation116_spill] sm:$0xff]  ;;  %v8183_v31 = vld [vmem:[#allocation22_spill] sm:$0xff]  ;;  %v4425_v39 = vld [vmem:[#allocation2 + $0xb0] sm:$0xff] }
 0x324   : > { %v1854_v29 = vsel %vm1842_vm10, %v1821_v11, %v8161_v16  ;;  %v1767_v5 = vsel %vm1743_vm7, %v1734_v28, %v8182_v48  ;;  %v1757_v11 = vsel %vm1743_vm7, %v1724_v56, %v8183_v31  ;;  %v8185_v16 = vld [vmem:[#allocation124_spill] sm:$0xff]  ;;  %v8203_v28 = vld [vmem:[#allocation21_spill] sm:$0xff]  ;;  %v8204_v31 = vld [vmem:[#allocation39_spill] sm:$0xff] }
 0x325   : > { %v1887_v14 = vsel %vm1875_vm9, %v1854_v29, %v5811_v59  ;;  %v1700_v59 = vsel %vm1677_vm4, %v1667_v47, %v8165_v58  ;;  %v1790_v7 = vsel %vm1776_vm6, %v1757_v11, %v8184_v20  ;;  %v1800_v29 = vsel %vm1776_vm6, %v1767_v5, %v8185_v16  ;;  %v6091_v58 = vld [vmem:[%s7827_s2] ss:$0 sm:$0xff]  ;;  %v4426_v5 = vld [vmem:[#allocation2 + $0x128] sm:$0xff] }
 0x326   : > { %v1733_v0 = vsel %vm1710_vm5, %v1700_v59, %v8166_v18  ;;  %v1833_v42 = vsel %vm1809_vm8, %v1800_v29, %v8187_v40  ;;  %v4423_v59 = vld [vmem:[#allocation2 + $0xa8] sm:$0xff]  ;;  %v1660_v48 = vsel %vm225_vm0, %v4425_v39, %v8203_v28  ;;  %v1670_v11 = vsel %vm225_vm0, %v4426_v5, %v8204_v31  ;;  %v8209_v40 = vld [vmem:[#allocation117_spill] sm:$0xff]  ;;  %v1604_v39 = vpop.permute.xlu2 %1603 }
 0x327   : > { %v1766_v38 = vsel %vm1743_vm7, %v1733_v0, %v8169_v37  ;;  %v1866_v43 = vsel %vm1842_vm10, %v1833_v42, %v8188_v26  ;;  %v8190_v18 = vld [vmem:[#allocation10_spill] sm:$0xff]  ;;  %v8210_v26 = vld [vmem:[#allocation37_spill] sm:$0xff] }
 0x328   : > { %v1799_v33 = vsel %vm1776_vm6, %v1766_v38, %v8171_v4  ;;  %v1899_v46 = vsel %vm1875_vm9, %v1866_v43, %v1596_v45  ;;  %v1659_v0 = vsel %vm225_vm0, %v4423_v59, %v8190_v18  ;;  %v8193_v37 = vld [vmem:[#allocation74_spill] sm:$0xff]  ;;  %v8195_v4 = vld [vmem:[#allocation105_spill] sm:$0xff]  ;;  %v8208_v45 = vld [vmem:[#allocation99_spill] sm:$0xff]  ;;  %v1600_v59 = vpop.permute.xlu0 %1599 }
 0x329   : > { %4315 = vmatmul.msk.f32.gmra.mxu0 %vm1917_vm11, %v1886_v51  ;;  %4325 = vmatmul.msk.f32.gmra.mxu2 %vm1917_vm11, %v1896_v23  ;;  %v8172_v51 = vld [vmem:[#allocation136_spill] sm:$0xff]  ;;  %v1692_v38 = vsel %vm1677_vm4, %v1659_v0, %v8193_v37  ;;  %v8207_v16 = vld [vmem:[#allocation98_spill] sm:$0xff]  ;;  %v8213_v18 = vld [vmem:[#allocation139_spill] sm:$0xff] }
 0x32a   : > { %v1832_v23 = vsel %vm1809_vm8, %v1799_v33, %v8172_v51  ;;  %v1725_v62 = vsel %vm1710_vm5, %v1692_v38, %v8194_v53  ;;  %v2291_v51 = vld [vmem:[#allocation2 + $0x1] sm:$0xff] }
 0x32b   : > { %v1865_v2 = vsel %vm1842_vm10, %v1832_v23, %v8175_v36  ;;  %v8196_v23 = vld [vmem:[#allocation111_spill] sm:$0xff]  ;;  %2579 = vrot.lane.b32.xlu1 %v2291_v51, %s4454_s24  ;;  %v8198_v36 = vld [vmem:[#allocation72_spill] sm:$0xff]  ;;  %v8228_v28 = vld [vmem:[#allocation149_spill] sm:$0xff] }
 0x32c   : > { %v1898_v57 = vsel %vm1875_vm9, %v1865_v2, %v1594_v22  ;;  %v1758_v30 = vsel %vm1743_vm7, %v1725_v62, %v8196_v23  ;;  %v4427_v62 = vld [vmem:[#allocation2 + $0x138] sm:$0xff]  ;;  %v8229_v31 = vld [vmem:[#allocation33_spill] sm:$0xff] }
 0x331   : > { %4316 = vmatmul.msk.f32.gmra.mxu0 %vm1917_vm11, %v1887_v14  ;;  %4326 = vmatmul.msk.f32.gmra.mxu2 %vm1917_vm11, %v1897_v32  ;;  %v8186_v14 = vld [vmem:[#allocation131_spill] sm:$0xff] }
 0x332   : > { %v1823_v32 = vsel %vm1809_vm8, %v1790_v7, %v8186_v14 }
 0x333   : > { %v1856_v47 = vsel %vm1842_vm10, %v1823_v32, %v8189_v19  ;;  %v2292_v32 = vld [vmem:[#allocation2 + $0x9] sm:$0xff]  ;;  %v8211_v19 = vld [vmem:[#allocation56_spill] sm:$0xff] }
 0x334   : > { %v1889_v1 = vsel %vm1875_vm9, %v1856_v47, %v5817_v44  ;;  %v8192_v44 = vld [vmem:[#allocation73_spill] sm:$0xff]  ;;  %2581 = vrot.lane.b32.xlu2 %v2292_v32, %s4454_s24  ;;  %v8232_v32 = vld [vmem:[#allocation100_spill] sm:$0xff] }
 0x335   : > { %v1702_v61 = vsel %vm1677_vm4, %v1669_v54, %v8192_v44  ;;  %v8215_v54 = vld [vmem:[#allocation161_spill] sm:$0xff] }
 0x336   : > { %v1735_v33 = vsel %vm1710_vm5, %v1702_v61, %v8195_v4  ;;  %v8216_v4 = vld [vmem:[#allocation24_spill] sm:$0xff] }
 0x337   : > { %v1768_v63 = vsel %vm1743_vm7, %v1735_v33, %v8197_v8  ;;  %v1671_v33 = vsel %vm225_vm0, %v4427_v62, %v8216_v4  ;;  %v8220_v8 = vld [vmem:[#allocation126_spill] sm:$0xff]  ;;  %v8239_v4 = vld [vmem:[#allocation108_spill] sm:$0xff] }
 0x338   : > { %v1801_v2 = vsel %vm1776_vm6, %v1768_v63, %v8198_v36  ;;  %v8221_v36 = vld [vmem:[#allocation148_spill] sm:$0xff] }
 0x339   : > { %4317 = vmatmul.msk.f32.gmra.mxu0 %vm1917_vm11, %v1888_v21  ;;  %4327 = vmatmul.msk.f32.gmra.mxu2 %vm1917_vm11, %v1898_v57  ;;  %v8199_v21 = vld [vmem:[#allocation76_spill] sm:$0xff]  ;;  %v1834_v15 = vsel %vm1809_vm8, %v1801_v2, %v8201_v27 }
 0x33a   : > { %v1791_v57 = vsel %vm1776_vm6, %v1758_v30, %v8199_v21  ;;  %v1867_v3 = vsel %vm1842_vm10, %v1834_v15, %v5717_v10  ;;  %v8205_v10 = vld [vmem:[#allocation57_spill] sm:$0xff]  ;;  %v8222_v21 = vld [vmem:[#allocation162_spill] sm:$0xff] }
 0x33b   : > { %v1824_v25 = vsel %vm1809_vm8, %v1791_v57, %v8200_v35  ;;  %v1900_v56 = vsel %vm1875_vm9, %v1867_v3, %v1598_v9  ;;  %v1693_v20 = vsel %vm1677_vm4, %v1660_v48, %v8205_v10  ;;  %v4428_v35 = vld [vmem:[#allocation2 + $0x140] sm:$0xff] }
 0x33c   : > { %v1857_v12 = vsel %vm1842_vm10, %v1824_v25, %v8202_v13  ;;  %v1726_v14 = vsel %vm1710_vm5, %v1693_v20, %v8208_v45  ;;  %v8223_v25 = vld [vmem:[#allocation40_spill] sm:$0xff]  ;;  %v8224_v15 = vld [vmem:[#allocation77_spill] sm:$0xff]  ;;  %v8225_v13 = vld [vmem:[#allocation107_spill] sm:$0xff] }
 0x33d   : > { %v1890_v50 = vsel %vm1875_vm9, %v1857_v12, %v5843_v60  ;;  %v8206_v60 = vld [vmem:[#allocation85_spill] sm:$0xff]  ;;  %v1759_v42 = vsel %vm1743_vm7, %v1726_v14, %v8209_v40  ;;  %v1672_v27 = vsel %vm225_vm0, %v4428_v35, %v8223_v25  ;;  %v8231_v45 = vld [vmem:[#allocation87_spill] sm:$0xff]  ;;  %v4431_v35 = vld [vmem:[#allocation2 + $0x168] sm:$0xff] }
 0x33e   : > { %v1703_v7 = vsel %vm1677_vm4, %v1670_v11, %v8206_v60  ;;  %v1792_v47 = vsel %vm1776_vm6, %v1759_v42, %v8211_v19  ;;  %v8226_v3 = vld [vmem:[#allocation41_spill] sm:$0xff]  ;;  %v4429_v60 = vld [vmem:[#allocation2 + $0x150] sm:$0xff] }
 0x33f   : > { %v1736_v29 = vsel %vm1710_vm5, %v1703_v7, %v8207_v16  ;;  %v1825_v34 = vsel %vm1809_vm8, %v1792_v47, %v8214_v52  ;;  %v8230_v7 = vld [vmem:[#allocation44_spill] sm:$0xff]  ;;  %v8234_v19 = vld [vmem:[#allocation127_spill] sm:$0xff]  ;;  %v8244_v25 = vld [vmem:[#allocation45_spill] sm:$0xff] }
 0x340   : > { %v1769_v43 = vsel %vm1743_vm7, %v1736_v29, %v8210_v26  ;;  %v1858_v44 = vsel %vm1842_vm10, %v1825_v34, %v8215_v54  ;;  %v1673_v16 = vsel %vm225_vm0, %v4429_v60, %v8230_v7  ;;  %v8233_v26 = vld [vmem:[#allocation42_spill] sm:$0xff] }
 0x341   : > { %4318 = vmatmul.msk.f32.gmra.mxu0 %vm1917_vm11, %v1889_v1  ;;  %4328 = vmatmul.msk.f32.gmra.mxu2 %vm1917_vm11, %v1899_v46  ;;  %v8212_v1 = vld [vmem:[#allocation125_spill] sm:$0xff]  ;;  %v1891_v37 = vsel %vm1875_vm9, %v1858_v44, %v5869_v24  ;;  %v8219_v24 = vld [vmem:[#allocation28_spill] sm:$0xff]  ;;  %v1706_v14 = vsel %vm1677_vm4, %v1673_v16, %v8231_v45 }
 0x342   : > { %v1802_v46 = vsel %vm1776_vm6, %v1769_v43, %v8212_v1  ;;  %v1739_v40 = vsel %vm1710_vm5, %v1706_v14, %v8232_v32  ;;  %v1606_v1 = vpop.permute.xlu0 %1605  ;;  %v4430_v44 = vld [vmem:[#allocation2 + $0x158] sm:$0xff]  ;;  %v8251_v45 = vld [vmem:[#allocation49_spill] sm:$0xff] }
 0x343   : > { %v2035_v22 = vpop.f32.mrf.mxu0  ;;  %v1835_v0 = vsel %vm1809_vm8, %v1802_v46, %v8213_v18  ;;  %v1772_v43 = vsel %vm1743_vm7, %v1739_v40, %v8233_v26  ;;  %v8235_v46 = vld [vmem:[#allocation141_spill] sm:$0xff]  ;;  %v8253_v26 = vld [vmem:[#allocation102_spill] sm:$0xff] }
 0x344   : > { %v2036_v41 = vadd.f32 %v6091_v58, %v2035_v22  ;;  %v1868_v61 = vsel %vm1842_vm10, %v1835_v0, %v5719_v55  ;;  %v8217_v22 = vld [vmem:[#allocation86_spill] sm:$0xff]  ;;  %v1805_v47 = vsel %vm1776_vm6, %v1772_v43, %v8234_v19  ;;  %v8236_v0 = vld [vmem:[#allocation164_spill] sm:$0xff]  ;;  %v8252_v40 = vld [vmem:[#allocation89_spill] sm:$0xff] }
 0x345   : > { %v1901_v38 = vsel %vm1875_vm9, %v1868_v61, %v1600_v59  ;;  %v1704_v51 = vsel %vm1677_vm4, %v1671_v33, %v8217_v22  ;;  %v8218_v55 = vld [vmem:[#allocation106_spill] sm:$0xff]  ;;  %v1838_v59 = vsel %vm1809_vm8, %v1805_v47, %v8235_v46 }
 0x346   : > { %vm2131_vm12 = vcmp.ge.f32.partialorder %v2036_v41, 0.0  ;;  %v2163_v49 = vmul.f32 0.1, %v2036_v41  ;;  %v1737_v23 = vsel %vm1710_vm5, %v1704_v51, %v8218_v55  ;;  %v1871_v52 = vsel %vm1842_vm10, %v1838_v59, %v8236_v0  ;;  %v8237_v61 = vld [vmem:[#allocation30_spill] sm:$0xff]  ;;  %v8240_v55 = vld [vmem:[#allocation27_spill] sm:$0xff]  ;;  %v8255_v59 = vld [vmem:[#allocation129_spill] sm:$0xff] }
 0x347   : > { %v1770_v30 = vsel %vm1743_vm7, %v1737_v23, %v8219_v24  ;;  %v1904_v54 = vsel %vm1875_vm9, %v1871_v52, %v1606_v1  ;;  %v8241_v24 = vld [vmem:[#allocation128_spill] sm:$0xff]  ;;  %v8254_v1 = vld [vmem:[#allocation51_spill] sm:$0xff] }
 0x348   : > { %v2195_v17 = vsel %vm2131_vm12, %v2036_v41, %v2163_v49  ;;  %v1803_v63 = vsel %vm1776_vm6, %v1770_v30, %v8220_v8  ;;  %v1602_v41 = vpop.permute.xlu1 %1601  ;;  %v1705_v49 = vsel %vm1677_vm4, %v1672_v27, %v8224_v15  ;;  %v1675_v27 = vsel %vm225_vm0, %v4431_v35, %v8244_v25  ;;  %v8256_v52 = vld [vmem:[#allocation144_spill] sm:$0xff] }
 0x349   : > { %2227 = vst.msk [vmem:[#allocation2 + $0x19] sm:$0xff] %vm225_vm0, %v2195_v17  ;;  %4319 = vmatmul.msk.f32.gmra.mxu0 %vm1917_vm11, %v1890_v50  ;;  %4329 = vmatmul.msk.f32.gmra.mxu2 %vm1917_vm11, %v1900_v56  ;;  %v1836_v2 = vsel %vm1809_vm8, %v1803_v63, %v8221_v36  ;;  %v1738_v12 = vsel %vm1710_vm5, %v1705_v49, %v8225_v13  ;;  %v8227_v50 = vld [vmem:[#allocation120_spill] sm:$0xff]  ;;  %v8242_v63 = vld [vmem:[#allocation150_spill] sm:$0xff]  ;;  %v8245_v49 = vld [vmem:[#allocation81_spill] sm:$0xff] }
 0x34a   : > { %v1869_v57 = vsel %vm1842_vm10, %v1836_v2, %v8222_v21  ;;  %v1771_v17 = vsel %vm1743_vm7, %v1738_v12, %v8226_v3  ;;  %v8243_v2 = vld [vmem:[#allocation163_spill] sm:$0xff]  ;;  %v1708_v13 = vsel %vm1677_vm4, %v1675_v27, %v8245_v49  ;;  %v8246_v12 = vld [vmem:[#allocation109_spill] sm:$0xff]  ;;  %v1612_v0 = vpop.permute.xlu0 %1611 }
 0x34b   : > { %v1902_v9 = vsel %vm1875_vm9, %v1869_v57, %v1602_v41  ;;  %v1804_v56 = vsel %vm1776_vm6, %v1771_v17, %v8227_v50  ;;  %v1741_v3 = vsel %vm1710_vm5, %v1708_v13, %v8246_v12 }
 0x34c   : > { %v1837_v48 = vsel %vm1809_vm8, %v1804_v56, %v8228_v28  ;;  %v8247_v56 = vld [vmem:[#allocation46_spill] sm:$0xff]  ;;  %v8248_v28 = vld [vmem:[#allocation121_spill] sm:$0xff] }
 0x34d   : > { %v1870_v11 = vsel %vm1842_vm10, %v1837_v48, %v8229_v31  ;;  %v8249_v31 = vld [vmem:[#allocation152_spill] sm:$0xff] }
 0x34e   : > { %v1903_v20 = vsel %vm1875_vm9, %v1870_v11, %v1604_v39  ;;  %v1774_v39 = vsel %vm1743_vm7, %v1741_v3, %v8247_v56 }
 0x34f   : > { %v1807_v48 = vsel %vm1776_vm6, %v1774_v39, %v8248_v28 }
 0x350   : > { %v2293_v53 = vld [vmem:[#allocation2 + $0x19] sm:$0xff]  ;;  %v1608_v8 = vpop.permute.xlu1 %1607  ;;  %v1840_v11 = vsel %vm1809_vm8, %v1807_v48, %v8249_v31 }
 0x351   : > { %4320 = vmatmul.msk.f32.gmra.mxu0 %vm1917_vm11, %v1891_v37  ;;  %4330 = vmatmul.msk.f32.gmra.mxu2 %vm1917_vm11, %v1901_v38  ;;  %v1674_v37 = vsel %vm225_vm0, %v4430_v44, %v8237_v61 }
 0x352   : > { %2583 = vrot.lane.b32.xlu0 %v2293_v53, %s4454_s24  ;;  %v8238_v53 = vld [vmem:[#allocation88_spill] sm:$0xff] }
 0x353   : > { %v1707_v62 = vsel %vm1677_vm4, %v1674_v37, %v8238_v53 }
 0x354   : > { %v1740_v33 = vsel %vm1710_vm5, %v1707_v62, %v8239_v4 }
 0x355   : > { %v1773_v23 = vsel %vm1743_vm7, %v1740_v33, %v8240_v55 }
 0x356   : > { %v1806_v30 = vsel %vm1776_vm6, %v1773_v23, %v8241_v24 }
 0x357   : > { %v1839_v41 = vsel %vm1809_vm8, %v1806_v30, %v8242_v63 }
 0x358   : > { %v1872_v21 = vsel %vm1842_vm10, %v1839_v41, %v8243_v2 }
 0x359   : > { %4331 = vmatmul.msk.f32.gmra.mxu2 %vm1917_vm11, %v1902_v9  ;;  %v1905_v9 = vsel %vm1875_vm9, %v1872_v21, %v1608_v8 }
 0x35e   : > { %v2038_v5 = vpop.f32.mrf.mxu0 }
 0x35f   : > { %v2039_v10 = vadd.f32 %v6091_v58, %v2038_v5  ;;  %v1610_v5 = vpop.permute.xlu2 %1609 }
 0x361   : > { %vm2132_vm13 = vcmp.ge.f32.partialorder %v2039_v10, 0.0  ;;  %v2164_v29 = vmul.f32 0.1, %v2039_v10  ;;  %4332 = vmatmul.msk.f32.gmra.mxu2 %vm1917_vm11, %v1903_v20  ;;  %v8250_v20 = vld [vmem:[#allocation165_spill] sm:$0xff] }
 0x362   : > { %v1873_v60 = vsel %vm1842_vm10, %v1840_v11, %v8250_v20 }
 0x363   : > { %v2196_v42 = vsel %vm2132_vm13, %v2039_v10, %v2164_v29  ;;  %v1906_v16 = vsel %vm1875_vm9, %v1873_v60, %v1610_v5  ;;  %v4432_v29 = vld [vmem:[#allocation2 + $0x170] sm:$0xff] }
 0x364   : > { %2228 = vst.msk [vmem:[#allocation2 + $0x21] sm:$0xff] %vm225_vm0, %v2196_v42  ;;  %v1676_v14 = vsel %vm225_vm0, %v4432_v29, %v8251_v45 }
 0x365   : > { %v1709_v42 = vsel %vm1677_vm4, %v1676_v14, %v8252_v40 }
 0x366   : > { %v2041_v18 = vpop.f32.mrf.mxu0  ;;  %v1742_v43 = vsel %vm1710_vm5, %v1709_v42, %v8253_v26 }
 0x367   : > { %v2042_v34 = vadd.f32 %v6091_v58, %v2041_v18  ;;  %v1775_v46 = vsel %vm1743_vm7, %v1742_v43, %v8254_v1 }
 0x368   : > { %v1808_v18 = vsel %vm1776_vm6, %v1775_v46, %v8255_v59 }
 0x369   : > { %vm2133_vm14 = vcmp.ge.f32.partialorder %v2042_v34, 0.0  ;;  %v2165_v38 = vmul.f32 0.1, %v2042_v34  ;;  %4333 = vmatmul.msk.f32.gmra.mxu2 %vm1917_vm11, %v1904_v54 }
 0x36b   : > { %v2197_v22 = vsel %vm2133_vm14, %v2042_v34, %v2165_v38  ;;  %v2294_v51 = vld [vmem:[#allocation2 + $0x21] sm:$0xff]  ;;  %v1841_v34 = vsel %vm1809_vm8, %v1808_v18, %v8256_v52 }
 0x36c   : > { %2229 = vst.msk [vmem:[#allocation2 + $0x31] sm:$0xff] %vm225_vm0, %v2197_v22  ;;  %2585 = vrot.lane.b32.xlu1 %v2294_v51, %s4454_s24  ;;  %v1874_v44 = vsel %vm1842_vm10, %v1841_v34, %v5737_v6 }
 0x36d   : > { %v1907_v37 = vsel %vm1875_vm9, %v1874_v44, %v1612_v0 }
 0x36e   : > { %v2044_v36 = vpop.f32.mrf.mxu0 }
 0x36f   : > { %v2045_v57 = vadd.f32 %v6091_v58, %v2044_v36 }
 0x371   : > { %vm2134_vm15 = vcmp.ge.f32.partialorder %v2045_v57, 0.0  ;;  %v2166_v15 = vmul.f32 0.1, %v2045_v57  ;;  %4334 = vmatmul.msk.f32.gmra.mxu2 %vm1917_vm11, %v1905_v9 }
 0x373   : > { %v2198_v17 = vsel %vm2134_vm15, %v2045_v57, %v2166_v15  ;;  %v6242_v50 = vld [vmem:[#allocation2 + $0x31] sm:$0xff] }
 0x374   : > { %2230 = vst.msk [vmem:[#allocation2 + $0x39] sm:$0xff] %vm225_vm0, %v2198_v17  ;;  %2587 = vrot.lane.b32.xlu2 %v6242_v50, %s4454_s24 }
 0x376   : > { %v2047_v10 = vpop.f32.mrf.mxu0 }
 0x377   : > { %v2048_v7 = vadd.f32 %v6091_v58, %v2047_v10 }
 0x379   : > { %vm2135_vm1 = vcmp.ge.f32.partialorder %v2048_v7, 0.0  ;;  %v2167_v32 = vmul.f32 0.1, %v2048_v7  ;;  %4335 = vmatmul.msk.f32.gmra.mxu2 %vm1917_vm11, %v1906_v16 }
 0x37b   : > { %v2199_v19 = vsel %vm2135_vm1, %v2048_v7, %v2167_v32  ;;  %v6264_v47 = vld [vmem:[#allocation2 + $0x39] sm:$0xff] }
 0x37c   : > { %2231 = vst.msk [vmem:[#allocation2 + $0x49] sm:$0xff] %vm225_vm0, %v2199_v19  ;;  %2589 = vrot.lane.b32.xlu0 %v6264_v47, %s4454_s24 }
 0x37e   : > { %v2050_v54 = vpop.f32.mrf.mxu0 }
 0x37f   : > { %v2051_v61 = vadd.f32 %v6091_v58, %v2050_v54 }
 0x381   : > { %vm2136_vm2 = vcmp.ge.f32.partialorder %v2051_v61, 0.0  ;;  %v2168_v38 = vmul.f32 0.1, %v2051_v61  ;;  %4336 = vmatmul.msk.f32.gmra.mxu2 %vm1917_vm11, %v1907_v37 }
 0x383   : > { %v2200_v53 = vsel %vm2136_vm2, %v2051_v61, %v2168_v38  ;;  %v6280_v62 = vld [vmem:[#allocation2 + $0x49] sm:$0xff] }
 0x384   : > { %2232 = vst.msk [vmem:[#allocation2 + $0x51] sm:$0xff] %vm225_vm0, %v2200_v53  ;;  %2591 = vrot.lane.b32.xlu1 %v6280_v62, %s4454_s24 }
 0x386   : > { %v2053_v4 = vpop.f32.mrf.mxu0 }
 0x387   : > { %v2054_v33 = vadd.f32 %v6091_v58, %v2053_v4 }
 0x389   : > { %vm2137_vm12 = vcmp.ge.f32.partialorder %v2054_v33, 0.0  ;;  %v2169_v6 = vmul.f32 0.1, %v2054_v33 }
 0x38b   : > { %v2201_v22 = vsel %vm2137_vm12, %v2054_v33, %v2169_v6  ;;  %v6286_v51 = vld [vmem:[#allocation2 + $0x51] sm:$0xff] }
 0x38c   : > { %2233 = vst.msk [vmem:[#allocation2 + $0x61] sm:$0xff] %vm225_vm0, %v2201_v22  ;;  %v2083_v55 = vpop.f32.mrf.mxu2  ;;  %2593 = vrot.lane.b32.xlu2 %v6286_v51, %s4454_s24 }
 0x38d   : > { %v2084_v23 = vadd.f32 %v6091_v58, %v2083_v55 }
 0x38e   : > { %v2056_v24 = vpop.f32.mrf.mxu0 }
 0x38f   : > { %vm2147_vm13 = vcmp.ge.f32.partialorder %v2084_v23, 0.0  ;;  %v2179_v30 = vmul.f32 0.1, %v2084_v23  ;;  %v2057_v8 = vadd.f32 %v6091_v58, %v2056_v24 }
 0x391   : > { %v2211_v63 = vsel %vm2147_vm13, %v2084_v23, %v2179_v30  ;;  %vm2138_vm14 = vcmp.ge.f32.partialorder %v2057_v8, 0.0  ;;  %v2170_v41 = vmul.f32 0.1, %v2057_v8 }
 0x392   : > { %2243 = vst.msk [vmem:[#allocation2 + $0xd9] sm:$0xff] %vm225_vm0, %v2211_v63 }
 0x393   : > { %v2202_v36 = vsel %vm2138_vm14, %v2057_v8, %v2170_v41  ;;  %v6294_v2 = vld [vmem:[#allocation2 + $0x61] sm:$0xff] }
 0x394   : > { %2234 = vst.msk [vmem:[#allocation2 + $0x69] sm:$0xff] %vm225_vm0, %v2202_v36  ;;  %v2086_v21 = vpop.f32.mrf.mxu2  ;;  %2595 = vrot.lane.b32.xlu0 %v6294_v2, %s4454_s24 }
 0x395   : > { %v2087_v57 = vadd.f32 %v6091_v58, %v2086_v21 }
 0x396   : > { %v2059_v9 = vpop.f32.mrf.mxu0 }
 0x397   : > { %vm2148_vm15 = vcmp.ge.f32.partialorder %v2087_v57, 0.0  ;;  %v2180_v35 = vmul.f32 0.1, %v2087_v57  ;;  %v2060_v25 = vadd.f32 %v6091_v58, %v2059_v9 }
 0x399   : > { %v2212_v27 = vsel %vm2148_vm15, %v2087_v57, %v2180_v35  ;;  %vm2139_vm1 = vcmp.ge.f32.partialorder %v2060_v25, 0.0  ;;  %v2171_v15 = vmul.f32 0.1, %v2060_v25 }
 0x39a   : > { %2244 = vst.msk [vmem:[#allocation2 + $0xe1] sm:$0xff] %vm225_vm0, %v2212_v27 }
 0x39b   : > { %v2203_v49 = vsel %vm2139_vm1, %v2060_v25, %v2171_v15  ;;  %v6302_v13 = vld [vmem:[#allocation2 + $0x69] sm:$0xff] }
 0x39c   : > { %2235 = vst.msk [vmem:[#allocation2 + $0x79] sm:$0xff] %vm225_vm0, %v2203_v49  ;;  %v2089_v12 = vpop.f32.mrf.mxu2  ;;  %2597 = vrot.lane.b32.xlu1 %v6302_v13, %s4454_s24 }
 0x39d   : > { %v2090_v3 = vadd.f32 %v6091_v58, %v2089_v12 }
 0x39e   : > { %v2062_v17 = vpop.f32.mrf.mxu0 }
 0x39f   : > { %vm2149_vm2 = vcmp.ge.f32.partialorder %v2090_v3, 0.0  ;;  %v2181_v56 = vmul.f32 0.1, %v2090_v3  ;;  %v2063_v39 = vadd.f32 %v6091_v58, %v2062_v17 }
 0x3a1   : > { %v2213_v28 = vsel %vm2149_vm2, %v2090_v3, %v2181_v56  ;;  %vm2140_vm12 = vcmp.ge.f32.partialorder %v2063_v39, 0.0  ;;  %v2172_v48 = vmul.f32 0.1, %v2063_v39 }
 0x3a2   : > { %2245 = vst.msk [vmem:[#allocation2 + $0xf1] sm:$0xff] %vm225_vm0, %v2213_v28  ;;  %v6358_v28 = vld [vmem:[#allocation2 + $0xd9] sm:$0xff] }
 0x3a3   : > { %v2204_v5 = vsel %vm2140_vm12, %v2063_v39, %v2172_v48  ;;  %v6310_v31 = vld [vmem:[#allocation2 + $0x79] sm:$0xff] }
 0x3a4   : > { %2236 = vst.msk [vmem:[#allocation2 + $0x81] sm:$0xff] %vm225_vm0, %v2204_v5  ;;  %v2092_v11 = vpop.f32.mrf.mxu2  ;;  %2599 = vrot.lane.b32.xlu2 %v6310_v31, %s4454_s24 }
 0x3a5   : > { %v2093_v10 = vadd.f32 %v6091_v58, %v2092_v11 }
 0x3a6   : > { %v2065_v20 = vpop.f32.mrf.mxu0 }
 0x3a7   : > { %vm2150_vm13 = vcmp.ge.f32.partialorder %v2093_v10, 0.0  ;;  %v2182_v60 = vmul.f32 0.1, %v2093_v10  ;;  %v2066_v7 = vadd.f32 %v6091_v58, %v2065_v20 }
 0x3a9   : > { %v2214_v16 = vsel %vm2150_vm13, %v2093_v10, %v2182_v60  ;;  %vm2141_vm14 = vcmp.ge.f32.partialorder %v2066_v7, 0.0  ;;  %v2173_v29 = vmul.f32 0.1, %v2066_v7 }
 0x3aa   : > { %2246 = vst.msk [vmem:[#allocation2 + $0xf9] sm:$0xff] %vm225_vm0, %v2214_v16 }
 0x3ab   : > { %v2205_v45 = vsel %vm2141_vm14, %v2066_v7, %v2173_v29  ;;  %v6318_v14 = vld [vmem:[#allocation2 + $0x81] sm:$0xff] }
 0x3ac   : > { %2237 = vst.msk [vmem:[#allocation2 + $0x91] sm:$0xff] %vm225_vm0, %v2205_v45  ;;  %v2095_v32 = vpop.f32.mrf.mxu2  ;;  %2601 = vrot.lane.b32.xlu0 %v6318_v14, %s4454_s24  ;;  %v6377_v29 = vld [vmem:[#allocation2 + $0xe1] sm:$0xff] }
 0x3ad   : > { %v2096_v40 = vadd.f32 %v6091_v58, %v2095_v32 }
 0x3ae   : > { %v2068_v42 = vpop.f32.mrf.mxu0 }
 0x3af   : > { %vm2151_vm15 = vcmp.ge.f32.partialorder %v2096_v40, 0.0  ;;  %v2183_v26 = vmul.f32 0.1, %v2096_v40  ;;  %v2069_v43 = vadd.f32 %v6091_v58, %v2068_v42 }
 0x3b1   : > { %v2215_v19 = vsel %vm2151_vm15, %v2096_v40, %v2183_v26  ;;  %vm2142_vm1 = vcmp.ge.f32.partialorder %v2069_v43, 0.0  ;;  %v2174_v1 = vmul.f32 0.1, %v2069_v43  ;;  %v6369_v60 = vld [vmem:[#allocation2 + $0xf9] sm:$0xff]  ;;  %v6385_v26 = vld [vmem:[#allocation2 + $0xf1] sm:$0xff] }
 0x3b2   : > { %2247 = vst.msk [vmem:[#allocation2 + $0x109] sm:$0xff] %vm225_vm0, %v2215_v19 }
 0x3b3   : > { %v2206_v46 = vsel %vm2142_vm1, %v2069_v43, %v2174_v1  ;;  %v6326_v59 = vld [vmem:[#allocation2 + $0x91] sm:$0xff] }
 0x3b4   : > { %2238 = vst.msk [vmem:[#allocation2 + $0x99] sm:$0xff] %vm225_vm0, %v2206_v46  ;;  %v2098_v18 = vpop.f32.mrf.mxu2  ;;  %2603 = vrot.lane.b32.xlu1 %v6326_v59, %s4454_s24 }
 0x3b5   : > { %v2099_v0 = vadd.f32 %v6091_v58, %v2098_v18 }
 0x3b6   : > { %v2071_v52 = vpop.f32.mrf.mxu0 }
 0x3b7   : > { %vm2152_vm2 = vcmp.ge.f32.partialorder %v2099_v0, 0.0  ;;  %v2184_v34 = vmul.f32 0.1, %v2099_v0  ;;  %v2072_v54 = vadd.f32 %v6091_v58, %v2071_v52 }
 0x3b9   : > { %v2216_v44 = vsel %vm2152_vm2, %v2099_v0, %v2184_v34  ;;  %vm2143_vm12 = vcmp.ge.f32.partialorder %v2072_v54, 0.0  ;;  %v2175_v61 = vmul.f32 0.1, %v2072_v54  ;;  %v6391_v19 = vld [vmem:[#allocation2 + $0x109] sm:$0xff] }
 0x3ba   : > { %2248 = vst.msk [vmem:[#allocation2 + $0x111] sm:$0xff] %vm225_vm0, %v2216_v44 }
 0x3bb   : > { %v2207_v37 = vsel %vm2143_vm12, %v2072_v54, %v2175_v61  ;;  %v6334_v38 = vld [vmem:[#allocation2 + $0x99] sm:$0xff] }
 0x3bc   : > { %2239 = vst.msk [vmem:[#allocation2 + $0xa9] sm:$0xff] %vm225_vm0, %v2207_v37  ;;  %v2101_v53 = vpop.f32.mrf.mxu2  ;;  %2605 = vrot.lane.b32.xlu2 %v6334_v38, %s4454_s24 }
 0x3bd   : > { %v2102_v4 = vadd.f32 %v6091_v58, %v2101_v53 }
 0x3be   : > { %v2074_v33 = vpop.f32.mrf.mxu0 }
 0x3bf   : > { %vm2153_vm13 = vcmp.ge.f32.partialorder %v2102_v4, 0.0  ;;  %v2185_v6 = vmul.f32 0.1, %v2102_v4  ;;  %v2075_v22 = vadd.f32 %v6091_v58, %v2074_v33 }
 0x3c1   : > { %v2217_v55 = vsel %vm2153_vm13, %v2102_v4, %v2185_v6  ;;  %vm2144_vm14 = vcmp.ge.f32.partialorder %v2075_v22, 0.0  ;;  %v2176_v23 = vmul.f32 0.1, %v2075_v22  ;;  %v6399_v52 = vld [vmem:[#allocation2 + $0x111] sm:$0xff] }
 0x3c2   : > { %2249 = vst.msk [vmem:[#allocation2 + $0x121] sm:$0xff] %vm225_vm0, %v2217_v55 }
 0x3c3   : > { %v2208_v24 = vsel %vm2144_vm14, %v2075_v22, %v2176_v23  ;;  %v6342_v30 = vld [vmem:[#allocation2 + $0xa9] sm:$0xff] }
 0x3c4   : > { %2240 = vst.msk [vmem:[#allocation2 + $0xb1] sm:$0xff] %vm225_vm0, %v2208_v24  ;;  %v2104_v8 = vpop.f32.mrf.mxu2  ;;  %2607 = vrot.lane.b32.xlu0 %v6342_v30, %s4454_s24 }
 0x3c5   : > { %v2105_v63 = vadd.f32 %v6091_v58, %v2104_v8 }
 0x3c6   : > { %v2077_v41 = vpop.f32.mrf.mxu0 }
 0x3c7   : > { %vm2154_vm15 = vcmp.ge.f32.partialorder %v2105_v63, 0.0  ;;  %v2186_v36 = vmul.f32 0.1, %v2105_v63  ;;  %v2078_v21 = vadd.f32 %v6091_v58, %v2077_v41 }
 0x3c9   : > { %v2218_v57 = vsel %vm2154_vm15, %v2105_v63, %v2186_v36  ;;  %vm2145_vm1 = vcmp.ge.f32.partialorder %v2078_v21, 0.0  ;;  %v2177_v9 = vmul.f32 0.1, %v2078_v21  ;;  %v6383_v42 = vld [vmem:[#allocation2 + $0x121] sm:$0xff]  ;;  %v2324_v36 = vld [vmem:[#allocation2 + $0xa] sm:$0xff] }
 0x3ca   : > { %2250 = vst.msk [vmem:[#allocation2 + $0x129] sm:$0xff] %vm225_vm0, %v2218_v57 }
 0x3cb   : > { %v2209_v35 = vsel %vm2145_vm1, %v2078_v21, %v2177_v9  ;;  %v6350_v25 = vld [vmem:[#allocation2 + $0xb1] sm:$0xff]  ;;  %v2323_v9 = vld [vmem:[#allocation2 + $0x2] sm:$0xff] }
 0x3cc   : > { %2241 = vst.msk [vmem:[#allocation2 + $0xc1] sm:$0xff] %vm225_vm0, %v2209_v35  ;;  %v2107_v27 = vpop.f32.mrf.mxu2  ;;  %2609 = vrot.lane.b32.xlu1 %v6350_v25, %s4454_s24  ;;  %v6436_v35 = vpop.permute.xlu2 %2581 }
 0x3cd   : > { %v2108_v15 = vadd.f32 %v6091_v58, %v2107_v27  ;;  %8257 = vst [vmem:[#allocation9_spill] sm:$0xff] %v6436_v35 }
 0x3ce   : > { %v2080_v49 = vpop.f32.mrf.mxu0 }
 0x3cf   : > { %vm2155_vm2 = vcmp.ge.f32.partialorder %v2108_v15, 0.0  ;;  %v2187_v12 = vmul.f32 0.1, %v2108_v15  ;;  %v2081_v3 = vadd.f32 %v6091_v58, %v2080_v49 }
 0x3d1   : > { %v2219_v17 = vsel %vm2155_vm2, %v2108_v15, %v2187_v12  ;;  %vm2146_vm12 = vcmp.ge.f32.partialorder %v2081_v3, 0.0  ;;  %v2178_v56 = vmul.f32 0.1, %v2081_v3  ;;  %v6405_v54 = vld [vmem:[#allocation2 + $0x129] sm:$0xff] }
 0x3d2   : > { %2251 = vst.msk [vmem:[#allocation2 + $0x139] sm:$0xff] %vm225_vm0, %v2219_v17  ;;  %v6442_v17 = vld [vmem:[#allocation2 + $0x1a] sm:$0xff] }
 0x3d3   : > { %v2210_v39 = vsel %vm2146_vm12, %v2081_v3, %v2178_v56  ;;  %v6360_v48 = vld [vmem:[#allocation2 + $0xc1] sm:$0xff]  ;;  %v6440_v3 = vld [vmem:[#allocation2 + $0x32] sm:$0xff] }
 0x3d4   : > { %2242 = vst.msk [vmem:[#allocation2 + $0xc9] sm:$0xff] %vm225_vm0, %v2210_v39  ;;  %v2110_v5 = vpop.f32.mrf.mxu2  ;;  %2615 = vrot.lane.b32.xlu1 %v6358_v28, %s4454_s24  ;;  %2611 = vrot.lane.b32.xlu2 %v6360_v48, %s4454_s24  ;;  %v6449_v56 = vld [vmem:[#allocation2 + $0x22] sm:$0xff]  ;;  %v6455_v39 = vld [vmem:[#allocation2 + $0x52] sm:$0xff] }
 0x3d5   : > { %v2111_v11 = vadd.f32 %v6091_v58, %v2110_v5  ;;  %v6457_v5 = vld [vmem:[#allocation2 + $0x3a] sm:$0xff] }
 0x3d7   : > { %vm2156_vm13 = vcmp.ge.f32.partialorder %v2111_v11, 0.0  ;;  %v2188_v10 = vmul.f32 0.1, %v2111_v11 }
 0x3d9   : > { %v2220_v20 = vsel %vm2156_vm13, %v2111_v11, %v2188_v10  ;;  %v6411_v53 = vld [vmem:[#allocation2 + $0x139] sm:$0xff]  ;;  %v6463_v11 = vld [vmem:[#allocation2 + $0x4a] sm:$0xff]  ;;  %v6465_v10 = vpop.permute.xlu1 %2579 }
 0x3da   : > { %2252 = vst.msk [vmem:[#allocation2 + $0x141] sm:$0xff] %vm225_vm0, %v2220_v20 }
 0x3db   : > { %v6371_v7 = vld [vmem:[#allocation2 + $0xc9] sm:$0xff]  ;;  %8259 = vst [vmem:[#allocation8_spill] sm:$0xff] %v6465_v10 }
 0x3dc   : > { %v2113_v16 = vpop.f32.mrf.mxu2  ;;  %2621 = vrot.lane.b32.xlu1 %v6369_v60, %s4454_s24  ;;  %2613 = vrot.lane.b32.xlu0 %v6371_v7, %s4454_s24 }
 0x3dd   : > { %v2114_v45 = vadd.f32 %v6091_v58, %v2113_v16  ;;  %2617 = vrot.lane.b32.xlu2 %v6377_v29, %s4454_s24  ;;  %v6471_v16 = vld [vmem:[#allocation2 + $0x7a] sm:$0xff] }
 0x3df   : > { %vm2157_vm14 = vcmp.ge.f32.partialorder %v2114_v45, 0.0  ;;  %v2189_v32 = vmul.f32 0.1, %v2114_v45 }
 0x3e1   : > { %v2221_v40 = vsel %vm2157_vm14, %v2114_v45, %v2189_v32  ;;  %v6397_v0 = vld [vmem:[#allocation2 + $0x141] sm:$0xff]  ;;  %v6479_v32 = vld [vmem:[#allocation2 + $0x6a] sm:$0xff] }
 0x3e2   : > { %2253 = vst.msk [vmem:[#allocation2 + $0x151] sm:$0xff] %vm225_vm0, %v2221_v40  ;;  %v6473_v45 = vld [vmem:[#allocation2 + $0x62] sm:$0xff]  ;;  %v6483_v40 = vpop.permute.xlu1 %2585 }
 0x3e3   : > { %8261 = vst [vmem:[#allocation11_spill] sm:$0xff] %v6483_v40  ;;  %v6577_v40 = vld [vmem:[#allocation2 + $0x13a] sm:$0xff]  ;;  %v6585_v35 = vld [vmem:[#allocation2 + $0x142] sm:$0xff] }
 0x3e4   : > { %v2116_v43 = vpop.f32.mrf.mxu2  ;;  %2627 = vrot.lane.b32.xlu1 %v6383_v42, %s4454_s24  ;;  %2619 = vrot.lane.b32.xlu0 %v6385_v26, %s4454_s24  ;;  %8277 = vst [vmem:[#allocation62_spill] sm:$0xff] %v6577_v40 }
 0x3e5   : > { %v2117_v1 = vadd.f32 %v6091_v58, %v2116_v43  ;;  %2623 = vrot.lane.b32.xlu2 %v6391_v19, %s4454_s24 }
 0x3e7   : > { %vm2158_vm15 = vcmp.ge.f32.partialorder %v2117_v1, 0.0  ;;  %v2190_v46 = vmul.f32 0.1, %v2117_v1 }
 0x3e9   : > { %v2222_v18 = vsel %vm2158_vm15, %v2117_v1, %v2190_v46  ;;  %v6415_v33 = vld [vmem:[#allocation2 + $0x151] sm:$0xff]  ;;  %v6487_v1 = vld [vmem:[#allocation2 + $0x9a] sm:$0xff]  ;;  %v6489_v46 = vld [vmem:[#allocation2 + $0x82] sm:$0xff] }
 0x3ea   : > { %2254 = vst.msk [vmem:[#allocation2 + $0x159] sm:$0xff] %vm225_vm0, %v2222_v18  ;;  %v6495_v18 = vld [vmem:[#allocation2 + $0x92] sm:$0xff] }
 0x3ec   : > { %v2119_v34 = vpop.f32.mrf.mxu2  ;;  %2633 = vrot.lane.b32.xlu1 %v6397_v0, %s4454_s24  ;;  %2625 = vrot.lane.b32.xlu0 %v6399_v52, %s4454_s24 }
 0x3ed   : > { %v2120_v44 = vadd.f32 %v6091_v58, %v2119_v34  ;;  %2629 = vrot.lane.b32.xlu2 %v6405_v54, %s4454_s24  ;;  %v6499_v34 = vpop.permute.xlu0 %2583 }
 0x3ee   : > { %8263 = vst [vmem:[#allocation3_spill] sm:$0xff] %v6499_v34 }
 0x3ef   : > { %vm2159_vm1 = vcmp.ge.f32.partialorder %v2120_v44, 0.0  ;;  %v2191_v61 = vmul.f32 0.1, %v2120_v44 }
 0x3f1   : > { %v2223_v37 = vsel %vm2159_vm1, %v2120_v44, %v2191_v61  ;;  %v6425_v24 = vld [vmem:[#allocation2 + $0x159] sm:$0xff] }
 0x3f2   : > { %2255 = vst.msk [vmem:[#allocation2 + $0x169] sm:$0xff] %vm225_vm0, %v2223_v37  ;;  %v6505_v37 = vld [vmem:[#allocation2 + $0xc2] sm:$0xff] }
 0x3f4   : > { %v2122_v4 = vpop.f32.mrf.mxu2  ;;  %2631 = vrot.lane.b32.xlu0 %v6411_v53, %s4454_s24 }
 0x3f5   : > { %v2123_v6 = vadd.f32 %v6091_v58, %v2122_v4  ;;  %2635 = vrot.lane.b32.xlu2 %v6415_v33, %s4454_s24  ;;  %v6507_v4 = vld [vmem:[#allocation2 + $0xaa] sm:$0xff] }
 0x3f6   : > { %v6501_v44 = vpop.permute.xlu1 %2591 }
 0x3f7   : > { %vm2160_vm2 = vcmp.ge.f32.partialorder %v2123_v6, 0.0  ;;  %v2192_v22 = vmul.f32 0.1, %v2123_v6  ;;  %8264 = vst [vmem:[#allocation55_spill] sm:$0xff] %v6501_v44  ;;  %v6567_v44 = vld [vmem:[#allocation2 + $0x122] sm:$0xff] }
 0x3f9   : > { %v2224_v55 = vsel %vm2160_vm2, %v2123_v6, %v2192_v22  ;;  %v6420_v23 = vld [vmem:[#allocation2 + $0x169] sm:$0xff]  ;;  %v6513_v6 = vld [vmem:[#allocation2 + $0xb2] sm:$0xff]  ;;  %v6517_v22 = vpop.permute.xlu0 %2589 }
 0x3fa   : > { %2256 = vst.msk [vmem:[#allocation2 + $0x171] sm:$0xff] %vm225_vm0, %v2224_v55  ;;  %2639 = vrot.lane.b32.xlu1 %v6420_v23, %s4454_s24 }
 0x3fb   : > { %8266 = vst [vmem:[#allocation58_spill] sm:$0xff] %v6517_v22 }
 0x3fc   : > { %v2125_v8 = vpop.f32.mrf.mxu2  ;;  %2637 = vrot.lane.b32.xlu0 %v6425_v24, %s4454_s24 }
 0x3fd   : > { %v2126_v63 = vadd.f32 %v6091_v58, %v2125_v8 }
 0x3ff   : > { %vm2161_vm12 = vcmp.ge.f32.partialorder %v2126_v63, 0.0  ;;  %v2193_v41 = vmul.f32 0.1, %v2126_v63 }
 0x401   : > { %v2225_v21 = vsel %vm2161_vm12, %v2126_v63, %v2193_v41  ;;  %v6430_v57 = vld [vmem:[#allocation2 + $0x171] sm:$0xff]  ;;  %v6523_v63 = vld [vmem:[#allocation2 + $0xe2] sm:$0xff] }
 0x402   : > { %2257 = vst.msk [vmem:[#allocation2 + $0x181] sm:$0xff] %vm225_vm0, %v2225_v21  ;;  %2709 = vrot.lane.b32.xlu1 %v2324_v36, %s4455_s25  ;;  %2641 = vrot.lane.b32.xlu2 %v6430_v57, %s4454_s24  ;;  %v6525_v41 = vld [vmem:[#allocation2 + $0xca] sm:$0xff]  ;;  %v6531_v36 = vld [vmem:[#allocation2 + $0xda] sm:$0xff] }
 0x404   : > { %v2128_v27 = vpop.f32.mrf.mxu2  ;;  %2707 = vrot.lane.b32.xlu0 %v2323_v9, %s4455_s25 }
 0x405   : > { %v2129_v15 = vadd.f32 %v6091_v58, %v2128_v27  ;;  %v6453_v58 = vpop.permute.xlu2 %2587 }
 0x406   : > { %8258 = vst [vmem:[#allocation50_spill] sm:$0xff] %v6453_v58  ;;  %v6535_v21 = vpop.permute.xlu0 %2595  ;;  %v6575_v58 = vld [vmem:[#allocation2 + $0x152] sm:$0xff] }
 0x407   : > { %vm2162_vm13 = vcmp.ge.f32.partialorder %v2129_v15, 0.0  ;;  %v2194_v49 = vmul.f32 0.1, %v2129_v15  ;;  %8269 = vst [vmem:[#allocation43_spill] sm:$0xff] %v6535_v21  ;;  %v6559_v21 = vld [vmem:[#allocation2 + $0x12a] sm:$0xff] }
 0x408   : > { %8276 = vst [vmem:[#allocation26_spill] sm:$0xff] %v6575_v58 }
 0x409   : > { %v2226_v12 = vsel %vm2162_vm13, %v2129_v15, %v2194_v49  ;;  %v6541_v15 = vld [vmem:[#allocation2 + $0x10a] sm:$0xff]  ;;  %v6543_v49 = vld [vmem:[#allocation2 + $0xf2] sm:$0xff] }
 0x40a   : > { %2258 = vst.msk [vmem:[#allocation2 + $0x189] sm:$0xff] %vm225_vm0, %v2226_v12  ;;  %2715 = vrot.lane.b32.xlu1 %v6440_v3, %s4455_s25  ;;  %2711 = vrot.lane.b32.xlu2 %v6442_v17, %s4455_s25  ;;  %v6549_v12 = vld [vmem:[#allocation2 + $0xfa] sm:$0xff] }
 0x40c   : > { %2713 = vrot.lane.b32.xlu0 %v6449_v56, %s4455_s25 }
 0x40d   : > { %v6469_v20 = vpop.permute.xlu2 %2593 }
 0x40e   : > { %8260 = vst [vmem:[#allocation54_spill] sm:$0xff] %v6469_v20  ;;  %v6519_v55 = vpop.permute.xlu1 %2597  ;;  %v6561_v20 = vld [vmem:[#allocation2 + $0x112] sm:$0xff] }
 0x40f   : > { %8267 = vst [vmem:[#allocation12_spill] sm:$0xff] %v6519_v55 }
 0x412   : > { %2721 = vrot.lane.b32.xlu1 %v6455_v39, %s4455_s25  ;;  %2717 = vrot.lane.b32.xlu2 %v6457_v5, %s4455_s25 }
 0x414   : > { %2719 = vrot.lane.b32.xlu0 %v6463_v11, %s4455_s25 }
 0x415   : > { %v6485_v43 = vpop.permute.xlu2 %2599 }
 0x416   : > { %8262 = vst [vmem:[#allocation38_spill] sm:$0xff] %v6485_v43 }
 0x41a   : > { %2727 = vrot.lane.b32.xlu1 %v6471_v16, %s4455_s25  ;;  %2723 = vrot.lane.b32.xlu2 %v6473_v45, %s4455_s25 }
 0x41c   : > { %2725 = vrot.lane.b32.xlu0 %v6479_v32, %s4455_s25 }
 0x41d   : > { %v6503_v61 = vpop.permute.xlu2 %2605 }
 0x41e   : > { %8265 = vst [vmem:[#allocation4_spill] sm:$0xff] %v6503_v61  ;;  %v6553_v43 = vpop.permute.xlu0 %2601 }
 0x41f   : > { %8272 = vst [vmem:[#allocation14_spill] sm:$0xff] %v6553_v43 }
 0x422   : > { %2733 = vrot.lane.b32.xlu1 %v6487_v1, %s4455_s25  ;;  %2729 = vrot.lane.b32.xlu2 %v6489_v46, %s4455_s25 }
 0x424   : > { %2731 = vrot.lane.b32.xlu0 %v6495_v18, %s4455_s25 }
 0x426   : > { %v6537_v9 = vpop.permute.xlu1 %2603 }
 0x427   : > { %8270 = vst [vmem:[#allocation75_spill] sm:$0xff] %v6537_v9 }
 0x42a   : > { %2739 = vrot.lane.b32.xlu1 %v6505_v37, %s4455_s25  ;;  %2735 = vrot.lane.b32.xlu2 %v6507_v4, %s4455_s25 }
 0x42c   : > { %2737 = vrot.lane.b32.xlu0 %v6513_v6, %s4455_s25 }
 0x42e   : > { %v6521_v8 = vpop.permute.xlu2 %2611 }
 0x42f   : > { %8268 = vst [vmem:[#allocation25_spill] sm:$0xff] %v6521_v8 }
 0x432   : > { %2745 = vrot.lane.b32.xlu1 %v6523_v63, %s4455_s25  ;;  %2741 = vrot.lane.b32.xlu2 %v6525_v41, %s4455_s25 }
 0x434   : > { %2743 = vrot.lane.b32.xlu0 %v6531_v36, %s4455_s25 }
 0x436   : > { %v6571_v43 = vpop.permute.xlu0 %2607 }
 0x437   : > { %v6539_v27 = vpop.permute.xlu2 %2617  ;;  %8274 = vst [vmem:[#allocation78_spill] sm:$0xff] %v6571_v43 }
 0x438   : > { %8271 = vst [vmem:[#allocation13_spill] sm:$0xff] %v6539_v27  ;;  %v6593_v27 = vld [vmem:[#allocation2 + $0x15a] sm:$0xff] }
 0x439   : > { %8281 = vst [vmem:[#allocation61_spill] sm:$0xff] %v6593_v27 }
 0x43a   : > { %2751 = vrot.lane.b32.xlu1 %v6541_v15, %s4455_s25  ;;  %2747 = vrot.lane.b32.xlu2 %v6543_v49, %s4455_s25 }
 0x43c   : > { %2749 = vrot.lane.b32.xlu0 %v6549_v12, %s4455_s25 }
 0x43e   : > { %v6555_v9 = vpop.permute.xlu1 %2609 }
 0x43f   : > { %v6557_v55 = vpop.permute.xlu2 %2623 }
 0x440   : > { %8273 = vst [vmem:[#allocation59_spill] sm:$0xff] %v6557_v55  ;;  %v2354_v55 = vld [vmem:[#allocation2 + $0x172] sm:$0xff] }
 0x442   : > { %2757 = vrot.lane.b32.xlu1 %v6559_v21, %s4455_s25  ;;  %2753 = vrot.lane.b32.xlu2 %v6561_v20, %s4455_s25 }
 0x444   : > { %2755 = vrot.lane.b32.xlu0 %v6567_v44, %s4455_s25 }
 0x446   : > { %v6573_v22 = vpop.permute.xlu1 %2615 }
 0x447   : > { %8275 = vst [vmem:[#allocation5_spill] sm:$0xff] %v6573_v22  ;;  %v6579_v34 = vpop.permute.xlu2 %2629 }
 0x448   : > { %8278 = vst [vmem:[#allocation63_spill] sm:$0xff] %v6579_v34  ;;  %v2353_v34 = vld [vmem:[#allocation2 + $0x16a] sm:$0xff] }
 0x44a   : > { %2763 = vrot.lane.b32.xlu1 %v6575_v58, %s4455_s25  ;;  %2759 = vrot.lane.b32.xlu2 %v6577_v40, %s4455_s25  ;;  %v6603_v58 = vld [vmem:[#allocation2 + $0x18] sm:$0xff]  ;;  %v2267_v40 = vld [vmem:[#allocation2 + $0x60] sm:$0xff] }
 0x44b   : > { %8284 = vst [vmem:[#allocation151_spill] sm:$0xff] %v6603_v58 }
 0x44c   : > { %2761 = vrot.lane.b32.xlu0 %v6585_v35, %s4455_s25 }
 0x44e   : > { %v6589_v10 = vpop.permute.xlu0 %2613  ;;  %v6591_v8 = vpop.permute.xlu1 %2621 }
 0x44f   : > { %8279 = vst [vmem:[#allocation23_spill] sm:$0xff] %v6589_v10  ;;  %v6598_v61 = vpop.permute.xlu2 %2635  ;;  %v2263_v10 = vld [vmem:[#allocation2 + $0x30] sm:$0xff] }
 0x450   : > { %8280 = vst [vmem:[#allocation60_spill] sm:$0xff] %v6591_v8 }
 0x451   : > { %8282 = vst [vmem:[#allocation132_spill] sm:$0xff] %v6598_v61 }
 0x452   : > { %2769 = vrot.lane.b32.xlu1 %v2354_v55, %s4455_s25  ;;  %2765 = vrot.lane.b32.xlu2 %v6593_v27, %s4455_s25  ;;  %v2262_v55 = vld [vmem:[#allocation2 + $0x20] sm:$0xff]  ;;  %v2264_v27 = vld [vmem:[#allocation2 + $0x38] sm:$0xff] }
 0x454   : > { %2767 = vrot.lane.b32.xlu0 %v2353_v34, %s4455_s25  ;;  %v2266_v34 = vld [vmem:[#allocation2 + $0x50] sm:$0xff] }
 0x456   : > { %v6601_v43 = vpop.permute.xlu0 %2619  ;;  %v6605_v22 = vpop.permute.xlu1 %2627 }
 0x457   : > { %8283 = vst [vmem:[#allocation142_spill] sm:$0xff] %v6601_v43  ;;  %v2265_v43 = vld [vmem:[#allocation2 + $0x48] sm:$0xff] }
 0x458   : > { %8285 = vst [vmem:[#allocation15_spill] sm:$0xff] %v6605_v22 }
 0x45a   : > { %2839 = vrot.lane.b32.xlu1 %v2263_v10, %s4456_s26  ;;  %2835 = vrot.lane.b32.xlu2 %v6603_v58, %s4456_s26 }
 0x45c   : > { %2837 = vrot.lane.b32.xlu0 %v2262_v55, %s4456_s26  ;;  %v6611_v8 = vpop.permute.xlu2 %2641  ;;  %v2269_v55 = vld [vmem:[#allocation2 + $0x78] sm:$0xff] }
 0x45d   : > { %8286 = vst [vmem:[#allocation31_spill] sm:$0xff] %v6611_v8  ;;  %v2268_v8 = vld [vmem:[#allocation2 + $0x68] sm:$0xff] }
 0x45e   : > { %v6613_v61 = vpop.permute.xlu0 %2625  ;;  %v6617_v22 = vpop.permute.xlu1 %2633 }
 0x45f   : > { %8287 = vst [vmem:[#allocation48_spill] sm:$0xff] %v6613_v61 }
 0x460   : > { %8288 = vst [vmem:[#allocation79_spill] sm:$0xff] %v6617_v22  ;;  %v6699_v22 = vld [vmem:[#allocation2 + $0x128] sm:$0xff] }
 0x461   : > { %8315 = vst [vmem:[#allocation68_spill] sm:$0xff] %v6699_v22 }
 0x462   : > { %2845 = vrot.lane.b32.xlu1 %v2266_v34, %s4456_s26  ;;  %2841 = vrot.lane.b32.xlu2 %v2264_v27, %s4456_s26 }
 0x464   : > { %2843 = vrot.lane.b32.xlu0 %v2265_v43, %s4456_s26  ;;  %v6620_v10 = vpop.permute.xlu2 %2711  ;;  %v6633_v43 = vld [vmem:[#allocation2 + $0x98] sm:$0xff] }
 0x465   : > { %8289 = vst [vmem:[#allocation92_spill] sm:$0xff] %v6620_v10  ;;  %v2270_v10 = vld [vmem:[#allocation2 + $0x80] sm:$0xff] }
 0x466   : > { %v6622_v58 = vpop.permute.xlu0 %2631  ;;  %8294 = vst [vmem:[#allocation80_spill] sm:$0xff] %v6633_v43 }
 0x467   : > { %8290 = vst [vmem:[#allocation93_spill] sm:$0xff] %v6622_v58 }
 0x46a   : > { %2851 = vrot.lane.b32.xlu1 %v2269_v55, %s4456_s26  ;;  %2847 = vrot.lane.b32.xlu2 %v2267_v40, %s4456_s26  ;;  %v2271_v55 = vld [vmem:[#allocation2 + $0x90] sm:$0xff] }
 0x46c   : > { %v6626_v61 = vpop.permute.xlu1 %2639  ;;  %2849 = vrot.lane.b32.xlu0 %v2268_v8, %s4456_s26  ;;  %v6629_v27 = vpop.permute.xlu2 %2717 }
 0x46d   : > { %8291 = vst [vmem:[#allocation112_spill] sm:$0xff] %v6626_v61  ;;  %v6683_v61 = vld [vmem:[#allocation2 + $0xf0] sm:$0xff] }
 0x46e   : > { %8292 = vst [vmem:[#allocation29_spill] sm:$0xff] %v6629_v27  ;;  %v6631_v34 = vpop.permute.xlu0 %2637  ;;  %v6645_v27 = vld [vmem:[#allocation2 + $0xc0] sm:$0xff] }
 0x46f   : > { %8293 = vst [vmem:[#allocation47_spill] sm:$0xff] %v6631_v34  ;;  %v6647_v34 = vld [vmem:[#allocation2 + $0xa8] sm:$0xff] }
 0x470   : > { %8298 = vst [vmem:[#allocation16_spill] sm:$0xff] %v6645_v27 }
 0x471   : > { %8299 = vst [vmem:[#allocation17_spill] sm:$0xff] %v6647_v34 }
 0x472   : > { %2857 = vrot.lane.b32.xlu1 %v6633_v43, %s4456_s26  ;;  %2853 = vrot.lane.b32.xlu2 %v2270_v10, %s4456_s26  ;;  %v6653_v10 = vld [vmem:[#allocation2 + $0xb0] sm:$0xff]  ;;  %v6665_v43 = vld [vmem:[#allocation2 + $0xc8] sm:$0xff]  ;;  %8310 = vst [vmem:[#allocation156_spill] sm:$0xff] %v6683_v61 }
 0x473   : > { %8304 = vst [vmem:[#allocation113_spill] sm:$0xff] %v6665_v43 }
 0x474   : > { %v6638_v58 = vpop.permute.xlu1 %2709  ;;  %2855 = vrot.lane.b32.xlu0 %v2271_v55, %s4456_s26  ;;  %v6641_v40 = vpop.permute.xlu2 %2723 }
 0x475   : > { %8295 = vst [vmem:[#allocation133_spill] sm:$0xff] %v6638_v58 }
 0x476   : > { %8296 = vst [vmem:[#allocation134_spill] sm:$0xff] %v6641_v40  ;;  %v6643_v8 = vpop.permute.xlu0 %2707 }
 0x477   : > { %8297 = vst [vmem:[#allocation155_spill] sm:$0xff] %v6643_v8  ;;  %v6663_v8 = vld [vmem:[#allocation2 + $0xe0] sm:$0xff] }
 0x478   : > { %8303 = vst [vmem:[#allocation101_spill] sm:$0xff] %v6663_v8 }
 0x47a   : > { %2863 = vrot.lane.b32.xlu1 %v6645_v27, %s4456_s26  ;;  %2859 = vrot.lane.b32.xlu2 %v6647_v34, %s4456_s26  ;;  %v6671_v27 = vld [vmem:[#allocation2 + $0xd8] sm:$0xff]  ;;  %v6681_v34 = vld [vmem:[#allocation2 + $0x108] sm:$0xff] }
 0x47b   : > { %8305 = vst [vmem:[#allocation114_spill] sm:$0xff] %v6671_v27 }
 0x47c   : > { %2861 = vrot.lane.b32.xlu0 %v6653_v10, %s4456_s26  ;;  %v6657_v55 = vpop.permute.xlu1 %2715  ;;  %v6659_v40 = vpop.permute.xlu2 %2729  ;;  %8309 = vst [vmem:[#allocation143_spill] sm:$0xff] %v6681_v34 }
 0x47d   : > { %8300 = vst [vmem:[#allocation64_spill] sm:$0xff] %v6657_v55 }
 0x47e   : > { %8301 = vst [vmem:[#allocation82_spill] sm:$0xff] %v6659_v40  ;;  %v6661_v58 = vpop.permute.xlu0 %2713 }
 0x47f   : > { %8302 = vst [vmem:[#allocation90_spill] sm:$0xff] %v6661_v58 }
 0x482   : > { %2869 = vrot.lane.b32.xlu1 %v6663_v8, %s4456_s26  ;;  %2865 = vrot.lane.b32.xlu2 %v6665_v43, %s4456_s26  ;;  %v6689_v8 = vld [vmem:[#allocation2 + $0xf8] sm:$0xff]  ;;  %v6701_v43 = vld [vmem:[#allocation2 + $0x110] sm:$0xff] }
 0x483   : > { %8311 = vst [vmem:[#allocation157_spill] sm:$0xff] %v6689_v8 }
 0x484   : > { %2867 = vrot.lane.b32.xlu0 %v6671_v27, %s4456_s26  ;;  %v6675_v55 = vpop.permute.xlu1 %2721  ;;  %v6677_v40 = vpop.permute.xlu2 %2735  ;;  %8316 = vst [vmem:[#allocation94_spill] sm:$0xff] %v6701_v43  ;;  %v2385_v27 = vld [vmem:[#allocation2 + $0x180] sm:$0xff] }
 0x485   : > { %8306 = vst [vmem:[#allocation65_spill] sm:$0xff] %v6675_v55 }
 0x486   : > { %8307 = vst [vmem:[#allocation122_spill] sm:$0xff] %v6677_v40  ;;  %v6679_v58 = vpop.permute.xlu0 %2719 }
 0x487   : > { %8308 = vst [vmem:[#allocation130_spill] sm:$0xff] %v6679_v58 }
 0x48a   : > { %2875 = vrot.lane.b32.xlu1 %v6681_v34, %s4456_s26  ;;  %2871 = vrot.lane.b32.xlu2 %v6683_v61, %s4456_s26  ;;  %v6707_v34 = vld [vmem:[#allocation2 + $0x120] sm:$0xff]  ;;  %v6717_v61 = vld [vmem:[#allocation2 + $0x138] sm:$0xff] }
 0x48b   : > { %8317 = vst [vmem:[#allocation103_spill] sm:$0xff] %v6707_v34 }
 0x48c   : > { %2873 = vrot.lane.b32.xlu0 %v6689_v8, %s4456_s26  ;;  %v6693_v55 = vpop.permute.xlu1 %2727  ;;  %v6695_v40 = vpop.permute.xlu2 %2741  ;;  %8321 = vst [vmem:[#allocation66_spill] sm:$0xff] %v6717_v61 }
 0x48d   : > { %8312 = vst [vmem:[#allocation7_spill] sm:$0xff] %v6693_v55 }
 0x48e   : > { %8313 = vst [vmem:[#allocation32_spill] sm:$0xff] %v6695_v40  ;;  %v6697_v58 = vpop.permute.xlu0 %2725  ;;  %v2287_v40 = vld [vmem:[#allocation2 + $0x150] sm:$0xff] }
 0x48f   : > { %8314 = vst [vmem:[#allocation67_spill] sm:$0xff] %v6697_v58 }
 0x492   : > { %2881 = vrot.lane.b32.xlu1 %v6699_v22, %s4456_s26  ;;  %2877 = vrot.lane.b32.xlu2 %v6701_v43, %s4456_s26  ;;  %v6722_v22 = vld [vmem:[#allocation2 + $0x140] sm:$0xff]  ;;  %v6732_v43 = vld [vmem:[#allocation2 + $0x158] sm:$0xff] }
 0x493   : > { %8322 = vst [vmem:[#allocation135_spill] sm:$0xff] %v6722_v22 }
 0x494   : > { %2879 = vrot.lane.b32.xlu0 %v6707_v34, %s4456_s26  ;;  %v6711_v55 = vpop.permute.xlu1 %2733  ;;  %v6713_v8 = vpop.permute.xlu2 %2747  ;;  %8326 = vst [vmem:[#allocation34_spill] sm:$0xff] %v6732_v43 }
 0x495   : > { %8318 = vst [vmem:[#allocation110_spill] sm:$0xff] %v6711_v55 }
 0x496   : > { %8319 = vst [vmem:[#allocation118_spill] sm:$0xff] %v6713_v8  ;;  %v6715_v58 = vpop.permute.xlu0 %2731 }
 0x497   : > { %8320 = vst [vmem:[#allocation71_spill] sm:$0xff] %v6715_v58  ;;  %v2290_v58 = vld [vmem:[#allocation2 + $0x170] sm:$0xff] }
 0x49a   : > { %2887 = vrot.lane.b32.xlu1 %v2287_v40, %s4456_s26  ;;  %2883 = vrot.lane.b32.xlu2 %v6717_v61, %s4456_s26  ;;  %v6737_v40 = vld [vmem:[#allocation2 + $0x168] sm:$0xff] }
 0x49b   : > { %8327 = vst [vmem:[#allocation53_spill] sm:$0xff] %v6737_v40 }
 0x49c   : > { %2885 = vrot.lane.b32.xlu0 %v6722_v22, %s4456_s26  ;;  %v6726_v34 = vpop.permute.xlu1 %2739  ;;  %v6728_v55 = vpop.permute.xlu2 %2753  ;;  %v2387_v22 = vld [vmem:[#allocation2 + $0x19] sm:$0xff] }
 0x49d   : > { %8323 = vst [vmem:[#allocation145_spill] sm:$0xff] %v6726_v34 }
 0x49e   : > { %8324 = vst [vmem:[#allocation153_spill] sm:$0xff] %v6728_v55  ;;  %v6730_v8 = vpop.permute.xlu0 %2737 }
 0x49f   : > { %8325 = vst [vmem:[#allocation18_spill] sm:$0xff] %v6730_v8 }
 0x4a2   : > { %2893 = vrot.lane.b32.xlu1 %v2290_v58, %s4456_s26  ;;  %2889 = vrot.lane.b32.xlu2 %v6732_v43, %s4456_s26  ;;  %v2386_v58 = vld [vmem:[#allocation2 + $0x188] sm:$0xff] }
 0x4a4   : > { %2891 = vrot.lane.b32.xlu0 %v6737_v40, %s4456_s26  ;;  %v6741_v61 = vpop.permute.xlu1 %2745  ;;  %v6743_v34 = vpop.permute.xlu2 %2759 }
 0x4a5   : > { %8328 = vst [vmem:[#allocation83_spill] sm:$0xff] %v6741_v61  ;;  %v2388_v61 = vld [vmem:[#allocation2 + $0x21] sm:$0xff] }
 0x4a6   : > { %v6745_v55 = vpop.permute.xlu0 %2743 }
 0x4aa   : > { %2963 = vrot.lane.b32.xlu1 %v2387_v22, %s4457_s27  ;;  %2895 = vrot.lane.b32.xlu2 %v2385_v27, %s4456_s26 }
 0x4ac   : > { %2897 = vrot.lane.b32.xlu0 %v2386_v58, %s4456_s26  ;;  %v6750_v43 = vpop.permute.xlu1 %2751  ;;  %v6752_v8 = vpop.permute.xlu2 %2765 }
 0x4ae   : > { %v6754_v40 = vpop.permute.xlu0 %2749 }
 0x4b2   : > { %2969 = vrot.lane.b32.xlu1 %v6264_v47, %s4457_s27  ;;  %2965 = vrot.lane.b32.xlu2 %v2388_v61, %s4457_s27 }
 0x4b4   : > { %2967 = vrot.lane.b32.xlu0 %v6242_v50, %s4457_s27  ;;  %v6761_v22 = vpop.permute.xlu1 %2757  ;;  %v6763_v27 = vpop.permute.xlu2 %2835 }
 0x4b6   : > { %v6765_v58 = vpop.permute.xlu0 %2755 }
 0x4ba   : > { %2975 = vrot.lane.b32.xlu1 %v6294_v2, %s4457_s27  ;;  %2971 = vrot.lane.b32.xlu2 %v6280_v62, %s4457_s27 }
 0x4bc   : > { %2973 = vrot.lane.b32.xlu0 %v6286_v51, %s4457_s27  ;;  %v6773_v47 = vpop.permute.xlu1 %2763  ;;  %v6775_v61 = vpop.permute.xlu2 %2841 }
 0x4bd   : > { %8329 = vst [vmem:[#allocation95_spill] sm:$0xff] %v6773_v47 }
 0x4be   : > { %v6777_v50 = vpop.permute.xlu0 %2761 }
 0x4c2   : > { %2981 = vrot.lane.b32.xlu1 %v6318_v14, %s4457_s27  ;;  %2977 = vrot.lane.b32.xlu2 %v6302_v13, %s4457_s27 }
 0x4c4   : > { %2979 = vrot.lane.b32.xlu0 %v6310_v31, %s4457_s27  ;;  %v6785_v2 = vpop.permute.xlu1 %2769  ;;  %v6787_v62 = vpop.permute.xlu2 %2847 }
 0x4c5   : > { %8330 = vst [vmem:[#allocation96_spill] sm:$0xff] %v6785_v2  ;;  %v6863_v2 = vld [vmem:[#allocation2 + $0x181] sm:$0xff] }
 0x4c6   : > { %8331 = vst [vmem:[#allocation115_spill] sm:$0xff] %v6787_v62  ;;  %v6789_v51 = vpop.permute.xlu0 %2767  ;;  %v8359_v62 = vld [vmem:[#allocation32_spill] sm:$0xff] }
 0x4ca   : > { %2987 = vrot.lane.b32.xlu1 %v6342_v30, %s4457_s27  ;;  %2983 = vrot.lane.b32.xlu2 %v6326_v59, %s4457_s27 }
 0x4cc   : > { %2985 = vrot.lane.b32.xlu0 %v6334_v38, %s4457_s27  ;;  %v6797_v14 = vpop.permute.xlu1 %2839  ;;  %v6799_v13 = vpop.permute.xlu2 %2853 }
 0x4cd   : > { %8332 = vst [vmem:[#allocation36_spill] sm:$0xff] %v6799_v13 }
 0x4ce   : > { %v6801_v31 = vpop.permute.xlu0 %2837 }
 0x4d2   : > { %2993 = vrot.lane.b32.xlu1 %v6371_v7, %s4457_s27  ;;  %2989 = vrot.lane.b32.xlu2 %v6350_v25, %s4457_s27 }
 0x4d4   : > { %2991 = vrot.lane.b32.xlu0 %v6360_v48, %s4457_s27  ;;  %v6809_v30 = vpop.permute.xlu1 %2845  ;;  %v6811_v59 = vpop.permute.xlu2 %2859 }
 0x4d5   : > { %8333 = vst [vmem:[#allocation52_spill] sm:$0xff] %v6809_v30 }
 0x4d6   : > { %8334 = vst [vmem:[#allocation123_spill] sm:$0xff] %v6811_v59  ;;  %v6813_v38 = vpop.permute.xlu0 %2843  ;;  %v6877_v59 = vld [vmem:[#allocation2 + $0x189] sm:$0xff] }
 0x4d7   : > { %8339 = vst [vmem:[#allocation19_spill] sm:$0xff] %v6877_v59 }
 0x4da   : > { %2999 = vrot.lane.b32.xlu1 %v6385_v26, %s4457_s27  ;;  %2995 = vrot.lane.b32.xlu2 %v6358_v28, %s4457_s27 }
 0x4dc   : > { %2997 = vrot.lane.b32.xlu0 %v6377_v29, %s4457_s27  ;;  %v6821_v7 = vpop.permute.xlu1 %2851  ;;  %v6823_v25 = vpop.permute.xlu2 %2865 }
 0x4dd   : > { %8335 = vst [vmem:[#allocation136_spill] sm:$0xff] %v6821_v7  ;;  %v8351_v7 = vld [vmem:[#allocation62_spill] sm:$0xff] }
 0x4de   : > { %v6825_v48 = vpop.permute.xlu0 %2849 }
 0x4df   : > { %8336 = vst [vmem:[#allocation137_spill] sm:$0xff] %v6825_v48  ;;  %v8353_v48 = vld [vmem:[#allocation114_spill] sm:$0xff] }
 0x4e2   : > { %3005 = vrot.lane.b32.xlu1 %v6399_v52, %s4457_s27  ;;  %3001 = vrot.lane.b32.xlu2 %v6369_v60, %s4457_s27 }
 0x4e4   : > { %3003 = vrot.lane.b32.xlu0 %v6391_v19, %s4457_s27  ;;  %v6833_v26 = vpop.permute.xlu1 %2857  ;;  %v6835_v28 = vpop.permute.xlu2 %2871 }
 0x4e5   : > { %8337 = vst [vmem:[#allocation158_spill] sm:$0xff] %v6833_v26 }
 0x4e6   : > { %v6837_v29 = vpop.permute.xlu0 %2855 }
 0x4e7   : > { %8338 = vst [vmem:[#allocation6_spill] sm:$0xff] %v6837_v29 }
 0x4ea   : > { %3011 = vrot.lane.b32.xlu1 %v6411_v53, %s4457_s27  ;;  %3007 = vrot.lane.b32.xlu2 %v6383_v42, %s4457_s27 }
 0x4ec   : > { %3009 = vrot.lane.b32.xlu0 %v6405_v54, %s4457_s27  ;;  %v6845_v52 = vpop.permute.xlu1 %2863  ;;  %v6847_v60 = vpop.permute.xlu2 %2877 }
 0x4ee   : > { %v6849_v19 = vpop.permute.xlu0 %2861 }
 0x4f2   : > { %3017 = vrot.lane.b32.xlu1 %v6425_v24, %s4457_s27  ;;  %3013 = vrot.lane.b32.xlu2 %v6397_v0, %s4457_s27 }
 0x4f4   : > { %3015 = vrot.lane.b32.xlu0 %v6415_v33, %s4457_s27  ;;  %v6857_v53 = vpop.permute.xlu1 %2869  ;;  %v6859_v42 = vpop.permute.xlu2 %2883 }
 0x4f6   : > { %v6861_v54 = vpop.permute.xlu0 %2867 }
 0x4fa   : > { %3023 = vrot.lane.b32.xlu1 %v6863_v2, %s4457_s27  ;;  %3019 = vrot.lane.b32.xlu2 %v6420_v23, %s4457_s27 }
 0x4fc   : > { %3021 = vrot.lane.b32.xlu0 %v6430_v57, %s4457_s27  ;;  %v6871_v0 = vpop.permute.xlu1 %2875  ;;  %v6873_v33 = vpop.permute.xlu2 %2889 }
 0x4fe   : > { %v6875_v24 = vpop.permute.xlu0 %2873 }
 0x502   : > { %3093 = vrot.lane.b32.xlu1 %v6449_v56, %s4458_s28  ;;  %3025 = vrot.lane.b32.xlu2 %v6877_v59, %s4457_s27 }
 0x504   : > { %3091 = vrot.lane.b32.xlu0 %v6442_v17, %s4458_s28  ;;  %v6885_v23 = vpop.permute.xlu1 %2881  ;;  %v6887_v57 = vpop.permute.xlu2 %2895 }
 0x506   : > { %v6889_v47 = vpop.permute.xlu0 %2879 }
 0x50a   : > { %3099 = vrot.lane.b32.xlu1 %v6463_v11, %s4458_s28  ;;  %3095 = vrot.lane.b32.xlu2 %v6440_v3, %s4458_s28 }
 0x50c   : > { %3097 = vrot.lane.b32.xlu0 %v6457_v5, %s4458_s28  ;;  %v6897_v56 = vpop.permute.xlu1 %2887  ;;  %v6899_v26 = vpop.permute.xlu2 %2965 }
 0x50e   : > { %v6901_v17 = vpop.permute.xlu0 %2885 }
 0x512   : > { %3105 = vrot.lane.b32.xlu1 %v6479_v32, %s4458_s28  ;;  %3101 = vrot.lane.b32.xlu2 %v6455_v39, %s4458_s28 }
 0x514   : > { %3103 = vrot.lane.b32.xlu0 %v6473_v45, %s4458_s28  ;;  %v6909_v11 = vpop.permute.xlu1 %2893  ;;  %v6911_v29 = vpop.permute.xlu2 %2971 }
 0x516   : > { %v6913_v13 = vpop.permute.xlu0 %2891 }
 0x517   : > { %8340 = vst [vmem:[#allocation20_spill] sm:$0xff] %v6913_v13 }
 0x51a   : > { %3111 = vrot.lane.b32.xlu1 %v6495_v18, %s4458_s28  ;;  %3107 = vrot.lane.b32.xlu2 %v6471_v16, %s4458_s28 }
 0x51c   : > { %3109 = vrot.lane.b32.xlu0 %v6489_v46, %s4458_s28  ;;  %v6921_v32 = vpop.permute.xlu1 %2963  ;;  %v6923_v39 = vpop.permute.xlu2 %2977 }
 0x51d   : > { %8341 = vst [vmem:[#allocation69_spill] sm:$0xff] %v6923_v39 }
 0x51e   : > { %v6925_v45 = vpop.permute.xlu0 %2897 }
 0x51f   : > { %8342 = vst [vmem:[#allocation84_spill] sm:$0xff] %v6925_v45 }
 0x522   : > { %3117 = vrot.lane.b32.xlu1 %v6513_v6, %s4458_s28  ;;  %3113 = vrot.lane.b32.xlu2 %v6487_v1, %s4458_s28 }
 0x524   : > { %3115 = vrot.lane.b32.xlu0 %v6507_v4, %s4458_s28  ;;  %v6933_v18 = vpop.permute.xlu1 %2969  ;;  %v6935_v16 = vpop.permute.xlu2 %2983 }
 0x525   : > { %8343 = vst [vmem:[#allocation91_spill] sm:$0xff] %v6935_v16  ;;  %v3586_v16 = vsel %vm225_vm0, %v6653_v10, %v6555_v9 }
 0x526   : > { %v6937_v46 = vpop.permute.xlu0 %2967 }
 0x52a   : > { %3123 = vrot.lane.b32.xlu1 %v6531_v36, %s4458_s28  ;;  %3119 = vrot.lane.b32.xlu2 %v6505_v37, %s4458_s28 }
 0x52c   : > { %3121 = vrot.lane.b32.xlu0 %v6525_v41, %s4458_s28  ;;  %v6945_v6 = vpop.permute.xlu1 %2975  ;;  %v6947_v1 = vpop.permute.xlu2 %2989 }
 0x52d   : > { %8344 = vst [vmem:[#allocation104_spill] sm:$0xff] %v6945_v6  ;;  %v8358_v6 = vld [vmem:[#allocation61_spill] sm:$0xff] }
 0x52e   : > { %v6949_v4 = vpop.permute.xlu0 %2973 }
 0x52f   : > { %8345 = vst [vmem:[#allocation116_spill] sm:$0xff] %v6949_v4 }
 0x532   : > { %3129 = vrot.lane.b32.xlu1 %v6549_v12, %s4458_s28  ;;  %3125 = vrot.lane.b32.xlu2 %v6523_v63, %s4458_s28 }
 0x534   : > { %3127 = vrot.lane.b32.xlu0 %v6543_v49, %s4458_s28  ;;  %v6957_v36 = vpop.permute.xlu1 %2981  ;;  %v6959_v37 = vpop.permute.xlu2 %2995 }
 0x535   : > { %8346 = vst [vmem:[#allocation22_spill] sm:$0xff] %v6957_v36  ;;  %v8350_v36 = vld [vmem:[#allocation18_spill] sm:$0xff] }
 0x536   : > { %v6961_v41 = vpop.permute.xlu0 %2979 }
 0x537   : > { %8347 = vst [vmem:[#allocation70_spill] sm:$0xff] %v6961_v41  ;;  %v3618_v41 = vsel %vm1677_vm4, %v3586_v16, %v8350_v36  ;;  %v8354_v16 = vld [vmem:[#allocation156_spill] sm:$0xff]  ;;  %v8356_v36 = vld [vmem:[#allocation23_spill] sm:$0xff] }
 0x53a   : > { %3135 = vrot.lane.b32.xlu1 %v6567_v44, %s4458_s28  ;;  %3131 = vrot.lane.b32.xlu2 %v6541_v15, %s4458_s28 }
 0x53c   : > { %3133 = vrot.lane.b32.xlu0 %v6561_v20, %s4458_s28  ;;  %v6969_v45 = vpop.permute.xlu1 %2987  ;;  %v6971_v63 = vpop.permute.xlu2 %3001 }
 0x53d   : > { %8348 = vst [vmem:[#allocation124_spill] sm:$0xff] %v6969_v45  ;;  %v3650_v45 = vsel %vm1710_vm5, %v3618_v41, %v6823_v25  ;;  %v8355_v25 = vld [vmem:[#allocation26_spill] sm:$0xff]  ;;  %v8357_v41 = vld [vmem:[#allocation113_spill] sm:$0xff] }
 0x53e   : > { %v6973_v13 = vpop.permute.xlu0 %2985 }
 0x53f   : > { %8349 = vst [vmem:[#allocation131_spill] sm:$0xff] %v6973_v13 }
 0x542   : > { %3141 = vrot.lane.b32.xlu1 %v6585_v35, %s4458_s28  ;;  %3137 = vrot.lane.b32.xlu2 %v6559_v21, %s4458_s28  ;;  %v8352_v35 = vld [vmem:[#allocation5_spill] sm:$0xff] }
 0x543   : > { %v3589_v21 = vsel %vm225_vm0, %v8353_v48, %v8352_v35 }
 0x544   : > { %3139 = vrot.lane.b32.xlu0 %v8351_v7, %s4458_s28  ;;  %v2994_v13 = vpop.permute.xlu1 %2993  ;;  %v6988_v39 = vpop.permute.xlu2 %3007  ;;  %v3621_v7 = vsel %vm1677_vm4, %v3589_v21, %v6745_v55 }
 0x545   : > { %v6991_v9 = vsel %vm1743_vm7, %v3650_v45, %v2994_v13  ;;  %v3588_v13 = vsel %vm225_vm0, %v8357_v41, %v8356_v36  ;;  %v3653_v45 = vsel %vm1710_vm5, %v3621_v7, %v6835_v28  ;;  %v2451_v28 = vld [vmem:[#allocation2 + $0x30] sm:$0xff] }
 0x546   : > { %v6993_v10 = vpop.permute.xlu0 %2991  ;;  %v3620_v59 = vsel %vm1677_vm4, %v3588_v13, %v8359_v62  ;;  %v2499_v7 = vld [vmem:[#allocation2 + $0xf1] sm:$0xff] }
 0x547   : > { %v3652_v55 = vsel %vm1710_vm5, %v3620_v59, %v6857_v53  ;;  %v2483_v59 = vld [vmem:[#allocation2 + $0x31] sm:$0xff]  ;;  %v8361_v53 = vld [vmem:[#allocation157_spill] sm:$0xff] }
 0x54a   : > { %3251 = vrot.lane.b32.xlu1 %v8354_v16, %s4459_s29  ;;  %3143 = vrot.lane.b32.xlu2 %v8355_v25, %s4458_s28 }
 0x54c   : > { %3145 = vrot.lane.b32.xlu0 %v8358_v6, %s4458_s28  ;;  %v3000_v48 = vpop.permute.xlu1 %2999  ;;  %v7011_v35 = vpop.permute.xlu2 %3013 }
 0x54d   : > { %v7016_v25 = vsel %vm1743_vm7, %v3653_v45, %v3000_v48  ;;  %v2452_v48 = vld [vmem:[#allocation2 + $0x38] sm:$0xff] }
 0x54e   : > { %v2998_v21 = vpop.permute.xlu0 %2997 }
 0x54f   : > { %v7021_v36 = vsel %vm1743_vm7, %v3652_v55, %v2998_v21  ;;  %v2500_v55 = vld [vmem:[#allocation2 + $0xf9] sm:$0xff]  ;;  %v8363_v21 = vld [vmem:[#allocation79_spill] sm:$0xff] }
 0x552   : > { %3219 = vrot.lane.b32.xlu1 %v2451_v28, %s4459_s29  ;;  %3379 = vrot.lane.b32.xlu2 %v2499_v7, %s4460_s30  ;;  %v8364_v28 = vld [vmem:[#allocation135_spill] sm:$0xff] }
 0x553   : > { %v3598_v7 = vsel %vm225_vm0, %v8364_v28, %v8363_v21  ;;  %v8365_v28 = vld [vmem:[#allocation112_spill] sm:$0xff] }
 0x554   : > { %3507 = vrot.lane.b32.xlu0 %v6543_v49, %s4461_s6  ;;  %v7027_v62 = vpop.permute.xlu1 %3005  ;;  %v7029_v6 = vpop.permute.xlu2 %3019 }
 0x555   : > { %8360 = vst [vmem:[#allocation146_spill] sm:$0xff] %v7029_v6 }
 0x556   : > { %v7031_v41 = vpop.permute.xlu0 %3003 }
 0x55a   : > { %3475 = vrot.lane.b32.xlu1 %v6440_v3, %s4461_s6  ;;  %3347 = vrot.lane.b32.xlu2 %v2483_v59, %s4460_s30  ;;  %v3630_v3 = vsel %vm1677_vm4, %v3598_v7, %v6777_v50  ;;  %v8367_v50 = vld [vmem:[#allocation47_spill] sm:$0xff] }
 0x55b   : > { %v3662_v59 = vsel %vm1710_vm5, %v3630_v3, %v6873_v33  ;;  %v8368_v33 = vld [vmem:[#allocation34_spill] sm:$0xff]  ;;  %v8369_v3 = vld [vmem:[#allocation143_spill] sm:$0xff] }
 0x55c   : > { %3253 = vrot.lane.b32.xlu0 %v8361_v53, %s4459_s29  ;;  %v7038_v13 = vpop.permute.xlu1 %3011  ;;  %v7040_v45 = vpop.permute.xlu2 %3025 }
 0x55d   : > { %8362 = vst [vmem:[#allocation159_spill] sm:$0xff] %v7040_v45 }
 0x55e   : > { %v7042_v49 = vpop.permute.xlu0 %3009 }
 0x562   : > { %3221 = vrot.lane.b32.xlu1 %v2452_v48, %s4459_s29  ;;  %3381 = vrot.lane.b32.xlu2 %v2500_v55, %s4460_s30  ;;  %v2484_v48 = vld [vmem:[#allocation2 + $0x39] sm:$0xff] }
 0x563   : > { %v8366_v55 = vld [vmem:[#allocation53_spill] sm:$0xff] }
 0x564   : > { %3509 = vrot.lane.b32.xlu0 %v6549_v12, %s4461_s6  ;;  %v3018_v45 = vpop.permute.xlu1 %3017  ;;  %v7055_v6 = vpop.permute.xlu2 %3095  ;;  %v3601_v30 = vsel %vm225_vm0, %v8366_v55, %v8365_v28 }
 0x565   : > { %v7058_v4 = vsel %vm1743_vm7, %v3662_v59, %v3018_v45  ;;  %v3633_v12 = vsel %vm1677_vm4, %v3601_v30, %v6789_v51  ;;  %v3600_v45 = vsel %vm225_vm0, %v8368_v33, %v8367_v50 }
 0x566   : > { %v7060_v21 = vpop.permute.xlu0 %3015  ;;  %v3665_v7 = vsel %vm1710_vm5, %v3633_v12, %v6887_v57  ;;  %v2453_v57 = vld [vmem:[#allocation2 + $0x48] sm:$0xff] }
 0x567   : > { %v2501_v12 = vld [vmem:[#allocation2 + $0x109] sm:$0xff] }
 0x56a   : > { %3477 = vrot.lane.b32.xlu1 %v6457_v5, %s4461_s6  ;;  %3349 = vrot.lane.b32.xlu2 %v2484_v48, %s4460_s30  ;;  %v3632_v5 = vsel %vm1677_vm4, %v3600_v45, %v6752_v8  ;;  %v2485_v45 = vld [vmem:[#allocation2 + $0x49] sm:$0xff] }
 0x56b   : > { %v3664_v51 = vsel %vm1710_vm5, %v3632_v5, %v6909_v11  ;;  %v2517_v11 = vld [vmem:[#allocation2 + $0x4a] sm:$0xff] }
 0x56c   : > { %3255 = vrot.lane.b32.xlu0 %v8369_v3, %s4459_s29  ;;  %v3024_v59 = vpop.permute.xlu1 %3023  ;;  %v7077_v28 = vpop.permute.xlu2 %3101 }
 0x56d   : > { %8370 = vst [vmem:[#allocation160_spill] sm:$0xff] %v7077_v28  ;;  %v7082_v48 = vsel %vm1743_vm7, %v3665_v7, %v3024_v59  ;;  %v8374_v7 = vld [vmem:[#allocation94_spill] sm:$0xff] }
 0x56e   : > { %8371 = vst [vmem:[#allocation10_spill] sm:$0xff] %v7082_v48  ;;  %v3022_v30 = vpop.permute.xlu0 %3021  ;;  %v2502_v48 = vld [vmem:[#allocation2 + $0x111] sm:$0xff]  ;;  %v8389_v28 = vld [vmem:[#allocation118_spill] sm:$0xff] }
 0x56f   : > { %v7087_v55 = vsel %vm1743_vm7, %v3664_v51, %v3022_v30  ;;  %v8376_v51 = vld [vmem:[#allocation78_spill] sm:$0xff]  ;;  %v8377_v30 = vld [vmem:[#allocation17_spill] sm:$0xff] }
 0x570   : > { %8372 = vst [vmem:[#allocation35_spill] sm:$0xff] %v7087_v55  ;;  %v8378_v55 = vld [vmem:[#allocation122_spill] sm:$0xff] }
 0x572   : > { %3223 = vrot.lane.b32.xlu1 %v2453_v57, %s4459_s29  ;;  %3383 = vrot.lane.b32.xlu2 %v2501_v12, %s4460_s30  ;;  %v3585_v57 = vsel %vm225_vm0, %v8377_v30, %v8376_v51  ;;  %v2454_v12 = vld [vmem:[#allocation2 + $0x50] sm:$0xff] }
 0x574   : > { %3511 = vrot.lane.b32.xlu0 %v6541_v15, %s4461_s6  ;;  %v7093_v8 = vpop.permute.xlu1 %3093  ;;  %v7095_v50 = vpop.permute.xlu2 %3107 }
 0x575   : > { %8373 = vst [vmem:[#allocation73_spill] sm:$0xff] %v7095_v50 }
 0x576   : > { %v7097_v33 = vpop.permute.xlu0 %3091 }
 0x57a   : > { %3479 = vrot.lane.b32.xlu1 %v2517_v11, %s4461_s6  ;;  %3351 = vrot.lane.b32.xlu2 %v2485_v45, %s4460_s30  ;;  %v3617_v11 = vsel %vm1677_vm4, %v3585_v57, %v8378_v55  ;;  %v2518_v57 = vld [vmem:[#allocation2 + $0x52] sm:$0xff] }
 0x57b   : > { %v3649_v45 = vsel %vm1710_vm5, %v3617_v11, %v6845_v52  ;;  %v8382_v52 = vld [vmem:[#allocation103_spill] sm:$0xff]  ;;  %v8385_v11 = vld [vmem:[#allocation4_spill] sm:$0xff] }
 0x57c   : > { %3257 = vrot.lane.b32.xlu0 %v8374_v7, %s4459_s29  ;;  %v7103_v59 = vpop.permute.xlu1 %3099  ;;  %v7105_v5 = vpop.permute.xlu2 %3113 }
 0x57d   : > { %8375 = vst [vmem:[#allocation74_spill] sm:$0xff] %v7105_v5  ;;  %v3681_v5 = vsel %vm1743_vm7, %v3649_v45, %v6993_v10 }
 0x57e   : > { %v7107_v15 = vpop.permute.xlu0 %3097 }
 0x582   : > { %3225 = vrot.lane.b32.xlu1 %v2454_v12, %s4459_s29  ;;  %3385 = vrot.lane.b32.xlu2 %v2502_v48, %s4460_s30  ;;  %v2486_v12 = vld [vmem:[#allocation2 + $0x51] sm:$0xff] }
 0x584   : > { %3513 = vrot.lane.b32.xlu0 %v6561_v20, %s4461_s6  ;;  %v7122_v50 = vpop.permute.xlu1 %3105  ;;  %v3120_v51 = vpop.permute.xlu2 %3119 }
 0x585   : > { %8379 = vst [vmem:[#allocation97_spill] sm:$0xff] %v7122_v50  ;;  %v7125_v30 = vsel %vm1776_vm6, %v3681_v5, %v3120_v51  ;;  %v8386_v5 = vld [vmem:[#allocation80_spill] sm:$0xff]  ;;  %v8387_v51 = vld [vmem:[#allocation142_spill] sm:$0xff] }
 0x586   : > { %8380 = vst [vmem:[#allocation105_spill] sm:$0xff] %v7125_v30  ;;  %v7127_v55 = vpop.permute.xlu0 %3103  ;;  %v3584_v45 = vsel %vm225_vm0, %v8386_v5, %v8385_v11  ;;  %v3591_v30 = vsel %vm225_vm0, %v8354_v16, %v8387_v51  ;;  %v2503_v50 = vld [vmem:[#allocation2 + $0x121] sm:$0xff] }
 0x587   : > { %8381 = vst [vmem:[#allocation111_spill] sm:$0xff] %v7127_v55  ;;  %v2472_v51 = vld [vmem:[#allocation2 + $0x128] sm:$0xff] }
 0x58a   : > { %3481 = vrot.lane.b32.xlu1 %v2518_v57, %s4461_s6  ;;  %3353 = vrot.lane.b32.xlu2 %v2486_v12, %s4460_s30  ;;  %v2455_v57 = vld [vmem:[#allocation2 + $0x60] sm:$0xff]  ;;  %v8388_v12 = vld [vmem:[#allocation110_spill] sm:$0xff] }
 0x58b   : > { %v3616_v55 = vsel %vm1677_vm4, %v3584_v45, %v8388_v12 }
 0x58c   : > { %3259 = vrot.lane.b32.xlu0 %v8382_v52, %s4459_s29  ;;  %v7133_v10 = vpop.permute.xlu1 %3111  ;;  %v7135_v20 = vpop.permute.xlu2 %3125 }
 0x58d   : > { %8383 = vst [vmem:[#allocation119_spill] sm:$0xff] %v7133_v10  ;;  %v3623_v10 = vsel %vm1677_vm4, %v3591_v30, %v8389_v28 }
 0x58e   : > { %v7137_v48 = vpop.permute.xlu0 %3109  ;;  %v3655_v11 = vsel %vm1710_vm5, %v3623_v10, %v6871_v0  ;;  %v8390_v0 = vld [vmem:[#allocation48_spill] sm:$0xff]  ;;  %v2487_v10 = vld [vmem:[#allocation2 + $0x61] sm:$0xff] }
 0x58f   : > { %8384 = vst [vmem:[#allocation72_spill] sm:$0xff] %v7137_v48  ;;  %v3648_v48 = vsel %vm1710_vm5, %v3616_v55, %v6849_v19  ;;  %v3687_v5 = vsel %vm1743_vm7, %v3655_v11, %v7031_v41  ;;  %v2519_v55 = vld [vmem:[#allocation2 + $0x62] sm:$0xff] }
 0x590   : > { %v3680_v16 = vsel %vm1743_vm7, %v3648_v48, %v6947_v1  ;;  %v3594_v1 = vsel %vm225_vm0, %v8374_v7, %v8390_v0  ;;  %v8391_v41 = vld [vmem:[#allocation153_spill] sm:$0xff] }
 0x591   : > { %v3626_v48 = vsel %vm1677_vm4, %v3594_v1, %v8391_v41  ;;  %v8394_v1 = vld [vmem:[#allocation93_spill] sm:$0xff]  ;;  %v2504_v41 = vld [vmem:[#allocation2 + $0x129] sm:$0xff] }
 0x592   : > { %3227 = vrot.lane.b32.xlu1 %v2455_v57, %s4459_s29  ;;  %3387 = vrot.lane.b32.xlu2 %v2503_v50, %s4460_s30 }
 0x594   : > { %3515 = vrot.lane.b32.xlu0 %v6567_v44, %s4461_s6  ;;  %v3118_v28 = vpop.permute.xlu1 %3117  ;;  %v3132_v30 = vpop.permute.xlu2 %3131  ;;  %v3658_v44 = vsel %vm1710_vm5, %v3626_v48, %v6885_v23  ;;  %v3831_v23 = vld [vmem:[%s7828_s3 + $0x20] sm:$0xf]  ;;  %v8396_v48 = vld [vmem:[#allocation83_spill] sm:$0xff] }
 0x595   : > { %v7162_v45 = vsel %vm1776_vm6, %v3680_v16, %v3118_v28  ;;  %v7165_v50 = vsel %vm1776_vm6, %v3687_v5, %v3132_v30  ;;  %v3690_v57 = vsel %vm1743_vm7, %v3658_v44, %v7042_v49  ;;  %4379 = vmatpush.msk.msra.mxu3 %vm2014_vm3, %v3831_v23  ;;  %v3830_v49 = vld [vmem:[%s7828_s3 + $0x18] sm:$0xff]  ;;  %4337 = vmatpush.msk.msra.mxu1 %vm2014_vm3, %v3831_v23  ;;  %v8392_v28 = vld [vmem:[#allocation13_spill] sm:$0xff]  ;;  %v2536_v23 = vld [vmem:[#allocation2 + $0x12a] sm:$0xff] }
 0x596   : > { %v7167_v19 = vpop.permute.xlu0 %3115  ;;  %v8393_v30 = vld [vmem:[#allocation101_spill] sm:$0xff] }
 0x597   : > { %v3590_v0 = vsel %vm225_vm0, %v8393_v30, %v8392_v28  ;;  %4380 = vmatpush.msra.mxu3 %v3830_v49  ;;  %3947 = vmatpush.msra.mxu1 %v3830_v49  ;;  %v8397_v49 = vld [vmem:[#allocation59_spill] sm:$0xff] }
 0x598   : > { %v3622_v44 = vsel %vm1677_vm4, %v3590_v0, %v8396_v48 }
 0x59a   : > { %3483 = vrot.lane.b32.xlu1 %v2519_v55, %s4461_s6  ;;  %3355 = vrot.lane.b32.xlu2 %v2487_v10, %s4460_s30  ;;  %v8395_v55 = vld [vmem:[#allocation66_spill] sm:$0xff] }
 0x59b   : > { %v2456_v10 = vld [vmem:[#allocation2 + $0x68] sm:$0xff] }
 0x59c   : > { %3261 = vrot.lane.b32.xlu0 %v2472_v51, %s4459_s29  ;;  %v7181_v12 = vpop.permute.xlu1 %3123  ;;  %v3138_v7 = vpop.permute.xlu2 %3137 }
 0x59d   : > { %v7184_v11 = vsel %vm1776_vm6, %v3690_v57, %v3138_v7  ;;  %v3829_v57 = vld [vmem:[%s7828_s3 + $0x10] sm:$0xff]  ;;  %v3654_v7 = vsel %vm1710_vm5, %v3622_v44, %v6875_v24  ;;  %v8398_v44 = vld [vmem:[#allocation60_spill] sm:$0xff] }
 0x59e   : > { %v3122_v16 = vpop.permute.xlu0 %3121  ;;  %4381 = vmatpush.msra.mxu3 %v3829_v57  ;;  %3948 = vmatpush.msra.mxu1 %v3829_v57 }
 0x59f   : > { %v7188_v5 = vsel %vm1776_vm6, %v6991_v9, %v3122_v16  ;;  %v3597_v9 = vsel %vm225_vm0, %v8395_v55, %v8394_v1 }
 0x5a0   : > { %v3629_v51 = vsel %vm1677_vm4, %v3597_v9, %v6743_v34  ;;  %v3686_v34 = vsel %vm1743_vm7, %v3654_v7, %v6971_v63  ;;  %v3593_v9 = vsel %vm225_vm0, %v8369_v3, %v8397_v49  ;;  %v2537_v49 = vld [vmem:[#allocation2 + $0x13a] sm:$0xff] }
 0x5a1   : > { %v3661_v16 = vsel %vm1710_vm5, %v3629_v51, %v6897_v56  ;;  %v3828_v56 = vld [vmem:[%s7828_s3 + $0x8] sm:$0xff]  ;;  %v3625_v48 = vsel %vm1677_vm4, %v3593_v9, %v6750_v43  ;;  %v3592_v51 = vsel %vm225_vm0, %v8361_v53, %v8398_v44 }
 0x5a2   : > { %3229 = vrot.lane.b32.xlu1 %v2456_v10, %s4459_s29  ;;  %3389 = vrot.lane.b32.xlu2 %v2504_v41, %s4460_s30  ;;  %v3693_v28 = vsel %vm1743_vm7, %v3661_v16, %v7060_v21  ;;  %v3827_v21 = vld [vmem:[%s7828_s3] sm:$0xff]  ;;  %v2520_v10 = vld [vmem:[#allocation2 + $0x6a] sm:$0xff]  ;;  %v3657_v57 = vsel %vm1710_vm5, %v3625_v48, %v6889_v47  ;;  %v3624_v3 = vsel %vm1677_vm4, %v3592_v51, %v6754_v40 }
 0x5a3   : > { %4382 = vmatpush.msra.mxu3 %v3828_v56  ;;  %3949 = vmatpush.msra.mxu1 %v3828_v56  ;;  %v2488_v41 = vld [vmem:[#allocation2 + $0x69] sm:$0xff]  ;;  %v3689_v7 = vsel %vm1743_vm7, %v3657_v57, %v6988_v39  ;;  %v8400_v39 = vld [vmem:[#allocation68_spill] sm:$0xff] }
 0x5a4   : > { %3517 = vrot.lane.b32.xlu0 %v2536_v23, %s4461_s6  ;;  %v3130_v30 = vpop.permute.xlu1 %3129  ;;  %v3144_v0 = vpop.permute.xlu2 %3143  ;;  %v3656_v23 = vsel %vm1710_vm5, %v3624_v3, %v6847_v60  ;;  %v8401_v60 = vld [vmem:[#allocation15_spill] sm:$0xff]  ;;  %v2489_v57 = vld [vmem:[#allocation2 + $0x79] sm:$0xff] }
 0x5a5   : > { %v7223_v1 = vsel %vm1776_vm6, %v3686_v34, %v3130_v30  ;;  %v7226_v24 = vsel %vm1776_vm6, %v3693_v28, %v3144_v0  ;;  %4383 = vmatpush.msra.mxu3 %v3827_v21  ;;  %3950 = vmatpush.msra.mxu1 %v3827_v21  ;;  %v3688_v47 = vsel %vm1743_vm7, %v3656_v23, %v7027_v62  ;;  %v8399_v28 = vld [vmem:[#allocation63_spill] sm:$0xff]  ;;  %v2505_v0 = vld [vmem:[#allocation2 + $0x139] sm:$0xff] }
 0x5a6   : > { %v7231_v63 = vpop.permute.xlu0 %3127  ;;  %v3596_v30 = vsel %vm225_vm0, %v8400_v39, %v8399_v28  ;;  %v3595_v62 = vsel %vm225_vm0, %v8382_v52, %v8401_v60 }
 0x5a7   : > { %v3628_v56 = vsel %vm1677_vm4, %v3596_v30, %v6761_v22  ;;  %v3627_v9 = vsel %vm1677_vm4, %v3595_v62, %v6765_v58  ;;  %v2521_v58 = vld [vmem:[#allocation2 + $0x7a] sm:$0xff] }
 0x5a8   : > { %v3660_v21 = vsel %vm1710_vm5, %v3628_v56, %v6901_v17  ;;  %v3659_v48 = vsel %vm1710_vm5, %v3627_v9, %v6859_v42  ;;  %v2259_v30 = vld [vmem:[#allocation2] sm:$0xff] }
 0x5a9   : > { %v3691_v17 = vsel %vm1743_vm7, %v3659_v48, %v7038_v13  ;;  %v2506_v56 = vld [vmem:[#allocation2 + $0x141] sm:$0xff] }
 0x5aa   : > { %3485 = vrot.lane.b32.xlu1 %v2520_v10, %s4461_s6  ;;  %3357 = vrot.lane.b32.xlu2 %v2488_v41, %s4460_s30  ;;  %v3692_v10 = vsel %vm1743_vm7, %v3660_v21, %v7011_v35  ;;  %v2474_v35 = vld [vmem:[#allocation2 + $0x140] sm:$0xff]  ;;  %v8405_v21 = vld [vmem:[#allocation8_spill] sm:$0xff] }
 0x5ac   : > { %3263 = vrot.lane.b32.xlu0 %v8395_v55, %s4459_s29  ;;  %v3136_v43 = vpop.permute.xlu1 %3135  ;;  %v3380_v16 = vpop.permute.xlu2 %3379  ;;  %v2457_v55 = vld [vmem:[#allocation2 + $0x78] sm:$0xff] }
 0x5ad   : > { %v7257_v34 = vsel %vm1776_vm6, %v3689_v7, %v3136_v43  ;;  %v8402_v7 = vld [vmem:[#allocation25_spill] sm:$0xff]  ;;  %v8403_v43 = vld [vmem:[#allocation16_spill] sm:$0xff] }
 0x5ae   : > { %v3134_v53 = vpop.permute.xlu0 %3133  ;;  %v3587_v23 = vsel %vm225_vm0, %v8403_v43, %v8402_v7 }
 0x5af   : > { %v7262_v40 = vsel %vm1776_vm6, %v3688_v47, %v3134_v53  ;;  %v8404_v47 = vld [vmem:[#allocation145_spill] sm:$0xff] }
 0x5b0   : > { %v3619_v53 = vsel %vm1677_vm4, %v3587_v23, %v8404_v47  ;;  %v2260_v23 = vld [vmem:[#allocation2 + $0x8] sm:$0xff]  ;;  %v2507_v47 = vld [vmem:[#allocation2 + $0x151] sm:$0xff] }
 0x5b1   : > { %v3651_v39 = vsel %vm1710_vm5, %v3619_v53, %v6861_v54  ;;  %v3716_v53 = vsel %vm1776_vm6, %v7021_v36, %v7135_v20 }
 0x5b2   : > { %3231 = vrot.lane.b32.xlu1 %v2457_v55, %s4459_s29  ;;  %3391 = vrot.lane.b32.xlu2 %v2505_v0, %s4460_s30  ;;  %v3683_v55 = vsel %vm1743_vm7, %v3651_v39, %v6959_v37  ;;  %v2458_v0 = vld [vmem:[#allocation2 + $0x80] sm:$0xff]  ;;  %v8406_v37 = vld [vmem:[#allocation155_spill] sm:$0xff] }
 0x5b3   : > { %v3715_v60 = vsel %vm1776_vm6, %v3683_v55, %v7181_v12 }
 0x5b4   : > { %3519 = vrot.lane.b32.xlu0 %v2537_v49, %s4461_s6  ;;  %v3142_v22 = vpop.permute.xlu1 %3141  ;;  %v3348_v41 = vpop.permute.xlu2 %3347  ;;  %v3571_v49 = vsel %vm225_vm0, %v2259_v30, %v8405_v21  ;;  %v2539_v30 = vld [vmem:[#allocation2 + $0x152] sm:$0xff] }
 0x5b5   : > { %v7284_v44 = vsel %vm1776_vm6, %v3692_v10, %v3142_v22  ;;  %v3603_v10 = vsel %vm1677_vm4, %v3571_v49, %v8406_v37 }
 0x5b6   : > { %v3140_v52 = vpop.permute.xlu0 %3139  ;;  %v3635_v12 = vsel %vm1710_vm5, %v3603_v10, %v6763_v27  ;;  %v2475_v27 = vld [vmem:[#allocation2 + $0x150] sm:$0xff] }
 0x5b7   : > { %v7289_v51 = vsel %vm1776_vm6, %v3691_v17, %v3140_v52  ;;  %v3667_v17 = vsel %vm1743_vm7, %v3635_v12, %v6921_v32  ;;  %v2523_v10 = vld [vmem:[#allocation2 + $0x92] sm:$0xff] }
 0x5b8   : > { %v2491_v12 = vld [vmem:[#allocation2 + $0x91] sm:$0xff] }
 0x5ba   : > { %3487 = vrot.lane.b32.xlu1 %v2521_v58, %s4461_s6  ;;  %3359 = vrot.lane.b32.xlu2 %v2489_v57, %s4460_s30  ;;  %v3699_v58 = vsel %vm1776_vm6, %v3667_v17, %v7097_v33  ;;  %v2460_v17 = vld [vmem:[#allocation2 + $0x98] sm:$0xff] }
 0x5bc   : > { %3265 = vrot.lane.b32.xlu0 %v2474_v35, %s4459_s29  ;;  %v3252_v42 = vpop.permute.xlu1 %3251  ;;  %v3382_v3 = vpop.permute.xlu2 %3381  ;;  %v2522_v35 = vld [vmem:[#allocation2 + $0x82] sm:$0xff] }
 0x5bd   : > { %v3747_v62 = vsel %vm1809_vm8, %v3715_v60, %v3252_v42  ;;  %v2490_v42 = vld [vmem:[#allocation2 + $0x81] sm:$0xff] }
 0x5be   : > { %v3146_v13 = vpop.permute.xlu0 %3145  ;;  %v3779_v48 = vsel %vm1842_vm10, %v3747_v62, %v3380_v16  ;;  %v8408_v60 = vld [vmem:[#allocation133_spill] sm:$0xff] }
 0x5bf   : > { %v7301_v28 = vsel %vm1776_vm6, %v7058_v4, %v3146_v13  ;;  %v2538_v4 = vld [vmem:[#allocation2 + $0x142] sm:$0xff]  ;;  %v2459_v13 = vld [vmem:[#allocation2 + $0x90] sm:$0xff] }
 0x5c2   : > { %3233 = vrot.lane.b32.xlu1 %v2458_v0, %s4459_s29  ;;  %3393 = vrot.lane.b32.xlu2 %v2506_v56, %s4460_s30 }
 0x5c4   : > { %3521 = vrot.lane.b32.xlu0 %v2538_v4, %s4461_s6  ;;  %v3220_v54 = vpop.permute.xlu1 %3219  ;;  %v3350_v9 = vpop.permute.xlu2 %3349 }
 0x5c5   : > { %v3731_v57 = vsel %vm1809_vm8, %v3699_v58, %v3220_v54  ;;  %v3717_v58 = vsel %vm1776_vm6, %v7016_v25, %v7231_v63 }
 0x5c6   : > { %v3508_v22 = vpop.permute.xlu0 %3507  ;;  %v3763_v7 = vsel %vm1842_vm10, %v3731_v57, %v3348_v41  ;;  %v8407_v41 = vld [vmem:[#allocation9_spill] sm:$0xff] }
 0x5c7   : > { %v3811_v52 = vsel %vm1875_vm9, %v3779_v48, %v3508_v22  ;;  %v3572_v55 = vsel %vm225_vm0, %v2260_v23, %v8407_v41  ;;  %v2492_v41 = vld [vmem:[#allocation2 + $0x99] sm:$0xff] }
 0x5c8   : > { %4354 = vmatmul.msk.f32.vlgmr.msra.gmra.mxu3 %vm1917_vm11, %v3811_v52  ;;  %v3604_v62 = vsel %vm1677_vm4, %v3572_v55, %v8408_v60  ;;  %v2508_v52 = vld [vmem:[#allocation2 + $0x159] sm:$0xff]  ;;  %v2461_v60 = vld [vmem:[#allocation2 + $0xa8] sm:$0xff] }
 0x5c9   : > { %v3636_v36 = vsel %vm1710_vm5, %v3604_v62, %v6801_v31  ;;  %v2476_v31 = vld [vmem:[#allocation2 + $0x158] sm:$0xff]  ;;  %v2509_v62 = vld [vmem:[#allocation2 + $0x169] sm:$0xff] }
 0x5ca   : > { %3489 = vrot.lane.b32.xlu1 %v2522_v35, %s4461_s6  ;;  %3361 = vrot.lane.b32.xlu2 %v2490_v42, %s4460_s30  ;;  %v3668_v21 = vsel %vm1743_vm7, %v3636_v36, %v6899_v26  ;;  %v2540_v35 = vld [vmem:[#allocation2 + $0x15a] sm:$0xff]  ;;  %v8409_v42 = vld [vmem:[#allocation3_spill] sm:$0xff] }
 0x5cb   : > { %v3700_v54 = vsel %vm1776_vm6, %v3668_v21, %v7093_v8  ;;  %v8412_v21 = vld [vmem:[#allocation11_spill] sm:$0xff] }
 0x5cc   : > { %3267 = vrot.lane.b32.xlu0 %v2475_v27, %s4459_s29  ;;  %v3476_v16 = vpop.permute.xlu1 %3475  ;;  %v3384_v32 = vpop.permute.xlu2 %3383 }
 0x5cd   : > { %v3795_v43 = vsel %vm1875_vm9, %v3763_v7, %v3476_v16 }
 0x5ce   : > { %v3254_v33 = vpop.permute.xlu0 %3253  ;;  %4338 = vmatmul.msk.f32.vlgmr.msra.gmra.mxu1 %vm1917_vm11, %v3795_v43  ;;  %v8411_v43 = vld [vmem:[#allocation92_spill] sm:$0xff] }
 0x5cf   : > { %v3748_v39 = vsel %vm1809_vm8, %v3716_v53, %v3254_v33 }
 0x5d0   : > { %v3780_v4 = vsel %vm1842_vm10, %v3748_v39, %v3382_v3 }
 0x5d2   : > { %3235 = vrot.lane.b32.xlu1 %v2459_v13, %s4459_s29  ;;  %3395 = vrot.lane.b32.xlu2 %v2507_v47, %s4460_s30 }
 0x5d4   : > { %3523 = vrot.lane.b32.xlu0 %v2539_v30, %s4461_s6  ;;  %v3222_v0 = vpop.permute.xlu1 %3221  ;;  %v3352_v56 = vpop.permute.xlu2 %3351  ;;  %v2524_v30 = vld [vmem:[#allocation2 + $0x9a] sm:$0xff] }
 0x5d5   : > { %v3732_v37 = vsel %vm1809_vm8, %v3700_v54, %v3222_v0 }
 0x5d6   : > { %v3510_v20 = vpop.permute.xlu0 %3509  ;;  %v3764_v22 = vsel %vm1842_vm10, %v3732_v37, %v3350_v9  ;;  %v8410_v9 = vld [vmem:[#allocation151_spill] sm:$0xff]  ;;  %v8413_v37 = vld [vmem:[#allocation90_spill] sm:$0xff] }
 0x5d7   : > { %v3812_v49 = vsel %vm1875_vm9, %v3780_v4, %v3510_v20  ;;  %v3573_v27 = vsel %vm225_vm0, %v8410_v9, %v8409_v42  ;;  %v2541_v20 = vld [vmem:[#allocation2 + $0x16a] sm:$0xff]  ;;  %v4433_v4 = vld [vmem:[#allocation2 + $0x20] sm:$0xff] }
 0x5d8   : > { %4355 = vmatmul.msk.f32.gmra.mxu3 %vm1917_vm11, %v3812_v49  ;;  %v3605_v33 = vsel %vm1677_vm4, %v3573_v27, %v8411_v43  ;;  %v3574_v49 = vsel %vm225_vm0, %v4433_v4, %v8412_v21  ;;  %v2510_v42 = vld [vmem:[#allocation2 + $0x171] sm:$0xff]  ;;  %v8414_v43 = vld [vmem:[#allocation50_spill] sm:$0xff] }
 0x5d9   : > { %v3637_v25 = vsel %vm1710_vm5, %v3605_v33, %v6797_v14  ;;  %v2477_v14 = vld [vmem:[#allocation2 + $0x168] sm:$0xff]  ;;  %v2542_v27 = vld [vmem:[#allocation2 + $0x172] sm:$0xff] }
 0x5da   : > { %3491 = vrot.lane.b32.xlu1 %v2523_v10, %s4461_s6  ;;  %3363 = vrot.lane.b32.xlu2 %v2491_v12, %s4460_s30  ;;  %v3669_v13 = vsel %vm1743_vm7, %v3637_v25, %v6937_v46  ;;  %v3606_v10 = vsel %vm1677_vm4, %v3574_v49, %v8413_v37  ;;  %v8417_v49 = vld [vmem:[#allocation29_spill] sm:$0xff] }
 0x5db   : > { %v3701_v53 = vsel %vm1776_vm6, %v3669_v13, %v7055_v6  ;;  %v3638_v12 = vsel %vm1710_vm5, %v3606_v10, %v6775_v61  ;;  %v2478_v61 = vld [vmem:[#allocation2 + $0x170] sm:$0xff] }
 0x5dc   : > { %3269 = vrot.lane.b32.xlu0 %v2476_v31, %s4459_s29  ;;  %v3478_v3 = vpop.permute.xlu1 %3477  ;;  %v3386_v26 = vpop.permute.xlu2 %3385 }
 0x5dd   : > { %v3796_v48 = vsel %vm1875_vm9, %v3764_v22, %v3478_v3 }
 0x5de   : > { %v3256_v8 = vpop.permute.xlu0 %3255  ;;  %4339 = vmatmul.msk.f32.gmra.mxu1 %vm1917_vm11, %v3796_v48 }
 0x5df   : > { %v3749_v57 = vsel %vm1809_vm8, %v3717_v58, %v3256_v8 }
 0x5e0   : > { %v3781_v23 = vsel %vm1842_vm10, %v3749_v57, %v3384_v32 }
 0x5e2   : > { %3237 = vrot.lane.b32.xlu1 %v2460_v17, %s4459_s29  ;;  %3397 = vrot.lane.b32.xlu2 %v2508_v52, %s4460_s30  ;;  %v2525_v17 = vld [vmem:[#allocation2 + $0xaa] sm:$0xff] }
 0x5e3   : > { %v2493_v52 = vld [vmem:[#allocation2 + $0xa9] sm:$0xff] }
 0x5e4   : > { %3525 = vrot.lane.b32.xlu0 %v2540_v35, %s4461_s6  ;;  %v3224_v16 = vpop.permute.xlu1 %3223  ;;  %v3354_v7 = vpop.permute.xlu2 %3353  ;;  %v2462_v35 = vld [vmem:[#allocation2 + $0xb0] sm:$0xff] }
 0x5e5   : > { %v3733_v39 = vsel %vm1809_vm8, %v3701_v53, %v3224_v16  ;;  %v4434_v16 = vld [vmem:[#allocation2 + $0x30] sm:$0xff] }
 0x5e6   : > { %v3512_v63 = vpop.permute.xlu0 %3511  ;;  %v3765_v55 = vsel %vm1842_vm10, %v3733_v39, %v3352_v56  ;;  %v3575_v33 = vsel %vm225_vm0, %v4434_v16, %v8414_v43 }
 0x5e7   : > { %v3813_v47 = vsel %vm1875_vm9, %v3781_v23, %v3512_v63  ;;  %v8415_v63 = vld [vmem:[#allocation64_spill] sm:$0xff] }
 0x5e8   : > { %4356 = vmatmul.msk.f32.gmra.mxu3 %vm1917_vm11, %v3813_v47  ;;  %v3607_v23 = vsel %vm1677_vm4, %v3575_v33, %v8415_v63  ;;  %v8423_v33 = vld [vmem:[#allocation130_spill] sm:$0xff] }
 0x5e9   : > { %v3639_v13 = vsel %vm1710_vm5, %v3607_v23, %v6813_v38  ;;  %v2494_v38 = vld [vmem:[#allocation2 + $0xb1] sm:$0xff] }
 0x5ea   : > { %3493 = vrot.lane.b32.xlu1 %v2524_v30, %s4461_s6  ;;  %3365 = vrot.lane.b32.xlu2 %v2492_v41, %s4460_s30 }
 0x5ec   : > { %3271 = vrot.lane.b32.xlu0 %v2477_v14, %s4459_s29  ;;  %v3480_v32 = vpop.permute.xlu1 %3479  ;;  %v3388_v46 = vpop.permute.xlu2 %3387  ;;  %v2479_v14 = vld [vmem:[#allocation2 + $0x180] sm:$0xff] }
 0x5ed   : > { %v3797_v0 = vsel %vm1875_vm9, %v3765_v55, %v3480_v32 }
 0x5ee   : > { %v3258_v6 = vpop.permute.xlu0 %3257  ;;  %4340 = vmatmul.msk.f32.gmra.mxu1 %vm1917_vm11, %v3797_v0 }
 0x5ef   : > { %v3750_v36 = vsel %vm1809_vm8, %v7223_v1, %v3258_v6  ;;  %v3670_v1 = vsel %vm1743_vm7, %v3638_v12, %v6933_v18  ;;  %v2526_v6 = vld [vmem:[#allocation2 + $0xb2] sm:$0xff] }
 0x5f0   : > { %v3782_v3 = vsel %vm1842_vm10, %v3750_v36, %v3386_v26  ;;  %v3702_v48 = vsel %vm1776_vm6, %v3670_v1, %v7107_v15  ;;  %v8416_v36 = vld [vmem:[#allocation58_spill] sm:$0xff]  ;;  %v8420_v1 = vld [vmem:[#allocation160_spill] sm:$0xff] }
 0x5f2   : > { %3239 = vrot.lane.b32.xlu1 %v2461_v60, %s4459_s29  ;;  %3399 = vrot.lane.b32.xlu2 %v2509_v62, %s4460_s30  ;;  %v4435_v62 = vld [vmem:[#allocation2 + $0x38] sm:$0xff] }
 0x5f4   : > { %3527 = vrot.lane.b32.xlu0 %v2541_v20, %s4461_s6  ;;  %v3226_v56 = vpop.permute.xlu1 %3225  ;;  %v3356_v54 = vpop.permute.xlu2 %3355 }
 0x5f5   : > { %v3734_v8 = vsel %vm1809_vm8, %v3702_v48, %v3226_v56  ;;  %v2495_v48 = vld [vmem:[#allocation2 + $0xc1] sm:$0xff] }
 0x5f6   : > { %v3514_v31 = vpop.permute.xlu0 %3513  ;;  %v3766_v58 = vsel %vm1842_vm10, %v3734_v8, %v3354_v7  ;;  %v2463_v8 = vld [vmem:[#allocation2 + $0xc0] sm:$0xff] }
 0x5f7   : > { %v3814_v22 = vsel %vm1875_vm9, %v3782_v3, %v3514_v31  ;;  %v8419_v31 = vld [vmem:[#allocation116_spill] sm:$0xff] }
 0x5f8   : > { %4357 = vmatmul.msk.f32.gmra.mxu3 %vm1917_vm11, %v3814_v22 }
 0x5fa   : > { %3495 = vrot.lane.b32.xlu1 %v2525_v17, %s4461_s6  ;;  %3367 = vrot.lane.b32.xlu2 %v2493_v52, %s4460_s30 }
 0x5fc   : > { %3273 = vrot.lane.b32.xlu0 %v2478_v61, %s4459_s29  ;;  %v3482_v26 = vpop.permute.xlu1 %3481  ;;  %v3390_v18 = vpop.permute.xlu2 %3389 }
 0x5fd   : > { %v3798_v57 = vsel %vm1875_vm9, %v3766_v58, %v3482_v26  ;;  %v2480_v58 = vld [vmem:[#allocation2 + $0x188] sm:$0xff] }
 0x5fe   : > { %v3260_v15 = vpop.permute.xlu0 %3259  ;;  %4341 = vmatmul.msk.f32.gmra.mxu1 %vm1917_vm11, %v3798_v57  ;;  %v8421_v57 = vld [vmem:[#allocation19_spill] sm:$0xff] }
 0x5ff   : > { %v3751_v9 = vsel %vm1809_vm8, %v7165_v50, %v3260_v15  ;;  %v3671_v50 = vsel %vm1743_vm7, %v3639_v13, %v6911_v29 }
 0x600   : > { %v3783_v53 = vsel %vm1842_vm10, %v3751_v9, %v3388_v46  ;;  %v3703_v30 = vsel %vm1776_vm6, %v3671_v50, %v7103_v59  ;;  %v2543_v59 = vld [vmem:[#allocation2 + $0x182] sm:$0xff]  ;;  %v8422_v9 = vld [vmem:[#allocation55_spill] sm:$0xff] }
 0x601   : > { %v8426_v50 = vld [vmem:[#allocation111_spill] sm:$0xff] }
 0x602   : > { %3241 = vrot.lane.b32.xlu1 %v2462_v35, %s4459_s29  ;;  %3401 = vrot.lane.b32.xlu2 %v2510_v42, %s4460_s30  ;;  %v2527_v35 = vld [vmem:[#allocation2 + $0xc2] sm:$0xff] }
 0x603   : > { %v4436_v42 = vld [vmem:[#allocation2 + $0x48] sm:$0xff] }
 0x604   : > { %3529 = vrot.lane.b32.xlu0 %v2542_v27, %s4461_s6  ;;  %v3228_v7 = vpop.permute.xlu1 %3227  ;;  %v3358_v25 = vpop.permute.xlu2 %3357 }
 0x605   : > { %v3735_v41 = vsel %vm1809_vm8, %v3703_v30, %v3228_v7 }
 0x606   : > { %v3516_v47 = vpop.permute.xlu0 %3515  ;;  %v3767_v29 = vsel %vm1842_vm10, %v3735_v41, %v3356_v54  ;;  %v8418_v54 = vld [vmem:[#allocation52_spill] sm:$0xff]  ;;  %v2544_v41 = vld [vmem:[#allocation2 + $0x18a] sm:$0xff] }
 0x607   : > { %v3815_v39 = vsel %vm1875_vm9, %v3783_v53, %v3516_v47  ;;  %v8425_v47 = vld [vmem:[#allocation104_spill] sm:$0xff] }
 0x608   : > { %4358 = vmatmul.msk.f32.gmra.mxu3 %vm1917_vm11, %v3815_v39 }
 0x60a   : > { %3275 = vrot.lane.b32.xlu1 %v2479_v14, %s4459_s29  ;;  %3147 = vrot.lane.b32.xlu2 %v2541_v20, %s4458_s28  ;;  %v3576_v20 = vsel %vm225_vm0, %v4435_v62, %v8416_v36  ;;  %v2464_v14 = vld [vmem:[#allocation2 + $0xc8] sm:$0xff]  ;;  %v4437_v62 = vld [vmem:[#allocation2 + $0x50] sm:$0xff] }
 0x60b   : > { %v3608_v56 = vsel %vm1677_vm4, %v3576_v20, %v8417_v49  ;;  %v8427_v36 = vld [vmem:[#allocation54_spill] sm:$0xff]  ;;  %v8428_v49 = vld [vmem:[#allocation65_spill] sm:$0xff] }
 0x60c   : > { %3369 = vrot.lane.b32.xlu0 %v2494_v38, %s4460_s30  ;;  %v3484_v32 = vpop.permute.xlu1 %3483  ;;  %v3392_v46 = vpop.permute.xlu2 %3391  ;;  %v3640_v37 = vsel %vm1710_vm5, %v3608_v56, %v8418_v54  ;;  %v3578_v20 = vsel %vm225_vm0, %v4437_v62, %v8427_v36  ;;  %v8429_v54 = vld [vmem:[#allocation137_spill] sm:$0xff] }
 0x60d   : > { %v3799_v55 = vsel %vm1875_vm9, %v3767_v29, %v3484_v32  ;;  %v3610_v56 = vsel %vm1677_vm4, %v3578_v20, %v8428_v49 }
 0x60e   : > { %v3262_v0 = vpop.permute.xlu0 %3261  ;;  %4342 = vmatmul.msk.f32.gmra.mxu1 %vm1917_vm11, %v3799_v55 }
 0x60f   : > { %v3752_v60 = vsel %vm1809_vm8, %v7262_v40, %v3262_v0  ;;  %v3672_v40 = vsel %vm1743_vm7, %v3640_v37, %v8419_v31  ;;  %v2528_v0 = vld [vmem:[#allocation2 + $0xca] sm:$0xff]  ;;  %v3642_v37 = vsel %vm1710_vm5, %v3610_v56, %v8429_v54  ;;  %v8430_v31 = vld [vmem:[#allocation69_spill] sm:$0xff] }
 0x610   : > { %v3784_v12 = vsel %vm1842_vm10, %v3752_v60, %v3390_v18  ;;  %v3704_v22 = vsel %vm1776_vm6, %v3672_v40, %v8420_v1  ;;  %v2481_v60 = vld [vmem:[#allocation2 + $0x198] sm:$0xff]  ;;  %v8431_v1 = vld [vmem:[#allocation97_spill] sm:$0xff] }
 0x612   : > { %3531 = vrot.lane.b32.xlu1 %v2543_v59, %s4461_s6  ;;  %3497 = vrot.lane.b32.xlu2 %v2526_v6, %s4461_s6  ;;  %v2496_v6 = vld [vmem:[#allocation2 + $0xc9] sm:$0xff] }
 0x614   : > { %3403 = vrot.lane.b32.xlu0 %v6863_v2, %s4460_s30  ;;  %v3230_v4 = vpop.permute.xlu1 %3229  ;;  %v3360_v21 = vpop.permute.xlu2 %3359 }
 0x615   : > { %v3736_v2 = vsel %vm1809_vm8, %v3704_v22, %v3230_v4 }
 0x616   : > { %v3518_v10 = vpop.permute.xlu0 %3517  ;;  %v3768_v61 = vsel %vm1842_vm10, %v3736_v2, %v3358_v25  ;;  %v8424_v25 = vld [vmem:[#allocation115_spill] sm:$0xff] }
 0x617   : > { %v3816_v3 = vsel %vm1875_vm9, %v3784_v12, %v3518_v10 }
 0x618   : > { %4359 = vmatmul.msk.f32.gmra.mxu3 %vm1917_vm11, %v3816_v3  ;;  %v2513_v3 = vld [vmem:[#allocation2 + $0x199] sm:$0xff] }
 0x61a   : > { %3371 = vrot.lane.b32.xlu1 %v2495_v48, %s4460_s30  ;;  %3243 = vrot.lane.b32.xlu2 %v2463_v8, %s4459_s29  ;;  %v2465_v48 = vld [vmem:[#allocation2 + $0xd8] sm:$0xff] }
 0x61b   : > { %v2545_v8 = vld [vmem:[#allocation2 + $0x19a] sm:$0xff] }
 0x61c   : > { %3149 = vrot.lane.b32.xlu0 %v2542_v27, %s4458_s28  ;;  %v3486_v17 = vpop.permute.xlu1 %3485  ;;  %v3394_v52 = vpop.permute.xlu2 %3393  ;;  %v3577_v27 = vsel %vm225_vm0, %v4436_v42, %v8422_v9  ;;  %v8432_v42 = vld [vmem:[#allocation43_spill] sm:$0xff] }
 0x61d   : > { %v3800_v26 = vsel %vm1875_vm9, %v3768_v61, %v3486_v17  ;;  %v3609_v7 = vsel %vm1677_vm4, %v3577_v27, %v8423_v33 }
 0x61e   : > { %v3264_v18 = vpop.permute.xlu0 %3263  ;;  %4343 = vmatmul.msk.f32.gmra.mxu1 %vm1917_vm11, %v3800_v26  ;;  %v3641_v63 = vsel %vm1710_vm5, %v3609_v7, %v8424_v25  ;;  %v8434_v7 = vld [vmem:[#allocation136_spill] sm:$0xff] }
 0x61f   : > { %v3753_v15 = vsel %vm1809_vm8, %v7257_v34, %v3264_v18  ;;  %v3673_v34 = vsel %vm1743_vm7, %v3641_v63, %v8425_v47 }
 0x620   : > { %v3785_v13 = vsel %vm1842_vm10, %v3753_v15, %v3392_v46  ;;  %v3705_v39 = vsel %vm1776_vm6, %v3673_v34, %v8426_v50  ;;  %v2497_v15 = vld [vmem:[#allocation2 + $0xd9] sm:$0xff]  ;;  %v2546_v34 = vld [vmem:[#allocation2 + $0x1a2] sm:$0xff] }
 0x622   : > { %3405 = vrot.lane.b32.xlu1 %v8421_v57, %s4460_s30  ;;  %3277 = vrot.lane.b32.xlu2 %v2480_v58, %s4459_s29  ;;  %v2482_v58 = vld [vmem:[#allocation2 + $0x1a0] sm:$0xff] }
 0x624   : > { %3499 = vrot.lane.b32.xlu0 %v2527_v35, %s4461_s6  ;;  %v3232_v16 = vpop.permute.xlu1 %3231  ;;  %v3362_v43 = vpop.permute.xlu2 %3361  ;;  %v4438_v35 = vld [vmem:[#allocation2 + $0x60] sm:$0xff] }
 0x625   : > { %v3737_v30 = vsel %vm1809_vm8, %v3705_v39, %v3232_v16  ;;  %v3579_v9 = vsel %vm225_vm0, %v4438_v35, %v8432_v42  ;;  %v7540_v39 = vld [vmem:[%s7829_s4] ss:$0 sm:$0xff] }
 0x626   : > { %v3520_v23 = vpop.permute.xlu0 %3519  ;;  %v3769_v46 = vsel %vm1842_vm10, %v3737_v30, %v3360_v21 }
 0x627   : > { %v3817_v53 = vsel %vm1875_vm9, %v3785_v13, %v3520_v23 }
 0x628   : > { %4360 = vmatmul.msk.f32.gmra.mxu3 %vm1917_vm11, %v3817_v53  ;;  %v8436_v53 = vld [vmem:[#allocation73_spill] sm:$0xff] }
 0x62a   : > { %3151 = vrot.lane.b32.xlu1 %v2543_v59, %s4458_s28  ;;  %3533 = vrot.lane.b32.xlu2 %v2544_v41, %s4461_s6 }
 0x62c   : > { %3245 = vrot.lane.b32.xlu0 %v2464_v14, %s4459_s29  ;;  %v3488_v38 = vpop.permute.xlu1 %3487  ;;  %v3396_v32 = vpop.permute.xlu2 %3395  ;;  %v2514_v14 = vld [vmem:[#allocation2 + $0x1a1] sm:$0xff] }
 0x62d   : > { %v3801_v29 = vsel %vm1875_vm9, %v3769_v46, %v3488_v38 }
 0x62e   : > { %v3266_v55 = vpop.permute.xlu0 %3265  ;;  %4344 = vmatmul.msk.f32.gmra.mxu1 %vm1917_vm11, %v3801_v29 }
 0x62f   : > { %v3754_v59 = vsel %vm1809_vm8, %v7184_v11, %v3266_v55  ;;  %v3674_v11 = vsel %vm1743_vm7, %v3642_v37, %v8430_v31  ;;  %v2530_v37 = vld [vmem:[#allocation2 + $0xe2] sm:$0xff] }
 0x630   : > { %v3786_v12 = vsel %vm1842_vm10, %v3754_v59, %v3394_v52  ;;  %v3706_v22 = vsel %vm1776_vm6, %v3674_v11, %v8431_v1  ;;  %v4160_v59 = vld [vmem:[%s4516_s23 + $0x80] sm:$0xff]  ;;  %v4439_v11 = vld [vmem:[#allocation2 + $0x68] sm:$0xff] }
 0x631   : > { %v2498_v31 = vld [vmem:[#allocation2 + $0xe1] sm:$0xff] }
 0x632   : > { %3501 = vrot.lane.b32.xlu1 %v2528_v0, %s4461_s6  ;;  %3373 = vrot.lane.b32.xlu2 %v2496_v6, %s4460_s30 }
 0x634   : > { %3279 = vrot.lane.b32.xlu0 %v2481_v60, %s4459_s29  ;;  %v3234_v4 = vpop.permute.xlu1 %3233  ;;  %v3364_v21 = vpop.permute.xlu2 %3363  ;;  %v4144_v60 = vld [vmem:[%s4516_s23] sm:$0xff] }
 0x635   : > { %v3738_v2 = vsel %vm1809_vm8, %v3706_v22, %v3234_v4 }
 0x636   : > { %v3522_v10 = vpop.permute.xlu0 %3521  ;;  %v3770_v61 = vsel %vm1842_vm10, %v3738_v2, %v3362_v43  ;;  %v8433_v43 = vld [vmem:[#allocation134_spill] sm:$0xff]  ;;  %v8438_v2 = vld [vmem:[#allocation67_spill] sm:$0xff] }
 0x637   : > { %v3818_v40 = vsel %vm1875_vm9, %v3786_v12, %v3522_v10  ;;  %v3611_v33 = vsel %vm1677_vm4, %v3579_v9, %v8433_v43  ;;  %v2466_v10 = vld [vmem:[#allocation2 + $0xe0] sm:$0xff] }
 0x638   : > { %4361 = vmatmul.msk.f32.gmra.mxu3 %vm1917_vm11, %v3818_v40  ;;  %v3643_v25 = vsel %vm1710_vm5, %v3611_v33, %v8434_v7  ;;  %v8437_v40 = vld [vmem:[#allocation12_spill] sm:$0xff] }
 0x63a   : > { %3247 = vrot.lane.b32.xlu1 %v2465_v48, %s4459_s29  ;;  %3407 = vrot.lane.b32.xlu2 %v2513_v3, %s4460_s30  ;;  %v3580_v3 = vsel %vm225_vm0, %v4439_v11, %v8437_v40  ;;  %v4162_v11 = vld [vmem:[%s4516_s23 + $0x90] sm:$0xff] }
 0x63b   : > { %v3612_v48 = vsel %vm1677_vm4, %v3580_v3, %v8438_v2 }
 0x63c   : > { %3535 = vrot.lane.b32.xlu0 %v2545_v8, %s4461_s6  ;;  %v3490_v17 = vpop.permute.xlu1 %3489  ;;  %v7512_v52 = vpop.permute.xlu2 %3397  ;;  %v8439_v8 = vld [vmem:[#allocation36_spill] sm:$0xff] }
 0x63d   : > { %v3802_v26 = vsel %vm1875_vm9, %v3770_v61, %v3490_v17  ;;  %v3644_v17 = vsel %vm1710_vm5, %v3612_v48, %v8439_v8 }
 0x63e   : > { %v3268_v18 = vpop.permute.xlu0 %3267  ;;  %4345 = vmatmul.msk.f32.gmra.mxu1 %vm1917_vm11, %v3802_v26  ;;  %v8440_v26 = vld [vmem:[#allocation22_spill] sm:$0xff] }
 0x63f   : > { %v3755_v57 = vsel %vm1809_vm8, %v7289_v51, %v3268_v18  ;;  %v8435_v51 = vld [vmem:[#allocation70_spill] sm:$0xff]  ;;  %v3676_v18 = vsel %vm1743_vm7, %v3644_v17, %v8440_v26 }
 0x640   : > { %v3787_v23 = vsel %vm1842_vm10, %v3755_v57, %v3396_v32  ;;  %v3675_v13 = vsel %vm1743_vm7, %v3643_v25, %v8435_v51  ;;  %v8441_v57 = vld [vmem:[#allocation72_spill] sm:$0xff]  ;;  %v4145_v25 = vld [vmem:[%s4516_s23 + $0x8] sm:$0xff] }
 0x641   : > { %v3707_v50 = vsel %vm1776_vm6, %v3675_v13, %v8436_v53 }
 0x642   : > { %3281 = vrot.lane.b32.xlu1 %v2482_v58, %s4459_s29  ;;  %3153 = vrot.lane.b32.xlu2 %v2544_v41, %s4458_s28  ;;  %v2529_v41 = vld [vmem:[#allocation2 + $0xda] sm:$0xff] }
 0x644   : > { %3375 = vrot.lane.b32.xlu0 %v2497_v15, %s4460_s30  ;;  %v3236_v27 = vpop.permute.xlu1 %3235  ;;  %v7524_v16 = vpop.permute.xlu2 %3365  ;;  %v3708_v15 = vsel %vm1776_vm6, %v3676_v18, %v8441_v57 }
 0x645   : > { %v3739_v30 = vsel %vm1809_vm8, %v3707_v50, %v3236_v27 }
 0x646   : > { %v3524_v63 = vpop.permute.xlu0 %3523  ;;  %v3771_v6 = vsel %vm1842_vm10, %v3739_v30, %v3364_v21 }
 0x647   : > { %v3819_v47 = vsel %vm1875_vm9, %v3787_v23, %v3524_v63  ;;  %v4161_v63 = vld [vmem:[%s4516_s23 + $0x88] sm:$0xff] }
 0x648   : > { %4362 = vmatmul.msk.f32.gmra.mxu3 %vm1917_vm11, %v3819_v47 }
 0x64a   : > { %3537 = vrot.lane.b32.xlu1 %v2546_v34, %s4461_s6  ;;  %3503 = vrot.lane.b32.xlu2 %v2529_v41, %s4461_s6  ;;  %v4440_v41 = vld [vmem:[#allocation2 + $0x78] sm:$0xff] }
 0x64b   : > { %v3952_v38 = vpop.f32.mrf.mxu1  ;;  %v4000_v32 = vpop.f32.mrf.mxu3 }
 0x64c   : > { %v3953_v46 = vadd.f32 %v7540_v39, %v3952_v38  ;;  %v4001_v29 = vadd.f32 %v7540_v39, %v4000_v32  ;;  %3409 = vrot.lane.b32.xlu0 %v2514_v14, %s4460_s30  ;;  %v3492_v55 = vpop.permute.xlu1 %3491  ;;  %v7548_v0 = vpop.permute.xlu2 %3399  ;;  %v8442_v14 = vld [vmem:[#allocation38_spill] sm:$0xff] }
 0x64d   : > { %v3803_v62 = vsel %vm1875_vm9, %v3771_v6, %v3492_v55  ;;  %v3581_v38 = vsel %vm225_vm0, %v4440_v41, %v8442_v14  ;;  %v8444_v55 = vld [vmem:[#allocation6_spill] sm:$0xff] }
 0x64e   : > { %vm4048_vm3 = vcmp.ge.f32.partialorder %v3953_v46, 0.0  ;;  %v4080_v36 = vmul.f32 0.1, %v3953_v46  ;;  %vm4064_vm14 = vcmp.ge.f32.partialorder %v4001_v29, 0.0  ;;  %v4096_v20 = vmul.f32 0.1, %v4001_v29  ;;  %v3270_v4 = vpop.permute.xlu0 %3269  ;;  %4346 = vmatmul.msk.f32.gmra.mxu1 %vm1917_vm11, %v3803_v62 }
 0x64f   : > { %v3756_v12 = vsel %vm1809_vm8, %v7284_v44, %v3270_v4  ;;  %v8445_v62 = vld [vmem:[#allocation91_spill] sm:$0xff] }
 0x650   : > { %v4112_v21 = vsel %vm4048_vm3, %v3953_v46, %v4080_v36  ;;  %v4128_v49 = vsel %vm4064_vm14, %v4001_v29, %v4096_v20  ;;  %v3788_v61 = vsel %vm1842_vm10, %v3756_v12, %v7512_v52  ;;  %v8443_v46 = vld [vmem:[#allocation7_spill] sm:$0xff] }
 0x651   : > { %v4176_v56 = vadd.f32 %v4144_v60, %v4112_v21  ;;  %v4192_v54 = vadd.f32 %v4160_v59, %v4128_v49  ;;  %v3613_v29 = vsel %vm1677_vm4, %v3581_v38, %v8443_v46  ;;  %v8446_v4 = vld [vmem:[#allocation119_spill] sm:$0xff] }
 0x652   : > { %3505 = vrot.lane.b32.xlu1 %v2530_v37, %s4461_s6  ;;  %3249 = vrot.lane.b32.xlu2 %v2466_v10, %s4459_s29  ;;  %v3645_v6 = vsel %vm1710_vm5, %v3613_v29, %v8444_v55  ;;  %v4442_v55 = vld [vmem:[#allocation2 + $0x150] sm:$0xff] }
 0x653   : > { %4208 = vst.msk [vmem:[%s7560_s15] sm:$0xff] %vm225_vm0, %v4176_v56  ;;  %v3677_v36 = vsel %vm1743_vm7, %v3645_v6, %v8445_v62  ;;  %v8452_v6 = vld [vmem:[#allocation132_spill] sm:$0xff] }
 0x654   : > { %4224 = vst.msk [vmem:[%s7560_s15 + $0x80] sm:$0xff] %vm225_vm0, %v4192_v54  ;;  %3377 = vrot.lane.b32.xlu0 %v2498_v31, %s4460_s30  ;;  %v3238_v1 = vpop.permute.xlu1 %3237  ;;  %v3368_v22 = vpop.permute.xlu2 %3367  ;;  %v3709_v21 = vsel %vm1776_vm6, %v3677_v36, %v8446_v4  ;;  %v4146_v31 = vld [vmem:[%s4516_s23 + $0x10] sm:$0xff]  ;;  %v8454_v4 = vld [vmem:[#allocation20_spill] sm:$0xff] }
 0x655   : > { %v3740_v35 = vsel %vm1809_vm8, %v3708_v15, %v3238_v1  ;;  %v4441_v15 = vld [vmem:[#allocation2 + $0x80] sm:$0xff]  ;;  %v8453_v36 = vld [vmem:[#allocation95_spill] sm:$0xff] }
 0x656   : > { %v3526_v44 = vpop.permute.xlu0 %3525  ;;  %v3772_v7 = vsel %vm1842_vm10, %v3740_v35, %v7524_v16  ;;  %v8447_v35 = vld [vmem:[#allocation14_spill] sm:$0xff] }
 0x657   : > { %v3820_v58 = vsel %vm1875_vm9, %v3788_v61, %v3526_v44 }
 0x658   : > { %4363 = vmatmul.msk.f32.gmra.mxu3 %vm1917_vm11, %v3820_v58 }
 0x65b   : > { %v3955_v42 = vpop.f32.mrf.mxu1  ;;  %v4003_v9 = vpop.f32.mrf.mxu3 }
 0x65c   : > { %v3956_v27 = vadd.f32 %v7540_v39, %v3955_v42  ;;  %v4004_v43 = vadd.f32 %v7540_v39, %v4003_v9  ;;  %v3494_v33 = vpop.permute.xlu1 %3493  ;;  %v3402_v52 = vpop.permute.xlu2 %3401  ;;  %v3582_v42 = vsel %vm225_vm0, %v4441_v15, %v8447_v35  ;;  %v8448_v9 = vld [vmem:[#allocation82_spill] sm:$0xff]  ;;  %v8457_v35 = vld [vmem:[#allocation71_spill] sm:$0xff] }
 0x65d   : > { %v3804_v23 = vsel %vm1875_vm9, %v3772_v7, %v3494_v33  ;;  %v8450_v7 = vld [vmem:[#allocation131_spill] sm:$0xff] }
 0x65e   : > { %vm4049_vm15 = vcmp.ge.f32.partialorder %v3956_v27, 0.0  ;;  %v4081_v51 = vmul.f32 0.1, %v3956_v27  ;;  %vm4065_vm1 = vcmp.ge.f32.partialorder %v4004_v43, 0.0  ;;  %v4097_v13 = vmul.f32 0.1, %v4004_v43  ;;  %v3272_v47 = vpop.permute.xlu0 %3271  ;;  %4347 = vmatmul.msk.f32.gmra.mxu1 %vm1917_vm11, %v3804_v23 }
 0x65f   : > { %v3757_v16 = vsel %vm1809_vm8, %v7226_v24, %v3272_v47  ;;  %v8451_v23 = vld [vmem:[#allocation74_spill] sm:$0xff] }
 0x660   : > { %v4113_v34 = vsel %vm4049_vm15, %v3956_v27, %v4081_v51  ;;  %v4129_v53 = vsel %vm4065_vm1, %v4004_v43, %v4097_v13  ;;  %v3789_v24 = vsel %vm1842_vm10, %v3757_v16, %v7548_v0  ;;  %v3614_v27 = vsel %vm1677_vm4, %v3582_v42, %v8448_v9 }
 0x661   : > { %v4177_v50 = vadd.f32 %v4145_v25, %v4113_v34  ;;  %v4193_v30 = vadd.f32 %v4161_v63, %v4129_v53 }
 0x663   : > { %4209 = vst.msk [vmem:[%s7560_s15 + $0x8] sm:$0xff] %vm225_vm0, %v4177_v50  ;;  %v4147_v50 = vld [vmem:[%s4516_s23 + $0x18] sm:$0xff] }
 0x664   : > { %4225 = vst.msk [vmem:[%s7560_s15 + $0x88] sm:$0xff] %vm225_vm0, %v4193_v30  ;;  %v3240_v32 = vpop.permute.xlu1 %3239  ;;  %v7606_v60 = vpop.permute.xlu2 %3147  ;;  %v4163_v30 = vld [vmem:[%s4516_s23 + $0x98] sm:$0xff] }
 0x665   : > { %v3741_v49 = vsel %vm1809_vm8, %v3709_v21, %v3240_v32 }
 0x666   : > { %v3528_v59 = vpop.permute.xlu0 %3527  ;;  %v3773_v0 = vsel %vm1842_vm10, %v3741_v49, %v3368_v22  ;;  %v8455_v49 = vld [vmem:[#allocation146_spill] sm:$0xff] }
 0x667   : > { %v3821_v20 = vsel %vm1875_vm9, %v3789_v24, %v3528_v59  ;;  %v3599_v59 = vsel %vm225_vm0, %v4442_v55, %v8452_v6 }
 0x668   : > { %4364 = vmatmul.msk.f32.gmra.mxu3 %vm1917_vm11, %v3821_v20  ;;  %v3631_v20 = vsel %vm1677_vm4, %v3599_v59, %v8453_v36 }
 0x669   : > { %v3663_v21 = vsel %vm1710_vm5, %v3631_v20, %v8454_v4 }
 0x66b   : > { %v3958_v56 = vpop.f32.mrf.mxu1  ;;  %v4006_v54 = vpop.f32.mrf.mxu3 }
 0x66c   : > { %v3959_v37 = vadd.f32 %v7540_v39, %v3958_v56  ;;  %v4007_v10 = vadd.f32 %v7540_v39, %v4006_v54  ;;  %v3496_v12 = vpop.permute.xlu1 %3495  ;;  %v3498_v17 = vpop.permute.xlu2 %3497  ;;  %v3695_v56 = vsel %vm1743_vm7, %v3663_v21, %v8455_v49 }
 0x66d   : > { %v3805_v40 = vsel %vm1875_vm9, %v3773_v0, %v3496_v12 }
 0x66e   : > { %vm4050_vm2 = vcmp.ge.f32.partialorder %v3959_v37, 0.0  ;;  %v4082_v3 = vmul.f32 0.1, %v3959_v37  ;;  %vm4066_vm12 = vcmp.ge.f32.partialorder %v4007_v10, 0.0  ;;  %v4098_v1 = vmul.f32 0.1, %v4007_v10  ;;  %v3274_v2 = vpop.permute.xlu0 %3273  ;;  %4348 = vmatmul.msk.f32.gmra.mxu1 %vm1917_vm11, %v3805_v40 }
 0x66f   : > { %v3758_v22 = vsel %vm1809_vm8, %v7301_v28, %v3274_v2  ;;  %v8449_v28 = vld [vmem:[#allocation158_spill] sm:$0xff] }
 0x670   : > { %v4114_v48 = vsel %vm4050_vm2, %v3959_v37, %v4082_v3  ;;  %v4130_v8 = vsel %vm4066_vm12, %v4007_v10, %v4098_v1  ;;  %v3790_v58 = vsel %vm1842_vm10, %v3758_v22, %v3402_v52  ;;  %v3646_v43 = vsel %vm1710_vm5, %v3614_v27, %v8449_v28  ;;  %v8458_v28 = vld [vmem:[#allocation35_spill] sm:$0xff] }
 0x671   : > { %v4178_v44 = vadd.f32 %v4146_v31, %v4114_v48  ;;  %v4194_v61 = vadd.f32 %v4162_v11, %v4130_v8  ;;  %v3678_v52 = vsel %vm1743_vm7, %v3646_v43, %v8450_v7  ;;  %v3727_v37 = vsel %vm1776_vm6, %v3695_v56, %v7606_v60  ;;  %v4148_v8 = vld [vmem:[%s4516_s23 + $0x20] sm:$0xff]  ;;  %v8459_v7 = vld [vmem:[#allocation123_spill] sm:$0xff] }
 0x672   : > { %v3710_v51 = vsel %vm1776_vm6, %v3678_v52, %v8451_v23 }
 0x673   : > { %4210 = vst.msk [vmem:[%s7560_s15 + $0x10] sm:$0xff] %vm225_vm0, %v4178_v44 }
 0x674   : > { %4226 = vst.msk [vmem:[%s7560_s15 + $0x90] sm:$0xff] %vm225_vm0, %v4194_v61  ;;  %v3242_v26 = vpop.permute.xlu1 %3241  ;;  %v7639_v33 = vpop.permute.xlu2 %3243 }
 0x675   : > { %v3742_v53 = vsel %vm1809_vm8, %v3710_v51, %v3242_v26  ;;  %v4443_v26 = vld [vmem:[#allocation2 + $0x90] sm:$0xff] }
 0x676   : > { %v3530_v18 = vpop.permute.xlu0 %3529 }
 0x677   : > { %v3822_v57 = vsel %vm1875_vm9, %v3790_v58, %v3530_v18  ;;  %v8456_v18 = vld [vmem:[#allocation75_spill] sm:$0xff] }
 0x678   : > { %4365 = vmatmul.msk.f32.gmra.mxu3 %vm1917_vm11, %v3822_v57  ;;  %v3583_v58 = vsel %vm225_vm0, %v4443_v26, %v8456_v18 }
 0x679   : > { %v3615_v42 = vsel %vm1677_vm4, %v3583_v58, %v8457_v35 }
 0x67a   : > { %v3647_v52 = vsel %vm1710_vm5, %v3615_v42, %v8459_v7 }
 0x67b   : > { %v3961_v25 = vpop.f32.mrf.mxu1  ;;  %v4009_v63 = vpop.f32.mrf.mxu3 }
 0x67c   : > { %v3962_v13 = vadd.f32 %v7540_v39, %v3961_v25  ;;  %v4010_v47 = vadd.f32 %v7540_v39, %v4009_v63  ;;  %v3276_v34 = vpop.permute.xlu1 %3275  ;;  %v3278_v10 = vpop.permute.xlu2 %3277  ;;  %v8460_v25 = vld [vmem:[#allocation124_spill] sm:$0xff] }
 0x67d   : > { %v3759_v12 = vsel %vm1809_vm8, %v3727_v37, %v3276_v34  ;;  %v3679_v63 = vsel %vm1743_vm7, %v3647_v52, %v8460_v25  ;;  %v8464_v25 = vld [vmem:[#allocation96_spill] sm:$0xff] }
 0x67e   : > { %vm4051_vm13 = vcmp.ge.f32.partialorder %v3962_v13, 0.0  ;;  %v4083_v16 = vmul.f32 0.1, %v3962_v13  ;;  %vm4067_vm3 = vcmp.ge.f32.partialorder %v4010_v47, 0.0  ;;  %v4099_v41 = vmul.f32 0.1, %v4010_v47  ;;  %v3370_v14 = vpop.permute.xlu0 %3369 }
 0x67f   : > { %v3774_v38 = vsel %vm1842_vm10, %v3742_v53, %v3370_v14  ;;  %v3711_v23 = vsel %vm1776_vm6, %v3679_v63, %v7167_v19 }
 0x680   : > { %v4115_v32 = vsel %vm4051_vm13, %v3962_v13, %v4083_v16  ;;  %v4131_v46 = vsel %vm4067_vm3, %v4010_v47, %v4099_v41  ;;  %v3806_v29 = vsel %vm1875_vm9, %v3774_v38, %v3498_v17  ;;  %v4164_v17 = vld [vmem:[%s4516_s23 + $0xa0] sm:$0xff]  ;;  %v3743_v47 = vsel %vm1809_vm8, %v3711_v23, %v7639_v33  ;;  %v8465_v23 = vld [vmem:[#allocation84_spill] sm:$0xff] }
 0x681   : > { %v4179_v24 = vadd.f32 %v4147_v50, %v4115_v32  ;;  %v4195_v62 = vadd.f32 %v4163_v30, %v4131_v46  ;;  %4349 = vmatmul.msk.f32.gmra.mxu1 %vm1917_vm11, %v3806_v29  ;;  %v4149_v46 = vld [vmem:[%s4516_s23 + $0x28] sm:$0xff] }
 0x682   : > { %v4165_v29 = vld [vmem:[%s4516_s23 + $0xa8] sm:$0xff] }
 0x683   : > { %4211 = vst.msk [vmem:[%s7560_s15 + $0x18] sm:$0xff] %vm225_vm0, %v4179_v24 }
 0x684   : > { %4227 = vst.msk [vmem:[%s7560_s15 + $0x98] sm:$0xff] %vm225_vm0, %v4195_v62  ;;  %v3532_v54 = vpop.permute.xlu1 %3531  ;;  %v3534_v22 = vpop.permute.xlu2 %3533 }
 0x686   : > { %v3404_v0 = vpop.permute.xlu0 %3403 }
 0x687   : > { %v3791_v31 = vsel %vm1842_vm10, %v3759_v12, %v3404_v0 }
 0x688   : > { %v3823_v11 = vsel %vm1875_vm9, %v3791_v31, %v3532_v54 }
 0x689   : > { %4366 = vmatmul.msk.f32.gmra.mxu3 %vm1917_vm11, %v3823_v11 }
 0x68b   : > { %v3964_v40 = vpop.f32.mrf.mxu1  ;;  %v4012_v3 = vpop.f32.mrf.mxu3 }
 0x68c   : > { %v3965_v1 = vadd.f32 %v7540_v39, %v3964_v40  ;;  %v4013_v2 = vadd.f32 %v7540_v39, %v4012_v3  ;;  %v3372_v48 = vpop.permute.xlu1 %3371  ;;  %v3374_v16 = vpop.permute.xlu2 %3373 }
 0x68d   : > { %v3775_v53 = vsel %vm1842_vm10, %v3743_v47, %v3372_v48  ;;  %v4166_v48 = vld [vmem:[%s4516_s23 + $0xb0] sm:$0xff] }
 0x68e   : > { %vm4052_vm14 = vcmp.ge.f32.partialorder %v3965_v1, 0.0  ;;  %v4084_v60 = vmul.f32 0.1, %v3965_v1  ;;  %vm4068_vm15 = vcmp.ge.f32.partialorder %v4013_v2, 0.0  ;;  %v4100_v44 = vmul.f32 0.1, %v4013_v2  ;;  %v3150_v61 = vpop.permute.xlu0 %3149 }
 0x68f   : > { %v3728_v43 = vsel %vm1776_vm6, %v8458_v28, %v3150_v61  ;;  %v4444_v28 = vld [vmem:[#allocation2 + $0x170] sm:$0xff] }
 0x690   : > { %v4116_v57 = vsel %vm4052_vm14, %v3965_v1, %v4084_v60  ;;  %v4132_v15 = vsel %vm4068_vm15, %v4013_v2, %v4100_v44  ;;  %v3760_v13 = vsel %vm1809_vm8, %v3728_v43, %v3278_v10  ;;  %v8461_v10 = vld [vmem:[#allocation10_spill] sm:$0xff]  ;;  %v4150_v2 = vld [vmem:[%s4516_s23 + $0x30] sm:$0xff] }
 0x691   : > { %v4180_v9 = vadd.f32 %v4148_v8, %v4116_v57  ;;  %v4196_v27 = vadd.f32 %v4164_v17, %v4132_v15  ;;  %v8462_v15 = vld [vmem:[#allocation105_spill] sm:$0xff]  ;;  %v8463_v43 = vld [vmem:[#allocation31_spill] sm:$0xff] }
 0x692   : > { %v3602_v7 = vsel %vm225_vm0, %v4444_v28, %v8463_v43  ;;  %v4170_v28 = vld [vmem:[%s4516_s23 + $0xd0] sm:$0xff] }
 0x693   : > { %4212 = vst.msk [vmem:[%s7560_s15 + $0x20] sm:$0xff] %vm225_vm0, %v4180_v9  ;;  %v3634_v63 = vsel %vm1677_vm4, %v3602_v7, %v8464_v25 }
 0x694   : > { %4228 = vst.msk [vmem:[%s7560_s15 + $0xa0] sm:$0xff] %vm225_vm0, %v4196_v27  ;;  %v3406_v51 = vpop.permute.xlu1 %3405  ;;  %v3408_v21 = vpop.permute.xlu2 %3407 }
 0x695   : > { %v3792_v34 = vsel %vm1842_vm10, %v3760_v13, %v3406_v51  ;;  %v3666_v51 = vsel %vm1710_vm5, %v3634_v63, %v8465_v23  ;;  %v8466_v13 = vld [vmem:[#allocation159_spill] sm:$0xff] }
 0x696   : > { %v3500_v50 = vpop.permute.xlu0 %3499  ;;  %v3824_v30 = vsel %vm1875_vm9, %v3792_v34, %v3534_v22  ;;  %v3698_v47 = vsel %vm1743_vm7, %v3666_v51, %v8466_v13 }
 0x697   : > { %4367 = vmatmul.msk.f32.gmra.mxu3 %vm1917_vm11, %v3824_v30  ;;  %v3807_v19 = vsel %vm1875_vm9, %v3775_v53, %v3500_v50 }
 0x698   : > { %4350 = vmatmul.msk.f32.gmra.mxu1 %vm1917_vm11, %v3807_v19 }
 0x69b   : > { %v3967_v41 = vpop.f32.mrf.mxu1  ;;  %v4015_v14 = vpop.f32.mrf.mxu3 }
 0x69c   : > { %v3968_v38 = vadd.f32 %v7540_v39, %v3967_v41  ;;  %v4016_v33 = vadd.f32 %v7540_v39, %v4015_v14  ;;  %v3152_v32 = vpop.permute.xlu1 %3151  ;;  %v3154_v1 = vpop.permute.xlu2 %3153  ;;  %v4151_v41 = vld [vmem:[%s4516_s23 + $0x38] sm:$0xff] }
 0x69d   : > { %v3729_v12 = vsel %vm1776_vm6, %v8461_v10, %v3152_v32  ;;  %v3730_v50 = vsel %vm1776_vm6, %v3698_v47, %v3154_v1  ;;  %v4167_v14 = vld [vmem:[%s4516_s23 + $0xb8] sm:$0xff] }
 0x69e   : > { %vm4053_vm1 = vcmp.ge.f32.partialorder %v3968_v38, 0.0  ;;  %v4085_v55 = vmul.f32 0.1, %v3968_v38  ;;  %vm4069_vm2 = vcmp.ge.f32.partialorder %v4016_v33, 0.0  ;;  %v4101_v6 = vmul.f32 0.1, %v4016_v33  ;;  %v3246_v59 = vpop.permute.xlu0 %3245 }
 0x69f   : > { %v3744_v4 = vsel %vm1809_vm8, %v7162_v45, %v3246_v59 }
 0x6a0   : > { %v4117_v24 = vsel %vm4053_vm1, %v3968_v38, %v4085_v55  ;;  %v4133_v62 = vsel %vm4069_vm2, %v4016_v33, %v4101_v6  ;;  %v3776_v56 = vsel %vm1842_vm10, %v3744_v4, %v3374_v16 }
 0x6a1   : > { %v4181_v36 = vadd.f32 %v4149_v46, %v4117_v24  ;;  %v4197_v20 = vadd.f32 %v4165_v29, %v4133_v62 }
 0x6a3   : > { %4213 = vst.msk [vmem:[%s7560_s15 + $0x28] sm:$0xff] %vm225_vm0, %v4181_v36 }
 0x6a4   : > { %4229 = vst.msk [vmem:[%s7560_s15 + $0xa8] sm:$0xff] %vm225_vm0, %v4197_v20  ;;  %v3502_v49 = vpop.permute.xlu1 %3501  ;;  %v3504_v9 = vpop.permute.xlu2 %3503 }
 0x6a5   : > { %v3808_v54 = vsel %vm1875_vm9, %v3776_v56, %v3502_v49 }
 0x6a6   : > { %v3280_v37 = vpop.permute.xlu0 %3279  ;;  %4351 = vmatmul.msk.f32.gmra.mxu1 %vm1917_vm11, %v3808_v54 }
 0x6a7   : > { %v3761_v45 = vsel %vm1809_vm8, %v3729_v12, %v3280_v37 }
 0x6a8   : > { %v3793_v8 = vsel %vm1842_vm10, %v3761_v45, %v3408_v21  ;;  %v4152_v45 = vld [vmem:[%s4516_s23 + $0x40] sm:$0xff] }
 0x6ab   : > { %v3970_v0 = vpop.f32.mrf.mxu1  ;;  %v4018_v31 = vpop.f32.mrf.mxu3 }
 0x6ac   : > { %v3971_v11 = vadd.f32 %v7540_v39, %v3970_v0  ;;  %v4019_v40 = vadd.f32 %v7540_v39, %v4018_v31  ;;  %v3248_v3 = vpop.permute.xlu1 %3247  ;;  %v3250_v36 = vpop.permute.xlu2 %3249  ;;  %v4168_v0 = vld [vmem:[%s4516_s23 + $0xc0] sm:$0xff] }
 0x6ad   : > { %v3745_v35 = vsel %vm1809_vm8, %v8462_v15, %v3248_v3  ;;  %v3746_v20 = vsel %vm1809_vm8, %v7188_v5, %v3250_v36  ;;  %v4156_v36 = vld [vmem:[%s4516_s23 + $0x60] sm:$0xff] }
 0x6ae   : > { %vm4054_vm12 = vcmp.ge.f32.partialorder %v3971_v11, 0.0  ;;  %v4086_v17 = vmul.f32 0.1, %v3971_v11  ;;  %vm4070_vm13 = vcmp.ge.f32.partialorder %v4019_v40, 0.0  ;;  %v4102_v60 = vmul.f32 0.1, %v4019_v40  ;;  %v3536_v44 = vpop.permute.xlu0 %3535 }
 0x6af   : > { %v3825_v61 = vsel %vm1875_vm9, %v3793_v8, %v3536_v44  ;;  %v4169_v44 = vld [vmem:[%s4516_s23 + $0xc8] sm:$0xff] }
 0x6b0   : > { %v4118_v22 = vsel %vm4054_vm12, %v3971_v11, %v4086_v17  ;;  %v4134_v26 = vsel %vm4070_vm13, %v4019_v40, %v4102_v60  ;;  %4368 = vmatmul.msk.f32.gmra.mxu3 %vm1917_vm11, %v3825_v61  ;;  %v4153_v60 = vld [vmem:[%s4516_s23 + $0x48] sm:$0xff] }
 0x6b1   : > { %v4182_v18 = vadd.f32 %v4150_v2, %v4118_v22  ;;  %v4198_v58 = vadd.f32 %v4166_v48, %v4134_v26 }
 0x6b3   : > { %4214 = vst.msk [vmem:[%s7560_s15 + $0x30] sm:$0xff] %vm225_vm0, %v4182_v18 }
 0x6b4   : > { %4230 = vst.msk [vmem:[%s7560_s15 + $0xb0] sm:$0xff] %vm225_vm0, %v4198_v58  ;;  %v3282_v57 = vpop.permute.xlu1 %3281 }
 0x6b5   : > { %v3762_v16 = vsel %vm1809_vm8, %v3730_v50, %v3282_v57 }
 0x6b6   : > { %v3376_v42 = vpop.permute.xlu0 %3375 }
 0x6b7   : > { %v3777_v27 = vsel %vm1842_vm10, %v3745_v35, %v3376_v42 }
 0x6b8   : > { %v3809_v52 = vsel %vm1875_vm9, %v3777_v27, %v3504_v9  ;;  %v4154_v27 = vld [vmem:[%s4516_s23 + $0x50] sm:$0xff] }
 0x6b9   : > { %4352 = vmatmul.msk.f32.gmra.mxu1 %vm1917_vm11, %v3809_v52 }
 0x6bb   : > { %v3973_v34 = vpop.f32.mrf.mxu1  ;;  %v4021_v53 = vpop.f32.mrf.mxu3 }
 0x6bc   : > { %v3974_v30 = vadd.f32 %v7540_v39, %v3973_v34  ;;  %v4022_v19 = vadd.f32 %v7540_v39, %v4021_v53  ;;  %v3538_v38 = vpop.permute.xlu1 %3537  ;;  %v4171_v34 = vld [vmem:[%s4516_s23 + $0xd8] sm:$0xff] }
 0x6be   : > { %vm4055_vm4 = vcmp.ge.f32.partialorder %v3974_v30, 0.0  ;;  %v4087_v33 = vmul.f32 0.1, %v3974_v30  ;;  %vm4071_vm5 = vcmp.ge.f32.partialorder %v4022_v19, 0.0  ;;  %v4103_v32 = vmul.f32 0.1, %v4022_v19  ;;  %v3410_v46 = vpop.permute.xlu0 %3409 }
 0x6bf   : > { %v3794_v29 = vsel %vm1842_vm10, %v3762_v16, %v3410_v46 }
 0x6c0   : > { %v4119_v55 = vsel %vm4055_vm4, %v3974_v30, %v4087_v33  ;;  %v4135_v6 = vsel %vm4071_vm5, %v4022_v19, %v4103_v32  ;;  %v3826_v59 = vsel %vm1875_vm9, %v3794_v29, %v3538_v38  ;;  %v4172_v29 = vld [vmem:[%s4516_s23 + $0xe0] sm:$0xff] }
 0x6c1   : > { %v4183_v24 = vadd.f32 %v4151_v41, %v4119_v55  ;;  %v4199_v62 = vadd.f32 %v4167_v14, %v4135_v6  ;;  %4369 = vmatmul.msk.f32.gmra.mxu3 %vm1917_vm11, %v3826_v59  ;;  %v4155_v41 = vld [vmem:[%s4516_s23 + $0x58] sm:$0xff] }
 0x6c3   : > { %4215 = vst.msk [vmem:[%s7560_s15 + $0x38] sm:$0xff] %vm225_vm0, %v4183_v24 }
 0x6c4   : > { %4231 = vst.msk [vmem:[%s7560_s15 + $0xb8] sm:$0xff] %vm225_vm0, %v4199_v62  ;;  %v3506_v21 = vpop.permute.xlu1 %3505 }
 0x6c6   : > { %v3378_v4 = vpop.permute.xlu0 %3377 }
 0x6c7   : > { %v3778_v49 = vsel %vm1842_vm10, %v3746_v20, %v3378_v4 }
 0x6c8   : > { %v3810_v56 = vsel %vm1875_vm9, %v3778_v49, %v3506_v21 }
 0x6c9   : > { %4353 = vmatmul.msk.f32.gmra.mxu1 %vm1917_vm11, %v3810_v56 }
 0x6cb   : > { %v3976_v54 = vpop.f32.mrf.mxu1  ;;  %v4024_v37 = vpop.f32.mrf.mxu3 }
 0x6cc   : > { %v3977_v10 = vadd.f32 %v7540_v39, %v3976_v54  ;;  %v4025_v12 = vadd.f32 %v7540_v39, %v4024_v37  ;;  %v4173_v54 = vld [vmem:[%s4516_s23 + $0xe8] sm:$0xff] }
 0x6ce   : > { %vm4056_vm6 = vcmp.ge.f32.partialorder %v3977_v10, 0.0  ;;  %v4088_v5 = vmul.f32 0.1, %v3977_v10  ;;  %vm4072_vm7 = vcmp.ge.f32.partialorder %v4025_v12, 0.0  ;;  %v4104_v31 = vmul.f32 0.1, %v4025_v12 }
 0x6d0   : > { %v4120_v11 = vsel %vm4056_vm6, %v3977_v10, %v4088_v5  ;;  %v4136_v40 = vsel %vm4072_vm7, %v4025_v12, %v4104_v31  ;;  %v4157_v5 = vld [vmem:[%s4516_s23 + $0x68] sm:$0xff] }
 0x6d1   : > { %v4184_v3 = vadd.f32 %v4152_v45, %v4120_v11  ;;  %v4200_v1 = vadd.f32 %v4168_v0, %v4136_v40 }
 0x6d3   : > { %4216 = vst.msk [vmem:[%s7560_s15 + $0x40] sm:$0xff] %vm225_vm0, %v4184_v3 }
 0x6d4   : > { %4232 = vst.msk [vmem:[%s7560_s15 + $0xc0] sm:$0xff] %vm225_vm0, %v4200_v1 }
 0x6db   : > { %v3979_v2 = vpop.f32.mrf.mxu1  ;;  %v4027_v48 = vpop.f32.mrf.mxu3 }
 0x6dc   : > { %v3980_v8 = vadd.f32 %v7540_v39, %v3979_v2  ;;  %v4028_v17 = vadd.f32 %v7540_v39, %v4027_v48  ;;  %v4174_v2 = vld [vmem:[%s4516_s23 + $0xf0] sm:$0xff] }
 0x6de   : > { %vm4057_vm8 = vcmp.ge.f32.partialorder %v3980_v8, 0.0  ;;  %v4089_v61 = vmul.f32 0.1, %v3980_v8  ;;  %vm4073_vm9 = vcmp.ge.f32.partialorder %v4028_v17, 0.0  ;;  %v4105_v22 = vmul.f32 0.1, %v4028_v17 }
 0x6e0   : > { %v4121_v26 = vsel %vm4057_vm8, %v3980_v8, %v4089_v61  ;;  %v4137_v18 = vsel %vm4073_vm9, %v4028_v17, %v4105_v22  ;;  %v4158_v61 = vld [vmem:[%s4516_s23 + $0x70] sm:$0xff] }
 0x6e1   : > { %v4185_v58 = vadd.f32 %v4153_v60, %v4121_v26  ;;  %v4201_v57 = vadd.f32 %v4169_v44, %v4137_v18 }
 0x6e3   : > { %4217 = vst.msk [vmem:[%s7560_s15 + $0x48] sm:$0xff] %vm225_vm0, %v4185_v58 }
 0x6e4   : > { %4233 = vst.msk [vmem:[%s7560_s15 + $0xc8] sm:$0xff] %vm225_vm0, %v4201_v57 }
 0x6eb   : > { %v3982_v15 = vpop.f32.mrf.mxu1  ;;  %v4030_v35 = vpop.f32.mrf.mxu3 }
 0x6ec   : > { %v3983_v42 = vadd.f32 %v7540_v39, %v3982_v15  ;;  %v4031_v9 = vadd.f32 %v7540_v39, %v4030_v35  ;;  %v4175_v35 = vld [vmem:[%s4516_s23 + $0xf8] sm:$0xff] }
 0x6ee   : > { %vm4058_vm10 = vcmp.ge.f32.partialorder %v3983_v42, 0.0  ;;  %v4090_v43 = vmul.f32 0.1, %v3983_v42  ;;  %vm4074_vm11 = vcmp.ge.f32.partialorder %v4031_v9, 0.0  ;;  %v4106_v7 = vmul.f32 0.1, %v4031_v9 }
 0x6f0   : > { %v4122_v52 = vsel %vm4058_vm10, %v3983_v42, %v4090_v43  ;;  %v4138_v25 = vsel %vm4074_vm11, %v4031_v9, %v4106_v7 }
 0x6f1   : > { %v4186_v63 = vadd.f32 %v4154_v27, %v4122_v52  ;;  %v4202_v23 = vadd.f32 %v4170_v28, %v4138_v25  ;;  %v4159_v28 = vld [vmem:[%s4516_s23 + $0x78] sm:$0xff] }
 0x6f3   : > { %4218 = vst.msk [vmem:[%s7560_s15 + $0x50] sm:$0xff] %vm225_vm0, %v4186_v63 }
 0x6f4   : > { %4234 = vst.msk [vmem:[%s7560_s15 + $0xd0] sm:$0xff] %vm225_vm0, %v4202_v23 }
 0x6fb   : > { %v4033_v51 = vpop.f32.mrf.mxu3 }
 0x6fc   : > { %v4034_v13 = vadd.f32 %v7540_v39, %v4033_v51 }
 0x6fe   : > { %vm4075_vm3 = vcmp.ge.f32.partialorder %v4034_v13, 0.0  ;;  %v4107_v47 = vmul.f32 0.1, %v4034_v13  ;;  %v3985_v53 = vpop.f32.mrf.mxu1 }
 0x6ff   : > { %v3986_v50 = vadd.f32 %v7540_v39, %v3985_v53 }
 0x700   : > { %v4139_v30 = vsel %vm4075_vm3, %v4034_v13, %v4107_v47 }
 0x701   : > { %v4203_v19 = vadd.f32 %v4171_v34, %v4139_v30  ;;  %vm4059_vm14 = vcmp.ge.f32.partialorder %v3986_v50, 0.0  ;;  %v4091_v16 = vmul.f32 0.1, %v3986_v50 }
 0x703   : > { %4235 = vst.msk [vmem:[%s7560_s15 + $0xd8] sm:$0xff] %vm225_vm0, %v4203_v19  ;;  %v4123_v14 = vsel %vm4059_vm14, %v3986_v50, %v4091_v16 }
 0x704   : > { %v4187_v38 = vadd.f32 %v4155_v41, %v4123_v14 }
 0x706   : > { %4219 = vst.msk [vmem:[%s7560_s15 + $0x58] sm:$0xff] %vm225_vm0, %v4187_v38 }
 0x70c   : > { %v4036_v33 = vpop.f32.mrf.mxu3 }
 0x70d   : > { %v4037_v32 = vadd.f32 %v7540_v39, %v4036_v33 }
 0x70f   : > { %vm4076_vm15 = vcmp.ge.f32.partialorder %v4037_v32, 0.0  ;;  %v4108_v46 = vmul.f32 0.1, %v4037_v32 }
 0x711   : > { %v4140_v55 = vsel %vm4076_vm15, %v4037_v32, %v4108_v46 }
 0x712   : > { %v4204_v6 = vadd.f32 %v4172_v29, %v4140_v55 }
 0x714   : > { %4236 = vst.msk [vmem:[%s7560_s15 + $0xe0] sm:$0xff] %vm225_vm0, %v4204_v6 }
 0x715   : > { %v3988_v59 = vpop.f32.mrf.mxu1 }
 0x716   : > { %v3989_v24 = vadd.f32 %v7540_v39, %v3988_v59 }
 0x718   : > { %vm4060_vm1 = vcmp.ge.f32.partialorder %v3989_v24, 0.0  ;;  %v4092_v62 = vmul.f32 0.1, %v3989_v24 }
 0x71a   : > { %v4124_v20 = vsel %vm4060_vm1, %v3989_v24, %v4092_v62  ;;  %v4039_v4 = vpop.f32.mrf.mxu3 }
 0x71b   : > { %v4188_v21 = vadd.f32 %v4156_v36, %v4124_v20  ;;  %v4040_v49 = vadd.f32 %v7540_v39, %v4039_v4 }
 0x71d   : > { %4220 = vst.msk [vmem:[%s7560_s15 + $0x60] sm:$0xff] %vm225_vm0, %v4188_v21  ;;  %vm4077_vm2 = vcmp.ge.f32.partialorder %v4040_v49, 0.0  ;;  %v4109_v56 = vmul.f32 0.1, %v4040_v49 }
 0x71f   : > { %v4141_v37 = vsel %vm4077_vm2, %v4040_v49, %v4109_v56 }
 0x720   : > { %v4205_v10 = vadd.f32 %v4173_v54, %v4141_v37 }
 0x722   : > { %4237 = vst.msk [vmem:[%s7560_s15 + $0xe8] sm:$0xff] %vm225_vm0, %v4205_v10 }
 0x723   : > { %v3991_v12 = vpop.f32.mrf.mxu1 }
 0x724   : > { %v3992_v45 = vadd.f32 %v7540_v39, %v3991_v12 }
 0x726   : > { %vm4061_vm12 = vcmp.ge.f32.partialorder %v3992_v45, 0.0  ;;  %v4093_v0 = vmul.f32 0.1, %v3992_v45 }
 0x728   : > { %v4125_v31 = vsel %vm4061_vm12, %v3992_v45, %v4093_v0 }
 0x729   : > { %v4189_v11 = vadd.f32 %v4157_v5, %v4125_v31 }
 0x72b   : > { %4221 = vst.msk [vmem:[%s7560_s15 + $0x68] sm:$0xff] %vm225_vm0, %v4189_v11 }
 0x733   : > { %v4042_v40 = vpop.f32.mrf.mxu3 }
 0x734   : > { %v4043_v3 = vadd.f32 %v7540_v39, %v4042_v40 }
 0x736   : > { %vm4078_vm13 = vcmp.ge.f32.partialorder %v4043_v3, 0.0  ;;  %v4110_v1 = vmul.f32 0.1, %v4043_v3  ;;  %v3994_v48 = vpop.f32.mrf.mxu1 }
 0x737   : > { %v3995_v8 = vadd.f32 %v7540_v39, %v3994_v48 }
 0x738   : > { %v4142_v17 = vsel %vm4078_vm13, %v4043_v3, %v4110_v1 }
 0x739   : > { %v4206_v60 = vadd.f32 %v4174_v2, %v4142_v17  ;;  %vm4062_vm4 = vcmp.ge.f32.partialorder %v3995_v8, 0.0  ;;  %v4094_v44 = vmul.f32 0.1, %v3995_v8 }
 0x73b   : > { %4238 = vst.msk [vmem:[%s7560_s15 + $0xf0] sm:$0xff] %vm225_vm0, %v4206_v60  ;;  %v4126_v22 = vsel %vm4062_vm4, %v3995_v8, %v4094_v44 }
 0x73c   : > { %v4190_v26 = vadd.f32 %v4158_v61, %v4126_v22 }
 0x73e   : > { %4222 = vst.msk [vmem:[%s7560_s15 + $0x70] sm:$0xff] %vm225_vm0, %v4190_v26 }
 0x744   : > { %v4045_v18 = vpop.f32.mrf.mxu3 }
 0x745   : > { %v4046_v58 = vadd.f32 %v7540_v39, %v4045_v18 }
 0x746   : > { %v3997_v57 = vpop.f32.mrf.mxu1 }
 0x747   : > { %vm4079_vm5 = vcmp.ge.f32.partialorder %v4046_v58, 0.0  ;;  %v4111_v15 = vmul.f32 0.1, %v4046_v58  ;;  %v3998_v42 = vadd.f32 %v7540_v39, %v3997_v57 }
 0x749   : > { %v4143_v9 = vsel %vm4079_vm5, %v4046_v58, %v4111_v15  ;;  %vm4063_vm6 = vcmp.ge.f32.partialorder %v3998_v42, 0.0  ;;  %v4095_v27 = vmul.f32 0.1, %v3998_v42 }
 0x74a   : > { %v4207_v43 = vadd.f32 %v4175_v35, %v4143_v9 }
 0x74b   : > { %v4127_v7 = vsel %vm4063_vm6, %v3998_v42, %v4095_v27 }
 0x74c   : > { %4239 = vst.msk [vmem:[%s7560_s15 + $0xf8] sm:$0xff] %vm225_vm0, %v4207_v43  ;;  %v4191_v52 = vadd.f32 %v4159_v28, %v4127_v7 }
 0x74e   : > { %4223 = vst.msk [vmem:[%s7560_s15 + $0x78] sm:$0xff] %vm225_vm0, %v4191_v52 }
 0x74f PF: > { %s15_s18 = sadd.s32 1, %s4451_s18  }
 0x750   : > { %p12_p4 = scmp.ge.s32.totalorder %s15_s18, 4  }
 0x752   :  { %14 = sbr.rel (!%p12_p4) target bundleno = 1 (0x1), region = 73 }

</bundles_post_ra>
